<compile_context>
chip_gen: v6e
topology: v6e:2x2x1
jax: 0.10.0
libtpu: 0.0.40
codegen_flags: <defaults>
</compile_context>

<pallas_src>
import jax
import jax.numpy as jnp
from jax.experimental import pallas as pl
from jax.experimental.pallas import tpu as pltpu

INPUT_DIM = (42, 22)                      # PyTorch module default
LATENT_DIM = 10
IN_FEATS = INPUT_DIM[0] * INPUT_DIM[1]    # 924

# Lane-dense padded dims
D_IN_PAD = 1024                           # 924 -> 1024

# Logical (unpadded) layer shapes, encoder then decoder
_LAYER_SHAPES = [
    (IN_FEATS, 512),
    (512, 256),
    (256, LATENT_DIM),
    (LATENT_DIM, 256),
    (256, 512),
    (512, IN_FEATS),
]

# Padded (in, out) dims of the 5 kernel layers after the fc3/fc4 fold
_KERNEL_PADS = [
    (D_IN_PAD, 512),
    (512, 256),
    (256, 256),        # folded fc3·fc4 (rank-10)
    (256, 512),
    (512, D_IN_PAD),
]


def _sigmoid_f32(y):
    # Numerically robust sigmoid on the EUP tanh path; result always in [0, 1].
    return 0.5 * (jnp.tanh(0.5 * y) + 1.0)


# ---------------------------------------------------------------------------
# Fused kernel: all layers, activations stay in VMEM
# ---------------------------------------------------------------------------
def _fused_ae_kernel(x_ref,
                     w1, b1, w2, b2, w34, b34, w5, b5, w6, b6,
                     o_ref):
    def layer(h_bf16, w_ref, b_ref, act):
        # bf16 x bf16 -> f32 accumulate on the MXU
        y = jnp.dot(h_bf16, w_ref[...], preferred_element_type=jnp.float32)
        y = y + b_ref[...]                        # f32 epilogue
        if act == "relu":
            y = jnp.maximum(y, 0.0)
        elif act == "sigmoid":
            y = _sigmoid_f32(y)
        return y

    h = x_ref[...]                                           # (tile_b, 1024) bf16
    # encoder
    h = layer(h, w1, b1, "relu").astype(jnp.bfloat16)        # -> 512
    h = layer(h, w2, b2, "relu").astype(jnp.bfloat16)        # -> 256
    # fused fc3(256->10, no act) . fc4(10->256) followed by decoder ReLU
    h = layer(h, w34, b34, "relu").astype(jnp.bfloat16)      # -> 256
    # decoder tail (dropout == identity in eval mode)
    h = layer(h, w5, b5, "relu").astype(jnp.bfloat16)        # -> 512
    y = layer(h, w6, b6, "sigmoid")                          # -> 1024 (924 real)
    o_ref[...] = y.astype(o_ref.dtype)                       # bf16 writeback


# ---------------------------------------------------------------------------
# Parameter construction (PyTorch-Linear-style uniform init) + kernel packing
# ---------------------------------------------------------------------------
def init_params(key):
    """Six logical (w[in,out] f32, b[out] f32) pairs, matching nn.Linear init."""
    keys = jax.random.split(key, len(_LAYER_SHAPES))
    params = []
    for k, (fan_in, fan_out) in zip(keys, _LAYER_SHAPES):
        kw, kb = jax.random.split(k)
        bound = 1.0 / jnp.sqrt(jnp.float32(fan_in))
        w = jax.random.uniform(kw, (fan_in, fan_out), jnp.float32, -bound, bound)
        b = jax.random.uniform(kb, (fan_out,), jnp.float32, -bound, bound)
        params.append((w, b))
    return params


def prepare_kernel_params(params):
    """Fold fc3/fc4 (eval-mode only), pad to lane multiples, cast weights to bf16."""
    (w1, b1), (w2, b2), (w3, b3), (w4, b4), (w5, b5), (w6, b6) = params
    w34 = w3 @ w4                     # (256, 256), rank-10
    b34 = b3 @ w4 + b4                # (256,)
    fused = [(w1, b1), (w2, b2), (w34, b34), (w5, b5), (w6, b6)]

    kparams = []
    for (w, b), (in_pad, out_pad) in zip(fused, _KERNEL_PADS):
        fi, fo = w.shape
        w_p = jnp.zeros((in_pad, out_pad), jnp.float32).at[:fi, :fo].set(w)
        b_p = jnp.zeros((1, out_pad), jnp.float32).at[0, :fo].set(b)
        kparams.append((w_p.astype(jnp.bfloat16), b_p))      # bias stays f32
    return kparams


# ---------------------------------------------------------------------------
# Batch tiling: multiples of 128 at large batch, >= 2 grid steps once B > 128
# so the "parallel" axis can shard across both v7x TensorCores.
# ---------------------------------------------------------------------------
def _batch_tiling(B):
    if B <= 128:
        tile = max(16, ((B + 15) // 16) * 16)    # bf16 sublane packing floor
        return tile, tile                        # single grid step
    b128 = ((B + 127) // 128) * 128
    tile = min(512, b128 // 2)                   # keep >= 2 grid steps
    tile = max(128, (tile // 128) * 128)
    b_pad = ((B + tile - 1) // tile) * tile
    return tile, b_pad


# ---------------------------------------------------------------------------
# Forward pass wrapper (Flatten -> fused kernel -> slice -> Unflatten)
# ---------------------------------------------------------------------------
def deep_binary_autoencoder_forward(kparams, x):
    B = x.shape[0]
    # nn.Flatten + bf16 cast BEFORE the pad (halves wrapper + kernel input traffic)
    h = x.reshape(B, IN_FEATS).astype(jnp.bfloat16)

    tile_b, b_pad = _batch_tiling(B)
    h = jnp.pad(h, ((0, b_pad - B), (0, D_IN_PAD - IN_FEATS)))

    flat_params = [a for wb in kparams for a in wb]

    x_spec = pl.BlockSpec((tile_b, D_IN_PAD), lambda i: (i, 0))
    out_spec = pl.BlockSpec((tile_b, D_IN_PAD), lambda i: (i, 0))
    # Constant block index -> weights/biases stay VMEM-resident across batch
    # tiles; Buffered(1) -> single buffer (no dead double buffer, ~2.6 MiB saved).
    param_specs = []
    for (w, b) in kparams:
        param_specs.append(
            pl.BlockSpec(w.shape, lambda i: (0, 0), pipeline_mode=pl.Buffered(1)))
        param_specs.append(
            pl.BlockSpec(b.shape, lambda i: (0, 0), pipeline_mode=pl.Buffered(1)))

    out = pl.pallas_call(
        _fused_ae_kernel,
        out_shape=jax.ShapeDtypeStruct((b_pad, D_IN_PAD), jnp.bfloat16),
        grid_spec=pltpu.PrefetchScalarGridSpec(
            num_scalar_prefetch=0,
            grid=(b_pad // tile_b,),
            in_specs=[x_spec] + param_specs,
            out_specs=out_spec,
        ),
        compiler_params=pltpu.CompilerParams(
            dimension_semantics=("parallel",),   # v7x: shard tiles over both TCs
            vmem_limit_bytes=48 * 1024 * 1024,   # < 64 MiB/TC physical on v7x
        ),
    )(h, *flat_params)

    out = out[:B, :IN_FEATS].astype(jnp.float32)          # drop pads, f32 like torch
    return out.reshape(B, *INPUT_DIM)                     # nn.Unflatten


# Pure-JAX f32 reference of the original 6-layer module (eval mode).
def _reference_forward(params, x):
    B = x.shape[0]
    h = x.reshape(B, IN_FEATS).astype(jnp.float32)
    for idx, (w, b) in enumerate(params):
        h = h @ w + b
        if idx in (0, 1, 3, 4):
            h = jnp.maximum(h, 0.0)
        elif idx == 5:
            h = jax.nn.sigmoid(h)
    return h.reshape(B, *INPUT_DIM)


# TODO(synk): dropout is identity (eval-mode); training-mode dropout would need
# pltpu.prng_seed / prng_random_bits masking inside the kernel (and would also
# invalidate the fc3/fc4 algebraic fold).

if __name__ == "__main__":
    key = jax.random.PRNGKey(0)
    kp, kx = jax.random.split(key)
    params = init_params(kp)
    kparams = prepare_kernel_params(params)

    fwd = jax.jit(deep_binary_autoencoder_forward)

    # Small batch (single tile) and a >128 batch (multi-tile, >=2 grid steps).
    for B in (4, 260):
        kx, sub = jax.random.split(kx)
        x = (jax.random.uniform(sub, (B, *INPUT_DIM)) > 0.5).astype(jnp.float32)

        out = jax.block_until_ready(fwd(kparams, x))

        assert out.shape == (B, *INPUT_DIM), out.shape
        assert out.dtype == jnp.float32
        assert bool(jnp.all(jnp.isfinite(out)))
        assert bool(jnp.all((out >= 0.0) & (out <= 1.0)))   # sigmoid range

        ref = _reference_forward(params, x)
        max_err = float(jnp.max(jnp.abs(out - ref)))
        assert max_err < 5e-2, f"B={B}: max abs err {max_err}"

    print("KERNEL_OK")
</pallas_src>

<mosaic_0001>
module attributes {stable_mosaic.version = 11 : i64} {
  func.func @_fused_ae_kernel(%arg0: i32, %arg1: memref<16x1024xbf16, #tpu.memory_space<vmem>>, %arg2: memref<1024x512xbf16, #tpu.memory_space<vmem>>, %arg3: memref<1x512xf32, #tpu.memory_space<vmem>>, %arg4: memref<512x256xbf16, #tpu.memory_space<vmem>>, %arg5: memref<1x256xf32, #tpu.memory_space<vmem>>, %arg6: memref<256x256xbf16, #tpu.memory_space<vmem>>, %arg7: memref<1x256xf32, #tpu.memory_space<vmem>>, %arg8: memref<256x512xbf16, #tpu.memory_space<vmem>>, %arg9: memref<1x512xf32, #tpu.memory_space<vmem>>, %arg10: memref<512x1024xbf16, #tpu.memory_space<vmem>>, %arg11: memref<1x1024xf32, #tpu.memory_space<vmem>>, %arg12: memref<16x1024xbf16, #tpu.memory_space<vmem>>) attributes {dimension_semantics = [#tpu.dimension_semantics<parallel>], iteration_bounds = array<i64: 1>, scalar_prefetch = 0 : i64, scratch_operands = 0 : i64, tpu.core_type = #tpu.core_type<tc>, window_params = [{transform_indices = @transform_0, window_bounds = array<i64: 16, 1024>}, {pipeline_mode = #tpu.pipeline_mode<synchronous>, transform_indices = @transform_1, window_bounds = array<i64: 1024, 512>}, {pipeline_mode = #tpu.pipeline_mode<synchronous>, transform_indices = @transform_2, window_bounds = array<i64: 1, 512>}, {pipeline_mode = #tpu.pipeline_mode<synchronous>, transform_indices = @transform_3, window_bounds = array<i64: 512, 256>}, {pipeline_mode = #tpu.pipeline_mode<synchronous>, transform_indices = @transform_4, window_bounds = array<i64: 1, 256>}, {pipeline_mode = #tpu.pipeline_mode<synchronous>, transform_indices = @transform_5, window_bounds = array<i64: 256, 256>}, {pipeline_mode = #tpu.pipeline_mode<synchronous>, transform_indices = @transform_6, window_bounds = array<i64: 1, 256>}, {pipeline_mode = #tpu.pipeline_mode<synchronous>, transform_indices = @transform_7, window_bounds = array<i64: 256, 512>}, {pipeline_mode = #tpu.pipeline_mode<synchronous>, transform_indices = @transform_8, window_bounds = array<i64: 1, 512>}, {pipeline_mode = #tpu.pipeline_mode<synchronous>, transform_indices = @transform_9, window_bounds = array<i64: 512, 1024>}, {pipeline_mode = #tpu.pipeline_mode<synchronous>, transform_indices = @transform_10, window_bounds = array<i64: 1, 1024>}, {transform_indices = @transform_11, window_bounds = array<i64: 16, 1024>}]} {
    %c0 = arith.constant 0 : index
    %c0_0 = arith.constant 0 : index
    %0 = vector.load %arg1[%c0, %c0_0] : memref<16x1024xbf16, #tpu.memory_space<vmem>>, vector<16x1024xbf16>
    %c0_1 = arith.constant 0 : index
    %c0_2 = arith.constant 0 : index
    %1 = vector.load %arg2[%c0_1, %c0_2] : memref<1024x512xbf16, #tpu.memory_space<vmem>>, vector<1024x512xbf16>
    %cst = arith.constant dense<0.000000e+00> : vector<16x512xf32>
    %2 = tpu.matmul %0, %1, %cst {dimension_numbers = #tpu.dot_dimension_numbers<[1], [0], [0], [1], [0, 0, 1, 1], [], []>} : vector<16x1024xbf16>, vector<1024x512xbf16>, vector<16x512xf32> -> vector<16x512xf32>
    %c0_3 = arith.constant 0 : index
    %c0_4 = arith.constant 0 : index
    %3 = vector.load %arg3[%c0_3, %c0_4] : memref<1x512xf32, #tpu.memory_space<vmem>>, vector<1x512xf32>
    %4 = vector.broadcast %3 : vector<1x512xf32> to vector<16x512xf32>
    %5 = arith.addf %2, %4 : vector<16x512xf32>
    %cst_5 = arith.constant 0.000000e+00 : f32
    %6 = vector.broadcast %cst_5 : f32 to vector<16x512xf32>
    %7 = arith.maximumf %5, %6 : vector<16x512xf32>
    %8 = arith.truncf %7 : vector<16x512xf32> to vector<16x512xbf16>
    %c0_6 = arith.constant 0 : index
    %c0_7 = arith.constant 0 : index
    %9 = vector.load %arg4[%c0_6, %c0_7] : memref<512x256xbf16, #tpu.memory_space<vmem>>, vector<512x256xbf16>
    %cst_8 = arith.constant dense<0.000000e+00> : vector<16x256xf32>
    %10 = tpu.matmul %8, %9, %cst_8 {dimension_numbers = #tpu.dot_dimension_numbers<[1], [0], [0], [1], [0, 0, 1, 1], [], []>} : vector<16x512xbf16>, vector<512x256xbf16>, vector<16x256xf32> -> vector<16x256xf32>
    %c0_9 = arith.constant 0 : index
    %c0_10 = arith.constant 0 : index
    %11 = vector.load %arg5[%c0_9, %c0_10] : memref<1x256xf32, #tpu.memory_space<vmem>>, vector<1x256xf32>
    %12 = vector.broadcast %11 : vector<1x256xf32> to vector<16x256xf32>
    %13 = arith.addf %10, %12 : vector<16x256xf32>
    %cst_11 = arith.constant 0.000000e+00 : f32
    %14 = vector.broadcast %cst_11 : f32 to vector<16x256xf32>
    %15 = arith.maximumf %13, %14 : vector<16x256xf32>
    %16 = arith.truncf %15 : vector<16x256xf32> to vector<16x256xbf16>
    %c0_12 = arith.constant 0 : index
    %c0_13 = arith.constant 0 : index
    %17 = vector.load %arg6[%c0_12, %c0_13] : memref<256x256xbf16, #tpu.memory_space<vmem>>, vector<256x256xbf16>
    %cst_14 = arith.constant dense<0.000000e+00> : vector<16x256xf32>
    %18 = tpu.matmul %16, %17, %cst_14 {dimension_numbers = #tpu.dot_dimension_numbers<[1], [0], [0], [1], [0, 0, 1, 1], [], []>} : vector<16x256xbf16>, vector<256x256xbf16>, vector<16x256xf32> -> vector<16x256xf32>
    %c0_15 = arith.constant 0 : index
    %c0_16 = arith.constant 0 : index
    %19 = vector.load %arg7[%c0_15, %c0_16] : memref<1x256xf32, #tpu.memory_space<vmem>>, vector<1x256xf32>
    %20 = vector.broadcast %19 : vector<1x256xf32> to vector<16x256xf32>
    %21 = arith.addf %18, %20 : vector<16x256xf32>
    %cst_17 = arith.constant 0.000000e+00 : f32
    %22 = vector.broadcast %cst_17 : f32 to vector<16x256xf32>
    %23 = arith.maximumf %21, %22 : vector<16x256xf32>
    %24 = arith.truncf %23 : vector<16x256xf32> to vector<16x256xbf16>
    %c0_18 = arith.constant 0 : index
    %c0_19 = arith.constant 0 : index
    %25 = vector.load %arg8[%c0_18, %c0_19] : memref<256x512xbf16, #tpu.memory_space<vmem>>, vector<256x512xbf16>
    %cst_20 = arith.constant dense<0.000000e+00> : vector<16x512xf32>
    %26 = tpu.matmul %24, %25, %cst_20 {dimension_numbers = #tpu.dot_dimension_numbers<[1], [0], [0], [1], [0, 0, 1, 1], [], []>} : vector<16x256xbf16>, vector<256x512xbf16>, vector<16x512xf32> -> vector<16x512xf32>
    %c0_21 = arith.constant 0 : index
    %c0_22 = arith.constant 0 : index
    %27 = vector.load %arg9[%c0_21, %c0_22] : memref<1x512xf32, #tpu.memory_space<vmem>>, vector<1x512xf32>
    %28 = vector.broadcast %27 : vector<1x512xf32> to vector<16x512xf32>
    %29 = arith.addf %26, %28 : vector<16x512xf32>
    %cst_23 = arith.constant 0.000000e+00 : f32
    %30 = vector.broadcast %cst_23 : f32 to vector<16x512xf32>
    %31 = arith.maximumf %29, %30 : vector<16x512xf32>
    %32 = arith.truncf %31 : vector<16x512xf32> to vector<16x512xbf16>
    %c0_24 = arith.constant 0 : index
    %c0_25 = arith.constant 0 : index
    %33 = vector.load %arg10[%c0_24, %c0_25] : memref<512x1024xbf16, #tpu.memory_space<vmem>>, vector<512x1024xbf16>
    %cst_26 = arith.constant dense<0.000000e+00> : vector<16x1024xf32>
    %34 = tpu.matmul %32, %33, %cst_26 {dimension_numbers = #tpu.dot_dimension_numbers<[1], [0], [0], [1], [0, 0, 1, 1], [], []>} : vector<16x512xbf16>, vector<512x1024xbf16>, vector<16x1024xf32> -> vector<16x1024xf32>
    %c0_27 = arith.constant 0 : index
    %c0_28 = arith.constant 0 : index
    %35 = vector.load %arg11[%c0_27, %c0_28] : memref<1x1024xf32, #tpu.memory_space<vmem>>, vector<1x1024xf32>
    %36 = vector.broadcast %35 : vector<1x1024xf32> to vector<16x1024xf32>
    %37 = arith.addf %34, %36 : vector<16x1024xf32>
    %cst_29 = arith.constant 5.000000e-01 : f32
    %38 = vector.broadcast %cst_29 : f32 to vector<16x1024xf32>
    %39 = arith.mulf %38, %37 : vector<16x1024xf32>
    %40 = math.tanh %39 : vector<16x1024xf32>
    %cst_30 = arith.constant 1.000000e+00 : f32
    %41 = vector.broadcast %cst_30 : f32 to vector<16x1024xf32>
    %42 = arith.addf %40, %41 : vector<16x1024xf32>
    %cst_31 = arith.constant 5.000000e-01 : f32
    %43 = vector.broadcast %cst_31 : f32 to vector<16x1024xf32>
    %44 = arith.mulf %43, %42 : vector<16x1024xf32>
    %45 = arith.truncf %44 : vector<16x1024xf32> to vector<16x1024xbf16>
    %c0_32 = arith.constant 0 : index
    %c0_33 = arith.constant 0 : index
    %46 = vector.load %arg12[%c0_32, %c0_33] : memref<16x1024xbf16, #tpu.memory_space<vmem>>, vector<16x1024xbf16>
    tpu.vector_store %arg12[%c0_32, %c0_33], %45 {strides = array<i32>} : memref<16x1024xbf16, #tpu.memory_space<vmem>>, vector<16x1024xbf16>,
    return
  }
  func.func @transform_0(%arg0: i32) -> (i32, i32) {
    %c0_i32 = arith.constant 0 : i32
    %c0_i32_0 = arith.constant 0 : i32
    return %arg0, %c0_i32 : i32, i32
  }
  func.func @transform_1(%arg0: i32) -> (i32, i32) {
    %c0_i32 = arith.constant 0 : i32
    %c0_i32_0 = arith.constant 0 : i32
    %c0_i32_1 = arith.constant 0 : i32
    return %c0_i32, %c0_i32_0 : i32, i32
  }
  func.func @transform_2(%arg0: i32) -> (i32, i32) {
    %c0_i32 = arith.constant 0 : i32
    %c0_i32_0 = arith.constant 0 : i32
    %c0_i32_1 = arith.constant 0 : i32
    return %c0_i32, %c0_i32_0 : i32, i32
  }
  func.func @transform_3(%arg0: i32) -> (i32, i32) {
    %c0_i32 = arith.constant 0 : i32
    %c0_i32_0 = arith.constant 0 : i32
    %c0_i32_1 = arith.constant 0 : i32
    return %c0_i32, %c0_i32_0 : i32, i32
  }
  func.func @transform_4(%arg0: i32) -> (i32, i32) {
    %c0_i32 = arith.constant 0 : i32
    %c0_i32_0 = arith.constant 0 : i32
    %c0_i32_1 = arith.constant 0 : i32
    return %c0_i32, %c0_i32_0 : i32, i32
  }
  func.func @transform_5(%arg0: i32) -> (i32, i32) {
    %c0_i32 = arith.constant 0 : i32
    %c0_i32_0 = arith.constant 0 : i32
    %c0_i32_1 = arith.constant 0 : i32
    return %c0_i32, %c0_i32_0 : i32, i32
  }
  func.func @transform_6(%arg0: i32) -> (i32, i32) {
    %c0_i32 = arith.constant 0 : i32
    %c0_i32_0 = arith.constant 0 : i32
    %c0_i32_1 = arith.constant 0 : i32
    return %c0_i32, %c0_i32_0 : i32, i32
  }
  func.func @transform_7(%arg0: i32) -> (i32, i32) {
    %c0_i32 = arith.constant 0 : i32
    %c0_i32_0 = arith.constant 0 : i32
    %c0_i32_1 = arith.constant 0 : i32
    return %c0_i32, %c0_i32_0 : i32, i32
  }
  func.func @transform_8(%arg0: i32) -> (i32, i32) {
    %c0_i32 = arith.constant 0 : i32
    %c0_i32_0 = arith.constant 0 : i32
    %c0_i32_1 = arith.constant 0 : i32
    return %c0_i32, %c0_i32_0 : i32, i32
  }
  func.func @transform_9(%arg0: i32) -> (i32, i32) {
    %c0_i32 = arith.constant 0 : i32
    %c0_i32_0 = arith.constant 0 : i32
    %c0_i32_1 = arith.constant 0 : i32
    return %c0_i32, %c0_i32_0 : i32, i32
  }
  func.func @transform_10(%arg0: i32) -> (i32, i32) {
    %c0_i32 = arith.constant 0 : i32
    %c0_i32_0 = arith.constant 0 : i32
    %c0_i32_1 = arith.constant 0 : i32
    return %c0_i32, %c0_i32_0 : i32, i32
  }
  func.func @transform_11(%arg0: i32) -> (i32, i32) {
    %c0_i32 = arith.constant 0 : i32
    %c0_i32_0 = arith.constant 0 : i32
    return %arg0, %c0_i32 : i32, i32
  }
}

</mosaic_0001>

<bundles_post_ra>
// kernel: deep_binary_autoencoder_forward.1
= control target key start
LH: loop header
LB: loop body
LE: loop exit
PB: predicated region body
PF: predicated region fallthrough
CT: control target
= control target key end

     0   :  { %16 = vsyncpa [#allocation3], 0  ;;  %s7160_s0 = inlined_call_operand.vmem [shape: bf16[16,1024], index: 0, kind: input, shape index: {}]   ;;  %s7161_s1 = inlined_call_operand.hbm [shape: bf16[1024,512], index: 1, kind: input, shape index: {}]   ;;  %s7162_s2 = inlined_call_operand.vmem [shape: f32[1,512], index: 2, kind: input, shape index: {}]   ;;  %s7163_s3 = inlined_call_operand.hbm [shape: bf16[512,256], index: 3, kind: input, shape index: {}]   ;;  %s7164_s4 = inlined_call_operand.vmem [shape: f32[1,256], index: 4, kind: input, shape index: {}]   ;;  %s7165_s5 = inlined_call_operand.vmem [shape: bf16[256,256], index: 5, kind: input, shape index: {}]   ;;  %s7166_s6 = inlined_call_operand.vmem [shape: f32[1,256], index: 6, kind: input, shape index: {}]   ;;  %s7167_s7 = inlined_call_operand.hbm [shape: bf16[256,512], index: 7, kind: input, shape index: {}]   ;;  %s7168_s8 = inlined_call_operand.vmem [shape: f32[1,512], index: 8, kind: input, shape index: {}]   ;;  %s7169_s9 = inlined_call_operand.hbm [shape: bf16[512,1024], index: 9, kind: input, shape index: {}]   ;;  %s7170_s10 = inlined_call_operand.vmem [shape: f32[1,1024], index: 10, kind: input, shape index: {}]   ;;  %s7171_s11 = inlined_call_operand.vmem [shape: bf16[16,1024], index: 11, kind: output, shape index: {}]  }
   0x1   :  { %17 = vsyncpa [#allocation5], 0 }
   0x2   :  { %18 = vsyncpa [#allocation8], 0  ;;  %s6797_s17 = smov [#allocation4]  }
   0x3   :  { %s40_s18 = sshll.u32 %s6797_s17, 4  ;;  %s41_s18 = int_to_ptr.vmem [resolvable:$true] %s40_s18 }
   0x4   :  { %s6719_s19 = scalar_lea.vmem %s41_s18, 8192  ;;  %p6724_p1 = scmp.lt.s32.totalorder %s41_s18, %s41_s18 }
   0x5   :  { %p6720_p0 = scmp.ne.s32.totalorder %s41_s18, %s6719_s19  ;;  %p6725_p2 = scmp.lt.s32.totalorder %s6719_s19, %s6719_s19 }
   0x7   :  { %p6726_p3 = por %p6725_p2, %p6724_p1 }
   0x9   :  { %p6727_p4 = pnand %p6726_p3, %p6720_p0 }
   0xb   :  { %6730 = shalt.err (!%p6727_p4)
}
   0xc   :  { %s6798_s20 = smov 128   ;;  %s6799_s21 = smov 8  }
   0xd   :  { %46 = dma.hbm_to_vmem [thread:$0]  %s7163_s3, 8192, %s41_s18, [#allocation5], %s6798_s20, %s6798_s20, %s6799_s21  }
   0xe   :  { %s6800_s24 = smov [#allocation2]  }
   0xf   :  { %s26_s25 = sshll.u32 %s6800_s24, 4  ;;  %s27_s25 = int_to_ptr.vmem [resolvable:$true] %s26_s25 }
  0x10   :  { %s6739_s26 = scalar_lea.vmem %s27_s25, 32768  ;;  %p6744_p6 = scmp.lt.s32.totalorder %s27_s25, %s27_s25 }
  0x11   :  { %p6740_p5 = scmp.ne.s32.totalorder %s27_s25, %s6739_s26  ;;  %p6745_p7 = scmp.lt.s32.totalorder %s6739_s26, %s6739_s26 }
  0x13   :  { %p6746_p8 = por %p6745_p7, %p6744_p6 }
  0x15   :  { %p6747_p9 = pnand %p6746_p8, %p6740_p5 }
  0x17   :  { %6750 = shalt.err (!%p6747_p9)
}
  0x18   :  { %s6801_s27 = smov 256   ;;  %s6802_s28 = smov 16  }
  0x19   :  { %32 = dma.hbm_to_vmem [thread:$0]  %s7161_s1, 32768, %s27_s25, [#allocation3], %s6801_s27, %s6801_s27, %s6802_s28  }
  0x1a   :  { %s6803_s12 = smov [#allocation6]   ;;  %s6804_s14 = smov [#allocation7]  }
  0x1b   :  { %s58_s13 = sshll.u32 %s6803_s12, 4  ;;  %s72_s3 = sshll.u32 %s6804_s14, 4  ;;  %s59_s13 = int_to_ptr.vmem [resolvable:$true] %s58_s13  ;;  %s73_s3 = int_to_ptr.vmem [resolvable:$true] %s72_s3 }
  0x1c   :  { %s6759_s15 = scalar_lea.vmem %s59_s13, 8192  ;;  %p6764_p11 = scmp.lt.s32.totalorder %s59_s13, %s59_s13 }
  0x1d   :  { %p6760_p10 = scmp.ne.s32.totalorder %s59_s13, %s6759_s15  ;;  %p6765_p12 = scmp.lt.s32.totalorder %s6759_s15, %s6759_s15 }
  0x1f   :  { %p6766_p13 = por %p6765_p12, %p6764_p11 }
  0x21   :  { %p6767_p0 = pnand %p6766_p13, %p6760_p10 }
  0x23   :  { %6770 = shalt.err (!%p6767_p0)
}
  0x24   :  { %64 = dma.hbm_to_vmem [thread:$0]  %s7167_s7, 8192, %s59_s13, [#allocation5], %s6801_s27, %s6801_s27, %s6802_s28  }
  0x25   :  { %s6779_s18 = scalar_lea.vmem %s73_s3, 32768  ;;  %p6784_p2 = scmp.lt.s32.totalorder %s73_s3, %s73_s3 }
  0x26   :  { %p6780_p1 = scmp.ne.s32.totalorder %s73_s3, %s6779_s18  ;;  %p6785_p3 = scmp.lt.s32.totalorder %s6779_s18, %s6779_s18 }
  0x28   :  { %p6786_p4 = por %p6785_p3, %p6784_p2 }
  0x2a   :  { %p6787_p5 = pnand %p6786_p4, %p6780_p1 }
  0x2c   :  { %6790 = shalt.err (!%p6787_p5)
}
  0x2d   :  { %s6805_s1 = smov 512   ;;  %s6806_s19 = smov 32  }
  0x2e   :  { %78 = dma.hbm_to_vmem [thread:$0]  %s7169_s9, 32768, %s73_s3, [#allocation8], %s6805_s1, %s6805_s1, %s6806_s19  }
  0x2f   :  { %6791 = dma.done.wait [#allocation3], 32768  }
  0x30   :  { %6792 = vsyncadd [#allocation3], 4294934528 }
  0x31   :  { %6793 = dma.done.wait [#allocation5], 16384  }
  0x32   :  { %6794 = vsyncadd [#allocation5], 4294950912 }
  0x33   :  { %6795 = dma.done.wait [#allocation8], 32768  }
  0x34   :  { %6796 = vsyncadd [#allocation8], 4294934528  ;;  %v6055_v0 = vld [vmem:[#allocation2 + $0xe4] ss:$16 sps:$4 sm:$0xff]   ;;  %v6059_v2 = vld [vmem:[#allocation2 + $0xe0] ss:$16 sps:$4 sm:$0xff]  }
  0x35   :  { %v6057_v1 = vld [vmem:[#allocation2 + $0x2e4] ss:$16 sps:$4 sm:$0xff]   ;;  %1699 = vmatprep.subr.bf16.mxu0 %v6055_v0  ;;  %v6060_v3 = vld [vmem:[#allocation2 + $0x2e0] ss:$16 sps:$4 sm:$0xff]   ;;  %v94_v50 = vld [vmem:[%s7160_s0 + $0x8] sm:$0xff] }
  0x36   :  { %1742 = vmatprep.subr.bf16.mxu1 %v6057_v1  ;;  %v6061_v4 = vld [vmem:[#allocation2 + $0xc4] ss:$16 sps:$4 sm:$0xff]   ;;  %1700 = vmatpush1.bf16.msra.mxu0 %v6059_v2  ;;  %v6065_v6 = vld [vmem:[#allocation2 + $0xc0] ss:$16 sps:$4 sm:$0xff]   ;;  %v98_v51 = vld [vmem:[%s7160_s0 + $0x28] sm:$0xff] }
  0x37   :  { %1743 = vmatpush1.bf16.msra.mxu1 %v6060_v3  ;;  %v6063_v5 = vld [vmem:[#allocation2 + $0x2c4] ss:$16 sps:$4 sm:$0xff]   ;;  %1701 = vmatprep.subr.bf16.mxu0 %v6061_v4  ;;  %v6066_v7 = vld [vmem:[#allocation2 + $0x2c0] ss:$16 sps:$4 sm:$0xff]   ;;  %v6893_v55 = vcombine.high %v94_v50, %v98_v51 }
  0x38   :  { %1744 = vmatprep.subr.bf16.mxu1 %v6063_v5  ;;  %v6067_v8 = vld [vmem:[#allocation2 + $0xa4] ss:$16 sps:$4 sm:$0xff]   ;;  %v6071_v10 = vld [vmem:[#allocation2 + $0xa0] ss:$16 sps:$4 sm:$0xff]  }
  0x39   :  { %v6069_v9 = vld [vmem:[#allocation2 + $0x2a4] ss:$16 sps:$4 sm:$0xff]   ;;  %v6072_v11 = vld [vmem:[#allocation2 + $0x2a0] ss:$16 sps:$4 sm:$0xff]   ;;  %1774 = vmatprep.mubr.bf16.mxu1 %v6893_v55 }
  0x3a   :  { %1702 = vmatpush1.bf16.msra.mxu0 %v6065_v6  ;;  %v6073_v12 = vld [vmem:[#allocation2 + $0x84] ss:$16 sps:$4 sm:$0xff]   ;;  %v6077_v14 = vld [vmem:[#allocation2 + $0x80] ss:$16 sps:$4 sm:$0xff]  }
  0x3b   :  { %1745 = vmatpush1.bf16.msra.mxu1 %v6066_v7  ;;  %1703 = vmatprep.subr.bf16.mxu0 %v6067_v8  ;;  %v6075_v13 = vld [vmem:[#allocation2 + $0x284] ss:$16 sps:$4 sm:$0xff]   ;;  %v6078_v15 = vld [vmem:[#allocation2 + $0x280] ss:$16 sps:$4 sm:$0xff]  }
  0x3c   :  { %1746 = vmatprep.subr.bf16.mxu1 %v6069_v9  ;;  %v6079_v16 = vld [vmem:[#allocation2 + $0x64] ss:$16 sps:$4 sm:$0xff]   ;;  %v6083_v18 = vld [vmem:[#allocation2 + $0x60] ss:$16 sps:$4 sm:$0xff]   ;;  %v6899_v9 = vcombine.low %v94_v50, %v98_v51 }
  0x3d   :  { %v6081_v17 = vld [vmem:[#allocation2 + $0x264] ss:$16 sps:$4 sm:$0xff]   ;;  %v6084_v19 = vld [vmem:[#allocation2 + $0x260] ss:$16 sps:$4 sm:$0xff]  }
  0x3e   :  { %1704 = vmatpush1.bf16.msra.mxu0 %v6071_v10  ;;  %v6085_v20 = vld [vmem:[#allocation2 + $0x44] ss:$16 sps:$4 sm:$0xff]   ;;  %v6089_v22 = vld [vmem:[#allocation2 + $0x40] ss:$16 sps:$4 sm:$0xff]  }
  0x3f   :  { %1747 = vmatpush1.bf16.msra.mxu1 %v6072_v11  ;;  %1705 = vmatprep.subr.bf16.mxu0 %v6073_v12  ;;  %v6087_v21 = vld [vmem:[#allocation2 + $0x244] ss:$16 sps:$4 sm:$0xff]   ;;  %v6090_v23 = vld [vmem:[#allocation2 + $0x240] ss:$16 sps:$4 sm:$0xff]  }
  0x40   :  { %1748 = vmatprep.subr.bf16.mxu1 %v6075_v13  ;;  %v6091_v24 = vld [vmem:[#allocation2 + $0x24] ss:$16 sps:$4 sm:$0xff]   ;;  %v6095_v26 = vld [vmem:[#allocation2 + $0x20] ss:$16 sps:$4 sm:$0xff]  }
  0x41   :  { %v6093_v25 = vld [vmem:[#allocation2 + $0x224] ss:$16 sps:$4 sm:$0xff]   ;;  %v6096_v27 = vld [vmem:[#allocation2 + $0x220] ss:$16 sps:$4 sm:$0xff]  }
  0x42   :  { %1706 = vmatpush1.bf16.msra.mxu0 %v6077_v14  ;;  %v6097_v28 = vld [vmem:[#allocation2 + $0x4] ss:$16 sps:$4 sm:$0xff]   ;;  %v6101_v30 = vld [vmem:[#allocation2] ss:$16 sps:$4 sm:$0xff]  }
  0x43   :  { %1749 = vmatpush1.bf16.msra.mxu1 %v6078_v15  ;;  %1707 = vmatprep.subr.bf16.mxu0 %v6079_v16  ;;  %v6099_v29 = vld [vmem:[#allocation2 + $0x204] ss:$16 sps:$4 sm:$0xff]   ;;  %v6102_v31 = vld [vmem:[#allocation2 + $0x200] ss:$16 sps:$4 sm:$0xff]  }
  0x44   :  { %1750 = vmatprep.subr.bf16.mxu1 %v6081_v17  ;;  %v6103_v32 = vld [vmem:[#allocation2 + $0x1e4] ss:$16 sps:$4 sm:$0xff]   ;;  %v6107_v34 = vld [vmem:[#allocation2 + $0x1e0] ss:$16 sps:$4 sm:$0xff]  }
  0x45   :  { %v6105_v33 = vld [vmem:[#allocation2 + $0x3e4] ss:$16 sps:$4 sm:$0xff]   ;;  %v6108_v35 = vld [vmem:[#allocation2 + $0x3e0] ss:$16 sps:$4 sm:$0xff]  }
  0x46   :  { %1708 = vmatpush1.bf16.msra.mxu0 %v6083_v18  ;;  %v6109_v36 = vld [vmem:[#allocation2 + $0x1c4] ss:$16 sps:$4 sm:$0xff]   ;;  %v6113_v38 = vld [vmem:[#allocation2 + $0x1c0] ss:$16 sps:$4 sm:$0xff]  }
  0x47   :  { %1751 = vmatpush1.bf16.msra.mxu1 %v6084_v19  ;;  %1709 = vmatprep.subr.bf16.mxu0 %v6085_v20  ;;  %v6111_v37 = vld [vmem:[#allocation2 + $0x3c4] ss:$16 sps:$4 sm:$0xff]   ;;  %v6114_v39 = vld [vmem:[#allocation2 + $0x3c0] ss:$16 sps:$4 sm:$0xff]  }
  0x48   :  { %1752 = vmatprep.subr.bf16.mxu1 %v6087_v21  ;;  %v6115_v40 = vld [vmem:[#allocation2 + $0x1a4] ss:$16 sps:$4 sm:$0xff]   ;;  %v6119_v42 = vld [vmem:[#allocation2 + $0x1a0] ss:$16 sps:$4 sm:$0xff]  }
  0x49   :  { %v6117_v41 = vld [vmem:[#allocation2 + $0x3a4] ss:$16 sps:$4 sm:$0xff]   ;;  %v6120_v43 = vld [vmem:[#allocation2 + $0x3a0] ss:$16 sps:$4 sm:$0xff]  }
  0x4a   :  { %1710 = vmatpush1.bf16.msra.mxu0 %v6089_v22  ;;  %v6121_v44 = vld [vmem:[#allocation2 + $0x184] ss:$16 sps:$4 sm:$0xff]   ;;  %v6125_v46 = vld [vmem:[#allocation2 + $0x180] ss:$16 sps:$4 sm:$0xff]  }
  0x4b   :  { %1753 = vmatpush1.bf16.msra.mxu1 %v6090_v23  ;;  %1711 = vmatprep.subr.bf16.mxu0 %v6091_v24  ;;  %v6123_v45 = vld [vmem:[#allocation2 + $0x384] ss:$16 sps:$4 sm:$0xff]   ;;  %v6126_v47 = vld [vmem:[#allocation2 + $0x380] ss:$16 sps:$4 sm:$0xff]  }
  0x4c   :  { %1754 = vmatprep.subr.bf16.mxu1 %v6093_v25  ;;  %v93_v48 = vld [vmem:[%s7160_s0] sm:$0xff] }
  0x4d   :  { %v97_v49 = vld [vmem:[%s7160_s0 + $0x20] sm:$0xff] }
  0x4e   :  { %1712 = vmatpush1.bf16.msra.mxu0 %v6095_v26  ;;  %v6127_v52 = vld [vmem:[#allocation2 + $0x164] ss:$16 sps:$4 sm:$0xff]   ;;  %v6891_v53 = vcombine.high %v93_v48, %v97_v49  ;;  %v6131_v56 = vld [vmem:[#allocation2 + $0x160] ss:$16 sps:$4 sm:$0xff]   ;;  %v6897_v8 = vcombine.low %v93_v48, %v97_v49 }
  0x4f   :  { %1755 = vmatpush1.bf16.msra.mxu1 %v6096_v27  ;;  %1713 = vmatprep.subr.bf16.mxu0 %v6097_v28  ;;  %v6129_v54 = vld [vmem:[#allocation2 + $0x364] ss:$16 sps:$4 sm:$0xff]   ;;  %v6132_v57 = vld [vmem:[#allocation2 + $0x360] ss:$16 sps:$4 sm:$0xff]  }
  0x50   :  { %1756 = vmatprep.subr.bf16.mxu1 %v6099_v29  ;;  %1731 = vmatprep.mubr.bf16.mxu0 %v6891_v53  ;;  %v6133_v58 = vld [vmem:[#allocation2 + $0x144] ss:$16 sps:$4 sm:$0xff]   ;;  %v6137_v60 = vld [vmem:[#allocation2 + $0x140] ss:$16 sps:$4 sm:$0xff]  }
  0x51   :  { %v6135_v59 = vld [vmem:[#allocation2 + $0x344] ss:$16 sps:$4 sm:$0xff]   ;;  %v6138_v61 = vld [vmem:[#allocation2 + $0x340] ss:$16 sps:$4 sm:$0xff]  }
  0x52   :  { %1714 = vmatpush1.bf16.msra.mxu0 %v6101_v30  ;;  %v6139_v62 = vld [vmem:[#allocation2 + $0x124] ss:$16 sps:$4 sm:$0xff]   ;;  %v6143_v0 = vld [vmem:[#allocation2 + $0x120] ss:$16 sps:$4 sm:$0xff]  }
  0x53   :  { %1757 = vmatpush1.bf16.msra.mxu1 %v6102_v31  ;;  %1715 = vmatprep.subr.bf16.mxu0 %v6103_v32  ;;  %v6141_v63 = vld [vmem:[#allocation2 + $0x324] ss:$16 sps:$4 sm:$0xff]   ;;  %v6144_v1 = vld [vmem:[#allocation2 + $0x320] ss:$16 sps:$4 sm:$0xff]  }
  0x54   :  { %1758 = vmatprep.subr.bf16.mxu1 %v6105_v33  ;;  %v6145_v2 = vld [vmem:[#allocation2 + $0x104] ss:$16 sps:$4 sm:$0xff]   ;;  %v6149_v4 = vld [vmem:[#allocation2 + $0x100] ss:$16 sps:$4 sm:$0xff]  }
  0x55   :  { %v6147_v3 = vld [vmem:[#allocation2 + $0x304] ss:$16 sps:$4 sm:$0xff]   ;;  %v6150_v5 = vld [vmem:[#allocation2 + $0x300] ss:$16 sps:$4 sm:$0xff]  }
  0x56   :  { %1716 = vmatpush2.bf16.msra.mxu0 %v6107_v34  ;;  %v6153_v6 = vld [vmem:[#allocation2 + $0x4e4] ss:$16 sps:$4 sm:$0xff]   ;;  %v6151_v10 = vld [vmem:[#allocation2 + $0x4e0] ss:$16 sps:$4 sm:$0xff]  }
  0x57   :  { %1759 = vmatpush2.bf16.msra.mxu1 %v6108_v35  ;;  %1717 = vmatprep.subr.bf16.mxu0 %v6109_v36  ;;  %v6156_v7 = vld [vmem:[#allocation2 + $0x6e4] ss:$16 sps:$4 sm:$0xff]   ;;  %v6154_v11 = vld [vmem:[#allocation2 + $0x6e0] ss:$16 sps:$4 sm:$0xff]  }
  0x58   :  { %1760 = vmatprep.subr.bf16.mxu1 %v6111_v37  ;;  %v6159_v12 = vld [vmem:[#allocation2 + $0x4c4] ss:$16 sps:$4 sm:$0xff]   ;;  %v6157_v14 = vld [vmem:[#allocation2 + $0x4c0] ss:$16 sps:$4 sm:$0xff]  }
  0x59   :  { %v6162_v13 = vld [vmem:[#allocation2 + $0x6c4] ss:$16 sps:$4 sm:$0xff]   ;;  %v6160_v15 = vld [vmem:[#allocation2 + $0x6c0] ss:$16 sps:$4 sm:$0xff]  }
  0x5a   :  { %1718 = vmatpush2.bf16.msra.mxu0 %v6113_v38  ;;  %v6165_v16 = vld [vmem:[#allocation2 + $0x4a4] ss:$16 sps:$4 sm:$0xff]   ;;  %v6163_v18 = vld [vmem:[#allocation2 + $0x4a0] ss:$16 sps:$4 sm:$0xff]   ;;  %v6916_v38 = vld [vmem:[%s7160_s0 + $0x18] sm:$0xff] }
  0x5b   :  { %1761 = vmatpush2.bf16.msra.mxu1 %v6114_v39  ;;  %1719 = vmatprep.subr.bf16.mxu0 %v6115_v40  ;;  %v6168_v17 = vld [vmem:[#allocation2 + $0x6a4] ss:$16 sps:$4 sm:$0xff]   ;;  %v6166_v19 = vld [vmem:[#allocation2 + $0x6a0] ss:$16 sps:$4 sm:$0xff]   ;;  %v6921_v39 = vld [vmem:[%s7160_s0 + $0x38] sm:$0xff] }
  0x5c   :  { %1762 = vmatprep.subr.bf16.mxu1 %v6117_v41  ;;  %v6171_v20 = vld [vmem:[#allocation2 + $0x484] ss:$16 sps:$4 sm:$0xff]   ;;  %v6169_v22 = vld [vmem:[#allocation2 + $0x480] ss:$16 sps:$4 sm:$0xff]  }
  0x5d   :  { %v6174_v21 = vld [vmem:[#allocation2 + $0x684] ss:$16 sps:$4 sm:$0xff]   ;;  %v6172_v23 = vld [vmem:[#allocation2 + $0x680] ss:$16 sps:$4 sm:$0xff]  }
  0x5e   :  { %1720 = vmatpush2.bf16.msra.mxu0 %v6119_v42  ;;  %v6177_v24 = vld [vmem:[#allocation2 + $0x464] ss:$16 sps:$4 sm:$0xff]   ;;  %v6175_v26 = vld [vmem:[#allocation2 + $0x460] ss:$16 sps:$4 sm:$0xff]  }
  0x5f   :  { %1763 = vmatpush2.bf16.msra.mxu1 %v6120_v43  ;;  %1721 = vmatprep.subr.bf16.mxu0 %v6121_v44  ;;  %v6180_v25 = vld [vmem:[#allocation2 + $0x664] ss:$16 sps:$4 sm:$0xff]   ;;  %v6178_v27 = vld [vmem:[#allocation2 + $0x660] ss:$16 sps:$4 sm:$0xff]   ;;  %v6929_v43 = vcombine.high %v6916_v38, %v6921_v39 }
  0x60   :  { %1764 = vmatprep.subr.bf16.mxu1 %v6123_v45  ;;  %v6183_v28 = vld [vmem:[#allocation2 + $0x444] ss:$16 sps:$4 sm:$0xff]   ;;  %v6181_v30 = vld [vmem:[#allocation2 + $0x440] ss:$16 sps:$4 sm:$0xff]  }
  0x61   :  { %v6186_v29 = vld [vmem:[#allocation2 + $0x644] ss:$16 sps:$4 sm:$0xff]   ;;  %v6184_v31 = vld [vmem:[#allocation2 + $0x640] ss:$16 sps:$4 sm:$0xff]  }
  0x62   :  { %1722 = vmatpush2.bf16.msra.mxu0 %v6125_v46  ;;  %v6189_v32 = vld [vmem:[#allocation2 + $0x424] ss:$16 sps:$4 sm:$0xff]   ;;  %v6187_v34 = vld [vmem:[#allocation2 + $0x420] ss:$16 sps:$4 sm:$0xff]  }
  0x63   :  { %1765 = vmatpush2.bf16.msra.mxu1 %v6126_v47  ;;  %1723 = vmatprep.subr.bf16.mxu0 %v6127_v52  ;;  %v6192_v33 = vld [vmem:[#allocation2 + $0x624] ss:$16 sps:$4 sm:$0xff]   ;;  %v6190_v35 = vld [vmem:[#allocation2 + $0x620] ss:$16 sps:$4 sm:$0xff]  }
  0x64   :  { %1766 = vmatprep.subr.bf16.mxu1 %v6129_v54  ;;  %v6906_v36 = vld [vmem:[%s7160_s0 + $0x10] sm:$0xff] }
  0x65   :  { %v6911_v37 = vld [vmem:[%s7160_s0 + $0x30] sm:$0xff] }
  0x66   :  { %1724 = vmatpush2.bf16.msra.mxu0 %v6131_v56  ;;  %v6195_v40 = vld [vmem:[#allocation2 + $0x404] ss:$16 sps:$4 sm:$0xff]   ;;  %v6925_v41 = vcombine.high %v6906_v36, %v6911_v37  ;;  %v6193_v44 = vld [vmem:[#allocation2 + $0x400] ss:$16 sps:$4 sm:$0xff]  }
  0x67   :  { %1767 = vmatpush2.bf16.msra.mxu1 %v6132_v57  ;;  %1725 = vmatprep.subr.bf16.mxu0 %v6133_v58  ;;  %v6198_v42 = vld [vmem:[#allocation2 + $0x604] ss:$16 sps:$4 sm:$0xff]   ;;  %v6196_v45 = vld [vmem:[#allocation2 + $0x600] ss:$16 sps:$4 sm:$0xff]  }
  0x68   :  { %1768 = vmatprep.subr.bf16.mxu1 %v6135_v59  ;;  %v6201_v46 = vld [vmem:[#allocation2 + $0x5e4] ss:$16 sps:$4 sm:$0xff]   ;;  %v6199_v48 = vld [vmem:[#allocation2 + $0x5e0] ss:$16 sps:$4 sm:$0xff]  }
  0x69   :  { %v6204_v47 = vld [vmem:[#allocation2 + $0x7e4] ss:$16 sps:$4 sm:$0xff]   ;;  %v6202_v49 = vld [vmem:[#allocation2 + $0x7e0] ss:$16 sps:$4 sm:$0xff]  }
  0x6a   :  { %1726 = vmatpush2.bf16.msra.mxu0 %v6137_v60  ;;  %v6207_v50 = vld [vmem:[#allocation2 + $0x5c4] ss:$16 sps:$4 sm:$0xff]   ;;  %v6205_v52 = vld [vmem:[#allocation2 + $0x5c0] ss:$16 sps:$4 sm:$0xff]  }
  0x6b   :  { %1769 = vmatpush2.bf16.msra.mxu1 %v6138_v61  ;;  %1727 = vmatprep.subr.bf16.mxu0 %v6139_v62  ;;  %v6210_v51 = vld [vmem:[#allocation2 + $0x7c4] ss:$16 sps:$4 sm:$0xff]   ;;  %v6208_v54 = vld [vmem:[#allocation2 + $0x7c0] ss:$16 sps:$4 sm:$0xff]  }
  0x6c   :  { %1770 = vmatprep.subr.bf16.mxu1 %v6141_v63  ;;  %v6213_v56 = vld [vmem:[#allocation2 + $0x5a4] ss:$16 sps:$4 sm:$0xff]   ;;  %v6211_v58 = vld [vmem:[#allocation2 + $0x5a0] ss:$16 sps:$4 sm:$0xff]  }
  0x6d   :  { %v6216_v57 = vld [vmem:[#allocation2 + $0x7a4] ss:$16 sps:$4 sm:$0xff]   ;;  %v6214_v59 = vld [vmem:[#allocation2 + $0x7a0] ss:$16 sps:$4 sm:$0xff]  }
  0x6e   :  { %1728 = vmatpush2.bf16.msra.mxu0 %v6143_v0  ;;  %v6219_v60 = vld [vmem:[#allocation2 + $0x584] ss:$16 sps:$4 sm:$0xff]   ;;  %v6217_v62 = vld [vmem:[#allocation2 + $0x580] ss:$16 sps:$4 sm:$0xff]  }
  0x6f   :  { %1771 = vmatpush2.bf16.msra.mxu1 %v6144_v1  ;;  %1729 = vmatprep.subr.bf16.mxu0 %v6145_v2  ;;  %v6222_v61 = vld [vmem:[#allocation2 + $0x784] ss:$16 sps:$4 sm:$0xff]   ;;  %v6220_v63 = vld [vmem:[#allocation2 + $0x780] ss:$16 sps:$4 sm:$0xff]  }
  0x70   :  { %1772 = vmatprep.subr.bf16.mxu1 %v6147_v3  ;;  %v6225_v0 = vld [vmem:[#allocation2 + $0x564] ss:$16 sps:$4 sm:$0xff]   ;;  %v6223_v2 = vld [vmem:[#allocation2 + $0x560] ss:$16 sps:$4 sm:$0xff]  }
  0x71   :  { %v6228_v1 = vld [vmem:[#allocation2 + $0x764] ss:$16 sps:$4 sm:$0xff]   ;;  %v6226_v3 = vld [vmem:[#allocation2 + $0x760] ss:$16 sps:$4 sm:$0xff]  }
  0x72   :  { %1730 = vmatpush2.bf16.msra.mxu0 %v6149_v4  ;;  %v6231_v4 = vld [vmem:[#allocation2 + $0x544] ss:$16 sps:$4 sm:$0xff]  }
  0x73   :  { %1773 = vmatpush2.bf16.msra.mxu1 %v6150_v5  ;;  %1785 = vmatprep.subr.bf16.mxu0 %v6153_v6  ;;  %v6234_v5 = vld [vmem:[#allocation2 + $0x744] ss:$16 sps:$4 sm:$0xff]   ;;  %v6229_v6 = vld [vmem:[#allocation2 + $0x540] ss:$16 sps:$4 sm:$0xff]  }
  0x74   :  { %1828 = vmatprep.subr.bf16.mxu1 %v6156_v7  ;;  %v6232_v7 = vld [vmem:[#allocation2 + $0x740] ss:$16 sps:$4 sm:$0xff]  }
  0x75   :  { %1732 = vmatmul.mubr.bf16.vlgmr.msra.gmra.mxu0 %v6897_v8 }
  0x76   :  { %1775 = vmatmul.mubr.bf16.vlgmr.msra.gmra.mxu1 %v6899_v9  ;;  %1786 = vmatpush1.bf16.msra.mxu0 %v6151_v10  ;;  %v6237_v10 = vld [vmem:[#allocation2 + $0x524] ss:$16 sps:$4 sm:$0xff]  }
  0x77   :  { %1829 = vmatpush1.bf16.msra.mxu1 %v6154_v11  ;;  %1787 = vmatprep.subr.bf16.mxu0 %v6159_v12  ;;  %v6240_v11 = vld [vmem:[#allocation2 + $0x724] ss:$16 sps:$4 sm:$0xff]   ;;  %v6235_v12 = vld [vmem:[#allocation2 + $0x520] ss:$16 sps:$4 sm:$0xff]  }
  0x78   :  { %1830 = vmatprep.subr.bf16.mxu1 %v6162_v13  ;;  %1817 = vmatprep.mubr.bf16.mxu0 %v6925_v41  ;;  %v6238_v13 = vld [vmem:[#allocation2 + $0x720] ss:$16 sps:$4 sm:$0xff]  }
  0x79   :  { %1860 = vmatprep.mubr.bf16.mxu1 %v6929_v43 }
  0x7a   :  { %1788 = vmatpush1.bf16.msra.mxu0 %v6157_v14  ;;  %v6243_v14 = vld [vmem:[#allocation2 + $0x504] ss:$16 sps:$4 sm:$0xff]  }
  0x7b   :  { %1831 = vmatpush1.bf16.msra.mxu1 %v6160_v15  ;;  %1789 = vmatprep.subr.bf16.mxu0 %v6165_v16  ;;  %v6246_v15 = vld [vmem:[#allocation2 + $0x704] ss:$16 sps:$4 sm:$0xff]   ;;  %v6241_v16 = vld [vmem:[#allocation2 + $0x500] ss:$16 sps:$4 sm:$0xff]  }
  0x7c   :  { %1832 = vmatprep.subr.bf16.mxu1 %v6168_v17  ;;  %v6244_v17 = vld [vmem:[#allocation2 + $0x700] ss:$16 sps:$4 sm:$0xff]  }
  0x7e   :  { %1790 = vmatpush1.bf16.msra.mxu0 %v6163_v18  ;;  %v6249_v18 = vld [vmem:[#allocation2 + $0xec] ss:$16 sps:$4 sm:$0xff]  }
  0x7f   :  { %1833 = vmatpush1.bf16.msra.mxu1 %v6166_v19  ;;  %1791 = vmatprep.subr.bf16.mxu0 %v6171_v20  ;;  %v6252_v19 = vld [vmem:[#allocation2 + $0x2ec] ss:$16 sps:$4 sm:$0xff]   ;;  %v6935_v20 = vcombine.low %v6906_v36, %v6911_v37 }
  0x80   :  { %1834 = vmatprep.subr.bf16.mxu1 %v6174_v21  ;;  %v6939_v21 = vcombine.low %v6916_v38, %v6921_v39  ;;  %v6273_v36 = vld [vmem:[#allocation2 + $0x6c] ss:$16 sps:$4 sm:$0xff]   ;;  %v6271_v38 = vld [vmem:[#allocation2 + $0x68] ss:$16 sps:$4 sm:$0xff]  }
  0x81   :  { %v6276_v37 = vld [vmem:[#allocation2 + $0x26c] ss:$16 sps:$4 sm:$0xff]  }
  0x82   :  { %1792 = vmatpush1.bf16.msra.mxu0 %v6169_v22  ;;  %v6247_v22 = vld [vmem:[#allocation2 + $0xe8] ss:$16 sps:$4 sm:$0xff]   ;;  %v6282_v39 = vld [vmem:[#allocation2 + $0x24c] ss:$16 sps:$4 sm:$0xff]  }
  0x83   :  { %1835 = vmatpush1.bf16.msra.mxu1 %v6172_v23  ;;  %1793 = vmatprep.subr.bf16.mxu0 %v6177_v24  ;;  %v6250_v23 = vld [vmem:[#allocation2 + $0x2e8] ss:$16 sps:$4 sm:$0xff]   ;;  %v6255_v24 = vld [vmem:[#allocation2 + $0xcc] ss:$16 sps:$4 sm:$0xff]  }
  0x84   :  { %1836 = vmatprep.subr.bf16.mxu1 %v6180_v25  ;;  %v6258_v25 = vld [vmem:[#allocation2 + $0x2cc] ss:$16 sps:$4 sm:$0xff]  }
  0x86   :  { %1794 = vmatpush1.bf16.msra.mxu0 %v6175_v26  ;;  %v6253_v26 = vld [vmem:[#allocation2 + $0xc8] ss:$16 sps:$4 sm:$0xff]  }
  0x87   :  { %1837 = vmatpush1.bf16.msra.mxu1 %v6178_v27  ;;  %1795 = vmatprep.subr.bf16.mxu0 %v6183_v28  ;;  %v6256_v27 = vld [vmem:[#allocation2 + $0x2c8] ss:$16 sps:$4 sm:$0xff]   ;;  %v6261_v28 = vld [vmem:[#allocation2 + $0xac] ss:$16 sps:$4 sm:$0xff]  }
  0x88   :  { %1838 = vmatprep.subr.bf16.mxu1 %v6186_v29  ;;  %v6264_v29 = vld [vmem:[#allocation2 + $0x2ac] ss:$16 sps:$4 sm:$0xff]  }
  0x8a   :  { %1796 = vmatpush1.bf16.msra.mxu0 %v6181_v30  ;;  %v6259_v30 = vld [vmem:[#allocation2 + $0xa8] ss:$16 sps:$4 sm:$0xff]  }
  0x8b   :  { %1839 = vmatpush1.bf16.msra.mxu1 %v6184_v31  ;;  %1797 = vmatprep.subr.bf16.mxu0 %v6189_v32  ;;  %v6262_v31 = vld [vmem:[#allocation2 + $0x2a8] ss:$16 sps:$4 sm:$0xff]   ;;  %v6267_v32 = vld [vmem:[#allocation2 + $0x8c] ss:$16 sps:$4 sm:$0xff]  }
  0x8c   :  { %1840 = vmatprep.subr.bf16.mxu1 %v6192_v33  ;;  %v6270_v33 = vld [vmem:[#allocation2 + $0x28c] ss:$16 sps:$4 sm:$0xff]  }
  0x8e   :  { %1798 = vmatpush1.bf16.msra.mxu0 %v6187_v34  ;;  %v6265_v34 = vld [vmem:[#allocation2 + $0x88] ss:$16 sps:$4 sm:$0xff]  }
  0x8f   :  { %1841 = vmatpush1.bf16.msra.mxu1 %v6190_v35  ;;  %1799 = vmatprep.subr.bf16.mxu0 %v6195_v40  ;;  %v6268_v35 = vld [vmem:[#allocation2 + $0x288] ss:$16 sps:$4 sm:$0xff]  }
  0x90   :  { %1842 = vmatprep.subr.bf16.mxu1 %v6198_v42  ;;  %v6277_v40 = vld [vmem:[#allocation2 + $0x48] ss:$16 sps:$4 sm:$0xff]  }
  0x91   :  { %v6280_v42 = vld [vmem:[#allocation2 + $0x248] ss:$16 sps:$4 sm:$0xff]  }
  0x92   :  { %1800 = vmatpush1.bf16.msra.mxu0 %v6193_v44  ;;  %v6285_v44 = vld [vmem:[#allocation2 + $0x2c] ss:$16 sps:$4 sm:$0xff]  }
  0x93   :  { %1843 = vmatpush1.bf16.msra.mxu1 %v6196_v45  ;;  %1801 = vmatprep.subr.bf16.mxu0 %v6201_v46  ;;  %v6288_v45 = vld [vmem:[#allocation2 + $0x22c] ss:$16 sps:$4 sm:$0xff]   ;;  %v6283_v46 = vld [vmem:[#allocation2 + $0x28] ss:$16 sps:$4 sm:$0xff]  }
  0x94   :  { %1844 = vmatprep.subr.bf16.mxu1 %v6204_v47  ;;  %v6286_v47 = vld [vmem:[#allocation2 + $0x228] ss:$16 sps:$4 sm:$0xff]  }
  0x96   :  { %1802 = vmatpush2.bf16.msra.mxu0 %v6199_v48  ;;  %v6291_v48 = vld [vmem:[#allocation2 + $0xc] ss:$16 sps:$4 sm:$0xff]  }
  0x97   :  { %1845 = vmatpush2.bf16.msra.mxu1 %v6202_v49  ;;  %1803 = vmatprep.subr.bf16.mxu0 %v6207_v50  ;;  %v6294_v49 = vld [vmem:[#allocation2 + $0x20c] ss:$16 sps:$4 sm:$0xff]   ;;  %v6289_v50 = vld [vmem:[#allocation2 + $0x8] ss:$16 sps:$4 sm:$0xff]  }
  0x98   :  { %1846 = vmatprep.subr.bf16.mxu1 %v6210_v51  ;;  %v6292_v51 = vld [vmem:[#allocation2 + $0x208] ss:$16 sps:$4 sm:$0xff]  }
  0x9a   :  { %1804 = vmatpush2.bf16.msra.mxu0 %v6205_v52  ;;  %v6297_v52 = vld [vmem:[#allocation2 + $0x1ec] ss:$16 sps:$4 sm:$0xff]  }
  0x9b   :  { %1847 = vmatpush2.bf16.msra.mxu1 %v6208_v54  ;;  %1805 = vmatprep.subr.bf16.mxu0 %v6213_v56  ;;  %v6300_v54 = vld [vmem:[#allocation2 + $0x3ec] ss:$16 sps:$4 sm:$0xff]   ;;  %v6295_v56 = vld [vmem:[#allocation2 + $0x1e8] ss:$16 sps:$4 sm:$0xff]  }
  0x9c   :  { %1848 = vmatprep.subr.bf16.mxu1 %v6216_v57  ;;  %v6298_v57 = vld [vmem:[#allocation2 + $0x3e8] ss:$16 sps:$4 sm:$0xff]  }
  0x9e   :  { %1806 = vmatpush2.bf16.msra.mxu0 %v6211_v58  ;;  %v6303_v58 = vld [vmem:[#allocation2 + $0x1cc] ss:$16 sps:$4 sm:$0xff]  }
  0x9f   :  { %1849 = vmatpush2.bf16.msra.mxu1 %v6214_v59  ;;  %1807 = vmatprep.subr.bf16.mxu0 %v6219_v60  ;;  %v6306_v59 = vld [vmem:[#allocation2 + $0x3cc] ss:$16 sps:$4 sm:$0xff]   ;;  %v6301_v60 = vld [vmem:[#allocation2 + $0x1c8] ss:$16 sps:$4 sm:$0xff]  }
  0xa0   :  { %1850 = vmatprep.subr.bf16.mxu1 %v6222_v61  ;;  %v6304_v61 = vld [vmem:[#allocation2 + $0x3c8] ss:$16 sps:$4 sm:$0xff]  }
  0xa2   :  { %1808 = vmatpush2.bf16.msra.mxu0 %v6217_v62  ;;  %v6309_v62 = vld [vmem:[#allocation2 + $0x1ac] ss:$16 sps:$4 sm:$0xff]  }
  0xa3   :  { %1851 = vmatpush2.bf16.msra.mxu1 %v6220_v63  ;;  %1809 = vmatprep.subr.bf16.mxu0 %v6225_v0  ;;  %v6312_v63 = vld [vmem:[#allocation2 + $0x3ac] ss:$16 sps:$4 sm:$0xff]   ;;  %v6307_v0 = vld [vmem:[#allocation2 + $0x1a8] ss:$16 sps:$4 sm:$0xff]  }
  0xa4   :  { %1852 = vmatprep.subr.bf16.mxu1 %v6228_v1  ;;  %v6310_v1 = vld [vmem:[#allocation2 + $0x3a8] ss:$16 sps:$4 sm:$0xff]  }
  0xa6   :  { %1810 = vmatpush2.bf16.msra.mxu0 %v6223_v2  ;;  %v6315_v2 = vld [vmem:[#allocation2 + $0x18c] ss:$16 sps:$4 sm:$0xff]  }
  0xa7   :  { %1853 = vmatpush2.bf16.msra.mxu1 %v6226_v3  ;;  %1811 = vmatprep.subr.bf16.mxu0 %v6231_v4  ;;  %v6318_v3 = vld [vmem:[#allocation2 + $0x38c] ss:$16 sps:$4 sm:$0xff]   ;;  %v6313_v4 = vld [vmem:[#allocation2 + $0x188] ss:$16 sps:$4 sm:$0xff]  }
  0xa8   :  { %1854 = vmatprep.subr.bf16.mxu1 %v6234_v5  ;;  %v6316_v5 = vld [vmem:[#allocation2 + $0x388] ss:$16 sps:$4 sm:$0xff]  }
  0xaa   :  { %1812 = vmatpush2.bf16.msra.mxu0 %v6229_v6  ;;  %v6321_v6 = vld [vmem:[#allocation2 + $0x16c] ss:$16 sps:$4 sm:$0xff]  }
  0xab   :  { %1855 = vmatpush2.bf16.msra.mxu1 %v6232_v7  ;;  %1813 = vmatprep.subr.bf16.mxu0 %v6237_v10  ;;  %v6324_v7 = vld [vmem:[#allocation2 + $0x36c] ss:$16 sps:$4 sm:$0xff]   ;;  %v6319_v10 = vld [vmem:[#allocation2 + $0x168] ss:$16 sps:$4 sm:$0xff]  }
  0xac   :  { %1856 = vmatprep.subr.bf16.mxu1 %v6240_v11  ;;  %v6322_v11 = vld [vmem:[#allocation2 + $0x368] ss:$16 sps:$4 sm:$0xff]  }
  0xae   :  { %1814 = vmatpush2.bf16.msra.mxu0 %v6235_v12  ;;  %v6327_v12 = vld [vmem:[#allocation2 + $0x14c] ss:$16 sps:$4 sm:$0xff]  }
  0xaf   :  { %1857 = vmatpush2.bf16.msra.mxu1 %v6238_v13  ;;  %1815 = vmatprep.subr.bf16.mxu0 %v6243_v14  ;;  %v6330_v13 = vld [vmem:[#allocation2 + $0x34c] ss:$16 sps:$4 sm:$0xff]   ;;  %v6325_v14 = vld [vmem:[#allocation2 + $0x148] ss:$16 sps:$4 sm:$0xff]  }
  0xb0   :  { %1858 = vmatprep.subr.bf16.mxu1 %v6246_v15  ;;  %v6328_v15 = vld [vmem:[#allocation2 + $0x348] ss:$16 sps:$4 sm:$0xff]  }
  0xb2   :  { %1816 = vmatpush2.bf16.msra.mxu0 %v6241_v16  ;;  %v6333_v16 = vld [vmem:[#allocation2 + $0x12c] ss:$16 sps:$4 sm:$0xff]  }
  0xb3   :  { %1859 = vmatpush2.bf16.msra.mxu1 %v6244_v17  ;;  %1871 = vmatprep.subr.bf16.mxu0 %v6249_v18  ;;  %v6336_v17 = vld [vmem:[#allocation2 + $0x32c] ss:$16 sps:$4 sm:$0xff]   ;;  %v6331_v18 = vld [vmem:[#allocation2 + $0x128] ss:$16 sps:$4 sm:$0xff]  }
  0xb4   :  { %1914 = vmatprep.subr.bf16.mxu1 %v6252_v19  ;;  %v6334_v19 = vld [vmem:[#allocation2 + $0x328] ss:$16 sps:$4 sm:$0xff]  }
  0xb5   :  { %1818 = vmatmul.mubr.bf16.vlgmr.msra.gmra.mxu0 %v6935_v20 }
  0xb6   :  { %1861 = vmatmul.mubr.bf16.vlgmr.msra.gmra.mxu1 %v6939_v21  ;;  %1872 = vmatpush1.bf16.msra.mxu0 %v6247_v22  ;;  %v6339_v22 = vld [vmem:[#allocation2 + $0x10c] ss:$16 sps:$4 sm:$0xff]  }
  0xb7   :  { %1915 = vmatpush1.bf16.msra.mxu1 %v6250_v23  ;;  %1873 = vmatprep.subr.bf16.mxu0 %v6255_v24  ;;  %v6342_v23 = vld [vmem:[#allocation2 + $0x30c] ss:$16 sps:$4 sm:$0xff]   ;;  %v6337_v24 = vld [vmem:[#allocation2 + $0x108] ss:$16 sps:$4 sm:$0xff]  }
  0xb8   :  { %1916 = vmatprep.subr.bf16.mxu1 %v6258_v25  ;;  %1903 = vmatprep.mubr.bf16.mxu0 %v6891_v53  ;;  %v6274_v53 = vld [vmem:[#allocation2 + $0x268] ss:$16 sps:$4 sm:$0xff]  }
  0xb9   :  { %1946 = vmatprep.mubr.bf16.mxu1 %v6893_v55  ;;  %v6279_v55 = vld [vmem:[#allocation2 + $0x4c] ss:$16 sps:$4 sm:$0xff]   ;;  %v6340_v25 = vld [vmem:[#allocation2 + $0x308] ss:$16 sps:$4 sm:$0xff]  }
  0xba   :  { %1874 = vmatpush1.bf16.msra.mxu0 %v6253_v26  ;;  %v6345_v26 = vld [vmem:[#allocation2 + $0x4ec] ss:$16 sps:$4 sm:$0xff]  }
  0xbb   :  { %1917 = vmatpush1.bf16.msra.mxu1 %v6256_v27  ;;  %1875 = vmatprep.subr.bf16.mxu0 %v6261_v28  ;;  %v6348_v27 = vld [vmem:[#allocation2 + $0x6ec] ss:$16 sps:$4 sm:$0xff]   ;;  %v6343_v28 = vld [vmem:[#allocation2 + $0x4e8] ss:$16 sps:$4 sm:$0xff]  }
  0xbc   :  { %1918 = vmatprep.subr.bf16.mxu1 %v6264_v29  ;;  %v6346_v29 = vld [vmem:[#allocation2 + $0x6e8] ss:$16 sps:$4 sm:$0xff]  }
  0xbe   :  { %1876 = vmatpush1.bf16.msra.mxu0 %v6259_v30  ;;  %v6351_v30 = vld [vmem:[#allocation2 + $0x4cc] ss:$16 sps:$4 sm:$0xff]  }
  0xbf   :  { %1919 = vmatpush1.bf16.msra.mxu1 %v6262_v31  ;;  %1877 = vmatprep.subr.bf16.mxu0 %v6267_v32  ;;  %v6354_v31 = vld [vmem:[#allocation2 + $0x6cc] ss:$16 sps:$4 sm:$0xff]   ;;  %v6349_v32 = vld [vmem:[#allocation2 + $0x4c8] ss:$16 sps:$4 sm:$0xff]  }
  0xc0   :  { %1920 = vmatprep.subr.bf16.mxu1 %v6270_v33  ;;  %v6352_v33 = vld [vmem:[#allocation2 + $0x6c8] ss:$16 sps:$4 sm:$0xff]  }
  0xc2   :  { %1878 = vmatpush1.bf16.msra.mxu0 %v6265_v34  ;;  %v6357_v34 = vld [vmem:[#allocation2 + $0x4ac] ss:$16 sps:$4 sm:$0xff]  }
  0xc3   :  { %1921 = vmatpush1.bf16.msra.mxu1 %v6268_v35  ;;  %1879 = vmatprep.subr.bf16.mxu0 %v6273_v36  ;;  %v6360_v35 = vld [vmem:[#allocation2 + $0x6ac] ss:$16 sps:$4 sm:$0xff]   ;;  %v6355_v36 = vld [vmem:[#allocation2 + $0x4a8] ss:$16 sps:$4 sm:$0xff]  }
  0xc4   :  { %1922 = vmatprep.subr.bf16.mxu1 %v6276_v37  ;;  %v6358_v37 = vld [vmem:[#allocation2 + $0x6a8] ss:$16 sps:$4 sm:$0xff]  }
  0xc6   :  { %1880 = vmatpush1.bf16.msra.mxu0 %v6271_v38  ;;  %v6363_v38 = vld [vmem:[#allocation2 + $0x48c] ss:$16 sps:$4 sm:$0xff]  }
  0xc7   :  { %1923 = vmatpush1.bf16.msra.mxu1 %v6274_v53  ;;  %1881 = vmatprep.subr.bf16.mxu0 %v6279_v55  ;;  %v6361_v53 = vld [vmem:[#allocation2 + $0x488] ss:$16 sps:$4 sm:$0xff]   ;;  %v6369_v55 = vld [vmem:[#allocation2 + $0x46c] ss:$16 sps:$4 sm:$0xff]  }
  0xc8   :  { %1924 = vmatprep.subr.bf16.mxu1 %v6282_v39  ;;  %v6372_v39 = vld [vmem:[#allocation2 + $0x66c] ss:$16 sps:$4 sm:$0xff]  }
  0xca   :  { %1882 = vmatpush1.bf16.msra.mxu0 %v6277_v40  ;;  %v6367_v40 = vld [vmem:[#allocation2 + $0x468] ss:$16 sps:$4 sm:$0xff]  }
  0xcb   :  { %1925 = vmatpush1.bf16.msra.mxu1 %v6280_v42  ;;  %1883 = vmatprep.subr.bf16.mxu0 %v6285_v44  ;;  %v6370_v42 = vld [vmem:[#allocation2 + $0x668] ss:$16 sps:$4 sm:$0xff]   ;;  %v6375_v44 = vld [vmem:[#allocation2 + $0x44c] ss:$16 sps:$4 sm:$0xff]  }
  0xcc   :  { %1926 = vmatprep.subr.bf16.mxu1 %v6288_v45  ;;  %v6376_v45 = vld [vmem:[#allocation2 + $0x648] ss:$16 sps:$4 sm:$0xff]  }
  0xce   :  { %1884 = vmatpush1.bf16.msra.mxu0 %v6283_v46  ;;  %v6381_v46 = vld [vmem:[#allocation2 + $0x42c] ss:$16 sps:$4 sm:$0xff]  }
  0xcf   :  { %1927 = vmatpush1.bf16.msra.mxu1 %v6286_v47  ;;  %1885 = vmatprep.subr.bf16.mxu0 %v6291_v48  ;;  %v6384_v47 = vld [vmem:[#allocation2 + $0x62c] ss:$16 sps:$4 sm:$0xff]   ;;  %v6379_v48 = vld [vmem:[#allocation2 + $0x428] ss:$16 sps:$4 sm:$0xff]  }
  0xd0   :  { %1928 = vmatprep.subr.bf16.mxu1 %v6294_v49  ;;  %v6382_v49 = vld [vmem:[#allocation2 + $0x628] ss:$16 sps:$4 sm:$0xff]  }
  0xd2   :  { %1886 = vmatpush1.bf16.msra.mxu0 %v6289_v50  ;;  %v6387_v50 = vld [vmem:[#allocation2 + $0x40c] ss:$16 sps:$4 sm:$0xff]  }
  0xd3   :  { %1929 = vmatpush1.bf16.msra.mxu1 %v6292_v51  ;;  %1887 = vmatprep.subr.bf16.mxu0 %v6297_v52  ;;  %v6390_v51 = vld [vmem:[#allocation2 + $0x60c] ss:$16 sps:$4 sm:$0xff]   ;;  %v6385_v52 = vld [vmem:[#allocation2 + $0x408] ss:$16 sps:$4 sm:$0xff]  }
  0xd4   :  { %1930 = vmatprep.subr.bf16.mxu1 %v6300_v54  ;;  %v6388_v54 = vld [vmem:[#allocation2 + $0x608] ss:$16 sps:$4 sm:$0xff]  }
  0xd6   :  { %1888 = vmatpush2.bf16.msra.mxu0 %v6295_v56  ;;  %v6393_v56 = vld [vmem:[#allocation2 + $0x5ec] ss:$16 sps:$4 sm:$0xff]  }
  0xd7   :  { %1931 = vmatpush2.bf16.msra.mxu1 %v6298_v57  ;;  %1889 = vmatprep.subr.bf16.mxu0 %v6303_v58  ;;  %v6396_v57 = vld [vmem:[#allocation2 + $0x7ec] ss:$16 sps:$4 sm:$0xff]   ;;  %v6391_v58 = vld [vmem:[#allocation2 + $0x5e8] ss:$16 sps:$4 sm:$0xff]  }
  0xd8   :  { %1932 = vmatprep.subr.bf16.mxu1 %v6306_v59  ;;  %v6394_v59 = vld [vmem:[#allocation2 + $0x7e8] ss:$16 sps:$4 sm:$0xff]  }
  0xda   :  { %1890 = vmatpush2.bf16.msra.mxu0 %v6301_v60  ;;  %v6399_v60 = vld [vmem:[#allocation2 + $0x5cc] ss:$16 sps:$4 sm:$0xff]  }
  0xdb   :  { %1933 = vmatpush2.bf16.msra.mxu1 %v6304_v61  ;;  %1891 = vmatprep.subr.bf16.mxu0 %v6309_v62  ;;  %v6402_v61 = vld [vmem:[#allocation2 + $0x7cc] ss:$16 sps:$4 sm:$0xff]   ;;  %v6397_v62 = vld [vmem:[#allocation2 + $0x5c8] ss:$16 sps:$4 sm:$0xff]  }
  0xdc   :  { %1934 = vmatprep.subr.bf16.mxu1 %v6312_v63  ;;  %v6400_v63 = vld [vmem:[#allocation2 + $0x7c8] ss:$16 sps:$4 sm:$0xff]  }
  0xde   :  { %1892 = vmatpush2.bf16.msra.mxu0 %v6307_v0  ;;  %v6405_v0 = vld [vmem:[#allocation2 + $0x5ac] ss:$16 sps:$4 sm:$0xff]  }
  0xdf   :  { %1935 = vmatpush2.bf16.msra.mxu1 %v6310_v1  ;;  %1893 = vmatprep.subr.bf16.mxu0 %v6315_v2  ;;  %v6408_v1 = vld [vmem:[#allocation2 + $0x7ac] ss:$16 sps:$4 sm:$0xff]   ;;  %v6403_v2 = vld [vmem:[#allocation2 + $0x5a8] ss:$16 sps:$4 sm:$0xff]  }
  0xe0   :  { %1936 = vmatprep.subr.bf16.mxu1 %v6318_v3  ;;  %v6406_v3 = vld [vmem:[#allocation2 + $0x7a8] ss:$16 sps:$4 sm:$0xff]  }
  0xe2   :  { %1894 = vmatpush2.bf16.msra.mxu0 %v6313_v4  ;;  %v6411_v4 = vld [vmem:[#allocation2 + $0x58c] ss:$16 sps:$4 sm:$0xff]  }
  0xe3   :  { %1937 = vmatpush2.bf16.msra.mxu1 %v6316_v5  ;;  %1895 = vmatprep.subr.bf16.mxu0 %v6321_v6  ;;  %v6414_v5 = vld [vmem:[#allocation2 + $0x78c] ss:$16 sps:$4 sm:$0xff]   ;;  %v6409_v6 = vld [vmem:[#allocation2 + $0x588] ss:$16 sps:$4 sm:$0xff]  }
  0xe4   :  { %1938 = vmatprep.subr.bf16.mxu1 %v6324_v7  ;;  %v6412_v7 = vld [vmem:[#allocation2 + $0x788] ss:$16 sps:$4 sm:$0xff]  }
  0xe6   :  { %1896 = vmatpush2.bf16.msra.mxu0 %v6319_v10  ;;  %v6417_v10 = vld [vmem:[#allocation2 + $0x56c] ss:$16 sps:$4 sm:$0xff]  }
  0xe7   :  { %1939 = vmatpush2.bf16.msra.mxu1 %v6322_v11  ;;  %1897 = vmatprep.subr.bf16.mxu0 %v6327_v12  ;;  %v6420_v11 = vld [vmem:[#allocation2 + $0x76c] ss:$16 sps:$4 sm:$0xff]   ;;  %v6415_v12 = vld [vmem:[#allocation2 + $0x568] ss:$16 sps:$4 sm:$0xff]  }
  0xe8   :  { %1940 = vmatprep.subr.bf16.mxu1 %v6330_v13  ;;  %v6418_v13 = vld [vmem:[#allocation2 + $0x768] ss:$16 sps:$4 sm:$0xff]  }
  0xea   :  { %1898 = vmatpush2.bf16.msra.mxu0 %v6325_v14  ;;  %v6423_v14 = vld [vmem:[#allocation2 + $0x54c] ss:$16 sps:$4 sm:$0xff]  }
  0xeb   :  { %1941 = vmatpush2.bf16.msra.mxu1 %v6328_v15  ;;  %1899 = vmatprep.subr.bf16.mxu0 %v6333_v16  ;;  %v6426_v15 = vld [vmem:[#allocation2 + $0x74c] ss:$16 sps:$4 sm:$0xff]   ;;  %v6421_v16 = vld [vmem:[#allocation2 + $0x548] ss:$16 sps:$4 sm:$0xff]  }
  0xec   :  { %1942 = vmatprep.subr.bf16.mxu1 %v6336_v17  ;;  %v6424_v17 = vld [vmem:[#allocation2 + $0x748] ss:$16 sps:$4 sm:$0xff]  }
  0xee   :  { %1900 = vmatpush2.bf16.msra.mxu0 %v6331_v18  ;;  %v6429_v18 = vld [vmem:[#allocation2 + $0x52c] ss:$16 sps:$4 sm:$0xff]  }
  0xef   :  { %1943 = vmatpush2.bf16.msra.mxu1 %v6334_v19  ;;  %1901 = vmatprep.subr.bf16.mxu0 %v6339_v22  ;;  %v6432_v19 = vld [vmem:[#allocation2 + $0x72c] ss:$16 sps:$4 sm:$0xff]   ;;  %v6427_v22 = vld [vmem:[#allocation2 + $0x528] ss:$16 sps:$4 sm:$0xff]  }
  0xf0   :  { %1944 = vmatprep.subr.bf16.mxu1 %v6342_v23  ;;  %v6430_v23 = vld [vmem:[#allocation2 + $0x728] ss:$16 sps:$4 sm:$0xff]  }
  0xf2   :  { %1902 = vmatpush2.bf16.msra.mxu0 %v6337_v24  ;;  %v6435_v24 = vld [vmem:[#allocation2 + $0x50c] ss:$16 sps:$4 sm:$0xff]  }
  0xf3   :  { %1945 = vmatpush2.bf16.msra.mxu1 %v6340_v25  ;;  %1957 = vmatprep.subr.bf16.mxu0 %v6345_v26  ;;  %v6438_v25 = vld [vmem:[#allocation2 + $0x70c] ss:$16 sps:$4 sm:$0xff]   ;;  %v6433_v26 = vld [vmem:[#allocation2 + $0x508] ss:$16 sps:$4 sm:$0xff]  }
  0xf4   :  { %2000 = vmatprep.subr.bf16.mxu1 %v6348_v27  ;;  %v6436_v27 = vld [vmem:[#allocation2 + $0x708] ss:$16 sps:$4 sm:$0xff]  }
  0xf5   :  { %1904 = vmatmul.mubr.bf16.vlgmr.msra.gmra.mxu0 %v6897_v8  ;;  %v6366_v8 = vld [vmem:[#allocation2 + $0x68c] ss:$16 sps:$4 sm:$0xff]  }
  0xf6   :  { %1947 = vmatmul.mubr.bf16.vlgmr.msra.gmra.mxu1 %v6899_v9  ;;  %1958 = vmatpush1.bf16.msra.mxu0 %v6343_v28  ;;  %v6364_v9 = vld [vmem:[#allocation2 + $0x688] ss:$16 sps:$4 sm:$0xff]   ;;  %v6441_v28 = vld [vmem:[#allocation4 + $0x74] ss:$8 sps:$4 sm:$0xff]  }
  0xf7   :  { %2001 = vmatpush1.bf16.msra.mxu1 %v6346_v29  ;;  %1959 = vmatprep.subr.bf16.mxu0 %v6351_v30  ;;  %v6439_v29 = vld [vmem:[#allocation4 + $0x70] ss:$8 sps:$4 sm:$0xff]   ;;  %v6444_v30 = vld [vmem:[#allocation4 + $0x64] ss:$8 sps:$4 sm:$0xff]  }
  0xf8   :  { %2002 = vmatprep.subr.bf16.mxu1 %v6354_v31  ;;  %1989 = vmatprep.mubr.bf16.mxu0 %v6925_v41  ;;  %v6378_v41 = vld [vmem:[#allocation2 + $0x64c] ss:$16 sps:$4 sm:$0xff]   ;;  %v6442_v31 = vld [vmem:[#allocation4 + $0x60] ss:$8 sps:$4 sm:$0xff]  }
  0xf9   :  { %2032 = vmatprep.mubr.bf16.mxu1 %v6929_v43  ;;  %v6373_v43 = vld [vmem:[#allocation2 + $0x448] ss:$16 sps:$4 sm:$0xff]  }
  0xfa   :  { %1960 = vmatpush1.bf16.msra.mxu0 %v6349_v32  ;;  %v6447_v32 = vld [vmem:[#allocation4 + $0x54] ss:$8 sps:$4 sm:$0xff]  }
  0xfb   :  { %2003 = vmatpush1.bf16.msra.mxu1 %v6352_v33  ;;  %1961 = vmatprep.subr.bf16.mxu0 %v6357_v34  ;;  %v6445_v33 = vld [vmem:[#allocation4 + $0x50] ss:$8 sps:$4 sm:$0xff]   ;;  %v6450_v34 = vld [vmem:[#allocation4 + $0x44] ss:$8 sps:$4 sm:$0xff]  }
  0xfc   :  { %2004 = vmatprep.subr.bf16.mxu1 %v6360_v35  ;;  %v6448_v35 = vld [vmem:[#allocation4 + $0x40] ss:$8 sps:$4 sm:$0xff]  }
  0xfe   :  { %1962 = vmatpush1.bf16.msra.mxu0 %v6355_v36  ;;  %v6487_v36 = vld [vmem:[#allocation4 + $0x170] ss:$8 sps:$4 sm:$0xff]  }
  0xff   :  { %2005 = vmatpush1.bf16.msra.mxu1 %v6358_v37  ;;  %1963 = vmatprep.subr.bf16.mxu0 %v6363_v38  ;;  %v6489_v37 = vld [vmem:[#allocation4 + $0x174] ss:$8 sps:$4 sm:$0xff]  }
 0x100   :  { %2006 = vmatprep.subr.bf16.mxu1 %v6366_v8  ;;  %v6453_v38 = vld [vmem:[#allocation4 + $0x34] ss:$8 sps:$4 sm:$0xff]   ;;  %v6492_v8 = vld [vmem:[#allocation4 + $0x164] ss:$8 sps:$4 sm:$0xff]  }
 0x102   :  { %1964 = vmatpush1.bf16.msra.mxu0 %v6361_v53  ;;  %v6495_v53 = vld [vmem:[#allocation4 + $0x154] ss:$8 sps:$4 sm:$0xff]  }
 0x103   :  { %2007 = vmatpush1.bf16.msra.mxu1 %v6364_v9  ;;  %1965 = vmatprep.subr.bf16.mxu0 %v6369_v55  ;;  %v6456_v9 = vld [vmem:[#allocation4 + $0x24] ss:$8 sps:$4 sm:$0xff]   ;;  %v6493_v55 = vld [vmem:[#allocation4 + $0x150] ss:$8 sps:$4 sm:$0xff]  }
 0x104   :  { %2008 = vmatprep.subr.bf16.mxu1 %v6372_v39  ;;  %v6454_v39 = vld [vmem:[#allocation4 + $0x20] ss:$8 sps:$4 sm:$0xff]  }
 0x106   :  { %1966 = vmatpush1.bf16.msra.mxu0 %v6367_v40  ;;  %v6498_v40 = vld [vmem:[#allocation4 + $0x144] ss:$8 sps:$4 sm:$0xff]  }
 0x107   :  { %2009 = vmatpush1.bf16.msra.mxu1 %v6370_v42  ;;  %1967 = vmatprep.subr.bf16.mxu0 %v6375_v44  ;;  %v6459_v42 = vld [vmem:[#allocation4 + $0x14] ss:$8 sps:$4 sm:$0xff]   ;;  %v6496_v44 = vld [vmem:[#allocation4 + $0x140] ss:$8 sps:$4 sm:$0xff]  }
 0x108   :  { %2010 = vmatprep.subr.bf16.mxu1 %v6378_v41  ;;  %v6457_v41 = vld [vmem:[#allocation4 + $0x10] ss:$8 sps:$4 sm:$0xff]  }
 0x10a   :  { %1968 = vmatpush1.bf16.msra.mxu0 %v6373_v43  ;;  %v6501_v43 = vld [vmem:[#allocation4 + $0x134] ss:$8 sps:$4 sm:$0xff]  }
 0x10b   :  { %2011 = vmatpush1.bf16.msra.mxu1 %v6376_v45  ;;  %1969 = vmatprep.subr.bf16.mxu0 %v6381_v46  ;;  %v6462_v45 = vld [vmem:[#allocation4 + $0x4] ss:$8 sps:$4 sm:$0xff]   ;;  %v6499_v46 = vld [vmem:[#allocation4 + $0x130] ss:$8 sps:$4 sm:$0xff]  }
 0x10c   :  { %2012 = vmatprep.subr.bf16.mxu1 %v6384_v47  ;;  %v6460_v47 = vld [vmem:[#allocation4] ss:$8 sps:$4 sm:$0xff]  }
 0x10e   :  { %1970 = vmatpush1.bf16.msra.mxu0 %v6379_v48  ;;  %v6504_v48 = vld [vmem:[#allocation4 + $0x124] ss:$8 sps:$4 sm:$0xff]  }
 0x10f   :  { %2013 = vmatpush1.bf16.msra.mxu1 %v6382_v49  ;;  %1971 = vmatprep.subr.bf16.mxu0 %v6387_v50  ;;  %v6465_v49 = vld [vmem:[#allocation4 + $0xf4] ss:$8 sps:$4 sm:$0xff]   ;;  %v6502_v50 = vld [vmem:[#allocation4 + $0x120] ss:$8 sps:$4 sm:$0xff]  }
 0x110   :  { %2014 = vmatprep.subr.bf16.mxu1 %v6390_v51  ;;  %v6463_v51 = vld [vmem:[#allocation4 + $0xf0] ss:$8 sps:$4 sm:$0xff]  }
 0x112   :  { %1972 = vmatpush1.bf16.msra.mxu0 %v6385_v52  ;;  %v6507_v52 = vld [vmem:[#allocation4 + $0x114] ss:$8 sps:$4 sm:$0xff]  }
 0x113   :  { %2015 = vmatpush1.bf16.msra.mxu1 %v6388_v54  ;;  %1973 = vmatprep.subr.bf16.mxu0 %v6393_v56  ;;  %v6468_v54 = vld [vmem:[#allocation4 + $0xe4] ss:$8 sps:$4 sm:$0xff]   ;;  %v6505_v56 = vld [vmem:[#allocation4 + $0x110] ss:$8 sps:$4 sm:$0xff]  }
 0x114   :  { %2016 = vmatprep.subr.bf16.mxu1 %v6396_v57  ;;  %v6466_v57 = vld [vmem:[#allocation4 + $0xe0] ss:$8 sps:$4 sm:$0xff]  }
 0x116   :  { %1974 = vmatpush2.bf16.msra.mxu0 %v6391_v58  ;;  %v6510_v58 = vld [vmem:[#allocation4 + $0x104] ss:$8 sps:$4 sm:$0xff]  }
 0x117   :  { %2017 = vmatpush2.bf16.msra.mxu1 %v6394_v59  ;;  %1975 = vmatprep.subr.bf16.mxu0 %v6399_v60  ;;  %v6471_v59 = vld [vmem:[#allocation4 + $0xd4] ss:$8 sps:$4 sm:$0xff]   ;;  %v6508_v60 = vld [vmem:[#allocation4 + $0x100] ss:$8 sps:$4 sm:$0xff]  }
 0x118   :  { %2018 = vmatprep.subr.bf16.mxu1 %v6402_v61  ;;  %v6469_v61 = vld [vmem:[#allocation4 + $0xd0] ss:$8 sps:$4 sm:$0xff]  }
 0x11a   :  { %1976 = vmatpush2.bf16.msra.mxu0 %v6397_v62  ;;  %v6513_v62 = vld [vmem:[#allocation4 + $0x1f4] ss:$8 sps:$4 sm:$0xff]  }
 0x11b   :  { %2019 = vmatpush2.bf16.msra.mxu1 %v6400_v63  ;;  %1977 = vmatprep.subr.bf16.mxu0 %v6405_v0  ;;  %v6474_v63 = vld [vmem:[#allocation4 + $0xc4] ss:$8 sps:$4 sm:$0xff]   ;;  %v6511_v0 = vld [vmem:[#allocation4 + $0x1f0] ss:$8 sps:$4 sm:$0xff]  }
 0x11c   :  { %2020 = vmatprep.subr.bf16.mxu1 %v6408_v1  ;;  %v6472_v1 = vld [vmem:[#allocation4 + $0xc0] ss:$8 sps:$4 sm:$0xff]  }
 0x11e   :  { %1978 = vmatpush2.bf16.msra.mxu0 %v6403_v2  ;;  %v6516_v2 = vld [vmem:[#allocation4 + $0x1e4] ss:$8 sps:$4 sm:$0xff]  }
 0x11f   :  { %2021 = vmatpush2.bf16.msra.mxu1 %v6406_v3  ;;  %1979 = vmatprep.subr.bf16.mxu0 %v6411_v4  ;;  %v6477_v3 = vld [vmem:[#allocation4 + $0xb4] ss:$8 sps:$4 sm:$0xff]   ;;  %v6514_v4 = vld [vmem:[#allocation4 + $0x1e0] ss:$8 sps:$4 sm:$0xff]  }
 0x120   :  { %2022 = vmatprep.subr.bf16.mxu1 %v6414_v5  ;;  %v359_v5 = vlaneseq }
 0x122   :  { %1980 = vmatpush2.bf16.msra.mxu0 %v6409_v6  ;;  %v6475_v6 = vld [vmem:[#allocation4 + $0xb0] ss:$8 sps:$4 sm:$0xff]  }
 0x123   :  { %2023 = vmatpush2.bf16.msra.mxu1 %v6412_v7  ;;  %1981 = vmatprep.subr.bf16.mxu0 %v6417_v10  ;;  %v6519_v7 = vld [vmem:[#allocation4 + $0x1d4] ss:$8 sps:$4 sm:$0xff]   ;;  %v6480_v10 = vld [vmem:[#allocation4 + $0xa4] ss:$8 sps:$4 sm:$0xff]  }
 0x124   :  { %2024 = vmatprep.subr.bf16.mxu1 %v6420_v11  ;;  %v6517_v11 = vld [vmem:[#allocation4 + $0x1d0] ss:$8 sps:$4 sm:$0xff]  }
 0x126   :  { %1982 = vmatpush2.bf16.msra.mxu0 %v6415_v12  ;;  %v6951_v12 = vshrl.u32 %v359_v5, 7  ;;  %v6535_v5 = vld [vmem:[%s7165_s5 + $0x70] ss:$8 sps:$4 sm:$0xff]  }
 0x127   :  { %2025 = vmatpush2.bf16.msra.mxu1 %v6418_v13  ;;  %1983 = vmatprep.subr.bf16.mxu0 %v6423_v14  ;;  %v6478_v13 = vld [vmem:[#allocation4 + $0xa0] ss:$8 sps:$4 sm:$0xff]   ;;  %v6522_v14 = vld [vmem:[#allocation4 + $0x1c4] ss:$8 sps:$4 sm:$0xff]  }
 0x128   :  { %2026 = vmatprep.subr.bf16.mxu1 %v6426_v15 }
 0x12a   :  { %1984 = vmatpush2.bf16.msra.mxu0 %v6421_v16 }
 0x12b   :  { %2027 = vmatpush2.bf16.msra.mxu1 %v6424_v17  ;;  %1985 = vmatprep.subr.bf16.mxu0 %v6429_v18  ;;  %v6483_v17 = vld [vmem:[#allocation4 + $0x94] ss:$8 sps:$4 sm:$0xff]   ;;  %v6520_v18 = vld [vmem:[#allocation4 + $0x1c0] ss:$8 sps:$4 sm:$0xff]  }
 0x12c   :  { %2028 = vmatprep.subr.bf16.mxu1 %v6432_v19  ;;  %v6954_v19 = vsub.s32 1, %v6951_v12 }
 0x12e   :  { %1986 = vmatpush2.bf16.msra.mxu0 %v6427_v22  ;;  %v6481_v22 = vld [vmem:[#allocation4 + $0x90] ss:$8 sps:$4 sm:$0xff]  }
 0x12f   :  { %2029 = vmatpush2.bf16.msra.mxu1 %v6430_v23  ;;  %1987 = vmatprep.subr.bf16.mxu0 %v6435_v24  ;;  %v6959_v23 = vld [vmem:[%s7162_s2] sm:$0xf]  ;;  %v6962_v24 = vsub.s32 0, %v6951_v12 }
 0x130   :  { %2030 = vmatprep.subr.bf16.mxu1 %v6438_v25 }
 0x132   :  { %1988 = vmatpush2.bf16.msra.mxu0 %v6433_v26 }
 0x133   :  { %2031 = vmatpush2.bf16.msra.mxu1 %v6436_v27  ;;  %2451 = vmatprep.subr.bf16.mxu0 %v6441_v28  ;;  %v6486_v27 = vld [vmem:[#allocation4 + $0x84] ss:$8 sps:$4 sm:$0xff]   ;;  %v366_v28 = vrot.slane %v6959_v23, %v6954_v19 }
 0x134   :  { %2494 = vmatprep.subr.bf16.mxu1 %v6489_v37  ;;  %v6525_v37 = vld [vmem:[#allocation4 + $0x1b4] ss:$8 sps:$4 sm:$0xff]  }
 0x135   :  { %1990 = vmatmul.mubr.bf16.vlgmr.msra.gmra.mxu0 %v6935_v20  ;;  %v6490_v20 = vld [vmem:[#allocation4 + $0x160] ss:$8 sps:$4 sm:$0xff]   ;;  %v1733_v15 = vpop.f32.mrf.mxu0 }
 0x136   :  { %2033 = vmatmul.mubr.bf16.vlgmr.msra.gmra.mxu1 %v6939_v21  ;;  %2452 = vmatpush1.bf16.msra.mxu0 %v6439_v29  ;;  %v6451_v21 = vld [vmem:[#allocation4 + $0x30] ss:$8 sps:$4 sm:$0xff]   ;;  %v1776_v16 = vpop.f32.mrf.mxu1  ;;  %v6484_v29 = vld [vmem:[#allocation4 + $0x80] ss:$8 sps:$4 sm:$0xff]  }
 0x137   :  { %2453 = vmatprep.subr.bf16.mxu0 %v6444_v30  ;;  %2495 = vmatpush1.bf16.msra.mxu1 %v6487_v36  ;;  %v1735_v25 = vpop.f32.mrf.mxu0  ;;  %v362_v30 = vrot.slane %v6959_v23, %v6962_v24 }
 0x138   :  { %2496 = vmatprep.subr.bf16.mxu1 %v6492_v8  ;;  %v1778_v26 = vpop.f32.mrf.mxu1  ;;  %v6523_v8 = vld [vmem:[#allocation4 + $0x1b0] ss:$8 sps:$4 sm:$0xff]  }
 0x13a   :  { %2454 = vmatpush1.bf16.msra.mxu0 %v6442_v31  ;;  %v1737_v31 = vpop.f32.mrf.mxu0 }
 0x13b   :  { %2455 = vmatprep.subr.bf16.mxu0 %v6447_v32  ;;  %2497 = vmatpush1.bf16.msra.mxu1 %v6490_v20  ;;  %v1780_v32 = vpop.f32.mrf.mxu1 }
 0x13c   :  { %2498 = vmatprep.subr.bf16.mxu1 %v6495_v53 }
 0x13d   :  { %v1782_v36 = vpop.f32.mrf.mxu1 }
 0x13e   :  { %2456 = vmatpush1.bf16.msra.mxu0 %v6445_v33  ;;  %v1736_v33 = vadd.f32 %v1735_v25, %v366_v28  ;;  %v6555_v25 = vld [vmem:[%s7165_s5 + $0x14] ss:$8 sps:$4 sm:$0xff]  }
 0x13f   :  { %2457 = vmatprep.subr.bf16.mxu0 %v6450_v34  ;;  %2499 = vmatpush1.bf16.msra.mxu1 %v6493_v55  ;;  %v1734_v34 = vadd.f32 %v1733_v15, %v362_v30  ;;  %v6544_v15 = vld [vmem:[%s7165_s5 + $0x40] ss:$8 sps:$4 sm:$0xff]  }
 0x140   :  { %2500 = vmatprep.subr.bf16.mxu1 %v6498_v40  ;;  %v1779_v53 = vadd.f32 %v1778_v26, %v1736_v33  ;;  %v6553_v26 = vld [vmem:[%s7165_s5 + $0x10] ss:$8 sps:$4 sm:$0xff]   ;;  %v7023_v33 = vsub.s32 2, %v6951_v12 }
 0x141   :  { %v1777_v55 = vadd.f32 %v1776_v16, %v1734_v34  ;;  %v6549_v16 = vld [vmem:[%s7165_s5 + $0x34] ss:$8 sps:$4 sm:$0xff]  }
 0x142   :  { %2458 = vmatpush1.bf16.msra.mxu0 %v6448_v35  ;;  %v1739_v35 = vpop.f32.mrf.mxu0 }
 0x143   :  { %2459 = vmatprep.subr.bf16.mxu0 %v6453_v38  ;;  %2501 = vmatpush1.bf16.msra.mxu1 %v6496_v44  ;;  %v1738_v38 = vadd.f32 %v1737_v31, %v362_v30  ;;  %v6556_v30 = vld [vmem:[%s7165_s5] ss:$8 sps:$4 sm:$0xff]   ;;  %v6561_v31 = vld [vmem:[%s7165_s5 + $0xf4] ss:$8 sps:$4 sm:$0xff]  }
 0x144   :  { %2502 = vmatprep.subr.bf16.mxu1 %v6501_v43  ;;  %v6526_v43 = vld [vmem:[#allocation4 + $0x1a0] ss:$8 sps:$4 sm:$0xff]  }
 0x145   :  { %v1781_v44 = vadd.f32 %v1780_v32, %v1738_v38  ;;  %v7020_v32 = vsub.s32 3, %v6951_v12 }
 0x146   :  { %2460 = vmatpush1.bf16.msra.mxu0 %v6451_v21 }
 0x147   :  { %2461 = vmatprep.subr.bf16.mxu0 %v6456_v9  ;;  %2503 = vmatpush1.bf16.msra.mxu1 %v6499_v46  ;;  %v1740_v9 = vadd.f32 %v1739_v35, %v366_v28  ;;  %v374_v38 = vrot.slane %v6959_v23, %v7020_v32 }
 0x148   :  { %2504 = vmatprep.subr.bf16.mxu1 %v6504_v48 }
 0x149   :  { %v1783_v48 = vadd.f32 %v1782_v36, %v1740_v9  ;;  %v6559_v36 = vld [vmem:[%s7165_s5 + $0xf0] ss:$8 sps:$4 sm:$0xff]   ;;  %v6567_v9 = vld [vmem:[%s7165_s5 + $0xd4] ss:$8 sps:$4 sm:$0xff]  }
 0x14a   :  { %2462 = vmatpush1.bf16.msra.mxu0 %v6454_v39 }
 0x14b   :  { %2463 = vmatprep.subr.bf16.mxu0 %v6459_v42  ;;  %2505 = vmatpush1.bf16.msra.mxu1 %v6502_v50  ;;  %v6528_v42 = vld [vmem:[#allocation4 + $0x1a4] ss:$8 sps:$4 sm:$0xff]  }
 0x14c   :  { %2506 = vmatprep.subr.bf16.mxu1 %v6507_v52 }
 0x14e   :  { %2464 = vmatpush1.bf16.msra.mxu0 %v6457_v41 }
 0x14f   :  { %2465 = vmatprep.subr.bf16.mxu0 %v6462_v45  ;;  %2507 = vmatpush1.bf16.msra.mxu1 %v6505_v56 }
 0x150   :  { %2508 = vmatprep.subr.bf16.mxu1 %v6510_v58 }
 0x152   :  { %2466 = vmatpush1.bf16.msra.mxu0 %v6460_v47 }
 0x153   :  { %2467 = vmatprep.subr.bf16.mxu0 %v6465_v49  ;;  %2509 = vmatpush1.bf16.msra.mxu1 %v6508_v60 }
 0x154   :  { %2510 = vmatprep.subr.bf16.mxu1 %v6513_v62  ;;  %v6534_v62 = vld [vmem:[#allocation4 + $0x184] ss:$8 sps:$4 sm:$0xff]  }
 0x156   :  { %2468 = vmatpush2.bf16.msra.mxu0 %v6463_v51  ;;  %v6531_v51 = vld [vmem:[#allocation4 + $0x194] ss:$8 sps:$4 sm:$0xff]  }
 0x157   :  { %2469 = vmatprep.subr.bf16.mxu0 %v6468_v54  ;;  %2511 = vmatpush2.bf16.msra.mxu1 %v6511_v0 }
 0x158   :  { %2512 = vmatprep.subr.bf16.mxu1 %v6516_v2 }
 0x15a   :  { %2470 = vmatpush2.bf16.msra.mxu0 %v6466_v57  ;;  %v6529_v57 = vld [vmem:[#allocation4 + $0x190] ss:$8 sps:$4 sm:$0xff]  }
 0x15b   :  { %2471 = vmatprep.subr.bf16.mxu0 %v6471_v59  ;;  %2513 = vmatpush2.bf16.msra.mxu1 %v6514_v4 }
 0x15c   :  { %2514 = vmatprep.subr.bf16.mxu1 %v6519_v7  ;;  %v6540_v7 = vld [vmem:[%s7165_s5 + $0x64] ss:$8 sps:$4 sm:$0xff]  }
 0x15e   :  { %2472 = vmatpush2.bf16.msra.mxu0 %v6469_v61 }
 0x15f   :  { %2473 = vmatprep.subr.bf16.mxu0 %v6474_v63  ;;  %2515 = vmatpush2.bf16.msra.mxu1 %v6517_v11  ;;  %v6543_v11 = vld [vmem:[%s7165_s5 + $0x54] ss:$8 sps:$4 sm:$0xff]  }
 0x160   :  { %2516 = vmatprep.subr.bf16.mxu1 %v6522_v14  ;;  %v6546_v14 = vld [vmem:[%s7165_s5 + $0x44] ss:$8 sps:$4 sm:$0xff]  }
 0x162   :  { %2474 = vmatpush2.bf16.msra.mxu0 %v6472_v1  ;;  %v6532_v1 = vld [vmem:[#allocation4 + $0x180] ss:$8 sps:$4 sm:$0xff]  }
 0x163   :  { %2475 = vmatprep.subr.bf16.mxu0 %v6477_v3  ;;  %2517 = vmatpush2.bf16.msra.mxu1 %v6520_v18  ;;  %v6552_v18 = vld [vmem:[%s7165_s5 + $0x24] ss:$8 sps:$4 sm:$0xff]  }
 0x164   :  { %2518 = vmatprep.subr.bf16.mxu1 %v6525_v37  ;;  %v6564_v37 = vld [vmem:[%s7165_s5 + $0xe4] ss:$8 sps:$4 sm:$0xff]  }
 0x166   :  { %2476 = vmatpush2.bf16.msra.mxu0 %v6475_v6  ;;  %v6537_v6 = vld [vmem:[%s7165_s5 + $0x74] ss:$8 sps:$4 sm:$0xff]  }
 0x167   :  { %2477 = vmatprep.subr.bf16.mxu0 %v6480_v10  ;;  %2519 = vmatpush2.bf16.msra.mxu1 %v6523_v8  ;;  %v6538_v10 = vld [vmem:[%s7165_s5 + $0x60] ss:$8 sps:$4 sm:$0xff]   ;;  %v370_v8 = vrot.slane %v6959_v23, %v7023_v33  ;;  %v6565_v23 = vld [vmem:[%s7165_s5 + $0xd0] ss:$8 sps:$4 sm:$0xff]  }
 0x168   :  { %2520 = vmatprep.subr.bf16.mxu1 %v6528_v42 }
 0x16a   :  { %2478 = vmatpush2.bf16.msra.mxu0 %v6478_v13  ;;  %v6541_v13 = vld [vmem:[%s7165_s5 + $0x50] ss:$8 sps:$4 sm:$0xff]  }
 0x16b   :  { %2479 = vmatprep.subr.bf16.mxu0 %v6483_v17  ;;  %2521 = vmatpush2.bf16.msra.mxu1 %v6526_v43  ;;  %v6547_v17 = vld [vmem:[%s7165_s5 + $0x30] ss:$8 sps:$4 sm:$0xff]  }
 0x16c   :  { %2522 = vmatprep.subr.bf16.mxu1 %v6531_v51  ;;  %v6568_v51 = vld [vmem:[%s7165_s5 + $0xc0] ss:$8 sps:$4 sm:$0xff]  }
 0x16e   :  { %2480 = vmatpush2.bf16.msra.mxu0 %v6481_v22  ;;  %v6550_v22 = vld [vmem:[%s7165_s5 + $0x20] ss:$8 sps:$4 sm:$0xff]  }
 0x16f   :  { %2481 = vmatprep.subr.bf16.mxu0 %v6486_v27  ;;  %2523 = vmatpush2.bf16.msra.mxu1 %v6529_v57  ;;  %v6558_v27 = vld [vmem:[%s7165_s5 + $0x4] ss:$8 sps:$4 sm:$0xff]  }
 0x170   :  { %2524 = vmatprep.subr.bf16.mxu1 %v6534_v62 }
 0x172   :  { %2482 = vmatpush2.bf16.msra.mxu0 %v6484_v29 }
 0x173   :  { %2525 = vmatpush2.bf16.msra.mxu1 %v6532_v1  ;;  %2747 = vmatprep.subr.bf16.mxu0 %v6537_v6 }
 0x175   :  { %v1819_v20 = vpop.f32.mrf.mxu0 }
 0x176   :  { %v1862_v21 = vpop.f32.mrf.mxu1  ;;  %v1820_v45 = vadd.f32 %v1819_v20, %v1777_v55 }
 0x177   :  { %v1821_v39 = vpop.f32.mrf.mxu0 }
 0x178   :  { %v1864_v40 = vpop.f32.mrf.mxu1  ;;  %v1822_v41 = vadd.f32 %v1821_v39, %v1779_v53  ;;  %v1863_v58 = vadd.f32 %v1862_v21, %v1820_v45  ;;  %v6562_v53 = vld [vmem:[%s7165_s5 + $0xe0] ss:$8 sps:$4 sm:$0xff]  }
 0x179   :  { %v1823_v46 = vpop.f32.mrf.mxu0 }
 0x17a   :  { %v1866_v47 = vpop.f32.mrf.mxu1  ;;  %v1824_v49 = vadd.f32 %v1823_v46, %v1781_v44  ;;  %v1865_v52 = vadd.f32 %v1864_v40, %v1822_v41  ;;  %v2043_v2 = vmax.f32 %v1863_v58, 0.0  ;;  %v6570_v41 = vld [vmem:[%s7165_s5 + $0xc4] ss:$8 sps:$4 sm:$0xff]  }
 0x17b   :  { %v1825_v50 = vpop.f32.mrf.mxu0 }
 0x17c   :  { %v1867_v54 = vadd.f32 %v1866_v47, %v1824_v49  ;;  %v1826_v56 = vadd.f32 %v1825_v50, %v1783_v48  ;;  %v1868_v59 = vpop.f32.mrf.mxu1  ;;  %v2044_v63 = vmax.f32 %v1865_v52, 0.0 }
 0x17e   :  { %v1869_v60 = vadd.f32 %v1868_v59, %v1826_v56  ;;  %v2047_v61 = vmax.f32 %v1867_v54, 0.0  ;;  %v6573_v56 = vld [vmem:[%s7165_s5 + $0xb4] ss:$8 sps:$4 sm:$0xff]  }
 0x180   :  { %v2048_v0 = vmax.f32 %v1869_v60, 0.0  ;;  %v2051_v4 = vpack.c.bf16 %v2047_v61, %v2043_v2 }
 0x182   :  { %v2052_v3 = vpack.c.bf16 %v2048_v0, %v2044_v63  ;;  %v6571_v63 = vld [vmem:[%s7165_s5 + $0xb0] ss:$8 sps:$4 sm:$0xff]  }
 0x184   :  { %2483 = vmatprep.mubr.bf16.mxu0 %v2052_v3 }
 0x185   :  { %2484 = vmatmul.mubr.bf16.vlgmr.msra.gmra.mxu0 %v2051_v4 }
 0x186   :  { %2748 = vmatpush1.bf16.msra.mxu0 %v6535_v5 }
 0x187   :  { %2749 = vmatprep.subr.bf16.mxu0 %v6540_v7 }
 0x18a   :  { %2750 = vmatpush1.bf16.msra.mxu0 %v6538_v10 }
 0x18b   :  { %2751 = vmatprep.subr.bf16.mxu0 %v6543_v11 }
 0x18e   :  { %2752 = vmatpush1.bf16.msra.mxu0 %v6541_v13 }
 0x18f   :  { %2753 = vmatprep.subr.bf16.mxu0 %v6546_v14 }
 0x192   :  { %2754 = vmatpush1.bf16.msra.mxu0 %v6544_v15  ;;  %v6576_v15 = vld [vmem:[%s7165_s5 + $0xa4] ss:$8 sps:$4 sm:$0xff]  }
 0x193   :  { %2755 = vmatprep.subr.bf16.mxu0 %v6549_v16  ;;  %v6574_v16 = vld [vmem:[%s7165_s5 + $0xa0] ss:$8 sps:$4 sm:$0xff]  }
 0x196   :  { %2756 = vmatpush1.bf16.msra.mxu0 %v6547_v17  ;;  %v6579_v17 = vld [vmem:[%s7165_s5 + $0x94] ss:$8 sps:$4 sm:$0xff]  }
 0x197   :  { %2757 = vmatprep.subr.bf16.mxu0 %v6552_v18  ;;  %v6577_v18 = vld [vmem:[%s7165_s5 + $0x90] ss:$8 sps:$4 sm:$0xff]  }
 0x19a   :  { %2758 = vmatpush1.bf16.msra.mxu0 %v6550_v22  ;;  %v6582_v22 = vld [vmem:[%s7165_s5 + $0x84] ss:$8 sps:$4 sm:$0xff]  }
 0x19b   :  { %2759 = vmatprep.subr.bf16.mxu0 %v6555_v25  ;;  %v6580_v25 = vld [vmem:[%s7165_s5 + $0x80] ss:$8 sps:$4 sm:$0xff]  }
 0x19e   :  { %2760 = vmatpush1.bf16.msra.mxu0 %v6553_v26  ;;  %v6583_v26 = vld [vmem:[#allocation6 + $0xe0] ss:$16 sps:$4 sm:$0xff]  }
 0x19f   :  { %2761 = vmatprep.subr.bf16.mxu0 %v6558_v27  ;;  %v6585_v27 = vld [vmem:[#allocation6 + $0xe4] ss:$16 sps:$4 sm:$0xff]  }
 0x1a0   :  { %3202 = vmatprep.subr.bf16.mxu1 %v6585_v27  ;;  %v6610_v27 = vld [vmem:[#allocation6 + $0x68] ss:$16 sps:$4 sm:$0xff]  }
 0x1a2   :  { %2762 = vmatpush1.bf16.msra.mxu0 %v6556_v30  ;;  %v6589_v30 = vld [vmem:[#allocation6 + $0xc0] ss:$16 sps:$4 sm:$0xff]  }
 0x1a3   :  { %2763 = vmatprep.subr.bf16.mxu0 %v6561_v31  ;;  %v6597_v31 = vld [vmem:[#allocation6 + $0xa4] ss:$16 sps:$4 sm:$0xff]  }
 0x1a6   :  { %2764 = vmatpush2.bf16.msra.mxu0 %v6559_v36  ;;  %v6601_v36 = vld [vmem:[#allocation6 + $0x80] ss:$16 sps:$4 sm:$0xff]  }
 0x1a7   :  { %2765 = vmatprep.subr.bf16.mxu0 %v6564_v37  ;;  %v6609_v37 = vld [vmem:[#allocation6 + $0x64] ss:$16 sps:$4 sm:$0xff]  }
 0x1aa   :  { %2766 = vmatpush2.bf16.msra.mxu0 %v6562_v53  ;;  %v6619_v53 = vld [vmem:[#allocation6 + $0x20] ss:$16 sps:$4 sm:$0xff]  }
 0x1ab   :  { %2767 = vmatprep.subr.bf16.mxu0 %v6567_v9  ;;  %v6627_v9 = vld [vmem:[#allocation6 + $0x4] ss:$16 sps:$4 sm:$0xff]  }
 0x1ae   :  { %2768 = vmatpush2.bf16.msra.mxu0 %v6565_v23  ;;  %v6637_v23 = vld [vmem:[#allocation6 + $0x1c0] ss:$16 sps:$4 sm:$0xff]  }
 0x1af   :  { %2769 = vmatprep.subr.bf16.mxu0 %v6570_v41  ;;  %v6643_v41 = vld [vmem:[#allocation6 + $0x1a0] ss:$16 sps:$4 sm:$0xff]  }
 0x1b2   :  { %2770 = vmatpush2.bf16.msra.mxu0 %v6568_v51 }
 0x1b3   :  { %2771 = vmatprep.subr.bf16.mxu0 %v6573_v56 }
 0x1b5   :  { %v1905_v28 = vpop.f32.mrf.mxu0 }
 0x1b6   :  { %v1948_v29 = vpop.f32.mrf.mxu1  ;;  %v1906_v39 = vadd.f32 %v1905_v28, %v370_v8  ;;  %2772 = vmatpush2.bf16.msra.mxu0 %v6571_v63  ;;  %v6588_v28 = vld [vmem:[#allocation6 + $0xec] ss:$16 sps:$4 sm:$0xff]  }
 0x1b7   :  { %v1907_v34 = vpop.f32.mrf.mxu0  ;;  %2773 = vmatprep.subr.bf16.mxu0 %v6576_v15  ;;  %v6594_v15 = vld [vmem:[#allocation6 + $0xcc] ss:$16 sps:$4 sm:$0xff]  }
 0x1b8   :  { %v1950_v35 = vpop.f32.mrf.mxu1  ;;  %v1908_v55 = vadd.f32 %v1907_v34, %v374_v38  ;;  %v1949_v48 = vadd.f32 %v1948_v29, %v1906_v39  ;;  %v6591_v29 = vld [vmem:[#allocation6 + $0xc4] ss:$16 sps:$4 sm:$0xff]   ;;  %v6595_v34 = vld [vmem:[#allocation6 + $0xa0] ss:$16 sps:$4 sm:$0xff]  }
 0x1b9   :  { %v1909_v20 = vpop.f32.mrf.mxu0  ;;  %v6633_v39 = vld [vmem:[#allocation6 + $0x1e4] ss:$16 sps:$4 sm:$0xff]  }
 0x1ba   :  { %v1952_v21 = vpop.f32.mrf.mxu1  ;;  %v1910_v44 = vadd.f32 %v1909_v20, %v370_v8  ;;  %v1951_v46 = vadd.f32 %v1950_v35, %v1908_v55  ;;  %2774 = vmatpush2.bf16.msra.mxu0 %v6574_v16  ;;  %v6603_v35 = vld [vmem:[#allocation6 + $0x84] ss:$16 sps:$4 sm:$0xff]   ;;  %v6613_v20 = vld [vmem:[#allocation6 + $0x40] ss:$16 sps:$4 sm:$0xff]   ;;  %v6592_v16 = vld [vmem:[#allocation6 + $0xc8] ss:$16 sps:$4 sm:$0xff]  }
 0x1bb   :  { %v1911_v40 = vpop.f32.mrf.mxu0  ;;  %2775 = vmatprep.subr.bf16.mxu0 %v6579_v17  ;;  %v6615_v8 = vld [vmem:[#allocation6 + $0x44] ss:$16 sps:$4 sm:$0xff]   ;;  %v6625_v55 = vld [vmem:[#allocation6] ss:$16 sps:$4 sm:$0xff]   ;;  %v6600_v17 = vld [vmem:[#allocation6 + $0xac] ss:$16 sps:$4 sm:$0xff]  }
 0x1bc   :  { %v1954_v42 = vpop.f32.mrf.mxu1  ;;  %v1912_v47 = vadd.f32 %v1911_v40, %v374_v38  ;;  %v1953_v52 = vadd.f32 %v1952_v21, %v1910_v44  ;;  %v6607_v38 = vld [vmem:[#allocation6 + $0x60] ss:$16 sps:$4 sm:$0xff]   ;;  %v6621_v21 = vld [vmem:[#allocation6 + $0x24] ss:$16 sps:$4 sm:$0xff]  }
 0x1bd   :  { %v6631_v40 = vld [vmem:[#allocation6 + $0x1e0] ss:$16 sps:$4 sm:$0xff]   ;;  %v6645_v44 = vld [vmem:[#allocation6 + $0x1a4] ss:$16 sps:$4 sm:$0xff]  }
 0x1be   :  { %v1955_v60 = vadd.f32 %v1954_v42, %v1912_v47  ;;  %2776 = vmatpush2.bf16.msra.mxu0 %v6577_v18  ;;  %v6639_v42 = vld [vmem:[#allocation6 + $0x1c4] ss:$16 sps:$4 sm:$0xff]   ;;  %v6655_v47 = vld [vmem:[#allocation6 + $0x160] ss:$16 sps:$4 sm:$0xff]   ;;  %v6598_v18 = vld [vmem:[#allocation6 + $0xa8] ss:$16 sps:$4 sm:$0xff]  }
 0x1bf   :  { %2777 = vmatprep.subr.bf16.mxu0 %v6582_v22  ;;  %v6606_v22 = vld [vmem:[#allocation6 + $0x8c] ss:$16 sps:$4 sm:$0xff]  }
 0x1c2   :  { %2778 = vmatpush2.bf16.msra.mxu0 %v6580_v25  ;;  %v6604_v25 = vld [vmem:[#allocation6 + $0x88] ss:$16 sps:$4 sm:$0xff]  }
 0x1c3   :  { %3245 = vmatprep.subr.bf16.mxu0 %v6588_v28  ;;  %v6618_v28 = vld [vmem:[#allocation6 + $0x4c] ss:$16 sps:$4 sm:$0xff]  }
 0x1f5   :  { %v1991_v43 = vpop.f32.mrf.mxu0 }
 0x1f6   :  { %v2034_v45 = vpop.f32.mrf.mxu1  ;;  %v1992_v57 = vadd.f32 %v1991_v43, %v1949_v48  ;;  %v6651_v43 = vld [vmem:[#allocation6 + $0x184] ss:$16 sps:$4 sm:$0xff]  }
 0x1f7   :  { %v1993_v49 = vpop.f32.mrf.mxu0 }
 0x1f8   :  { %v2036_v50 = vpop.f32.mrf.mxu1  ;;  %v1994_v54 = vadd.f32 %v1993_v49, %v1951_v46  ;;  %v2035_v3 = vadd.f32 %v2034_v45, %v1992_v57  ;;  %v6649_v45 = vld [vmem:[#allocation6 + $0x180] ss:$16 sps:$4 sm:$0xff]   ;;  %v6657_v46 = vld [vmem:[#allocation6 + $0x164] ss:$16 sps:$4 sm:$0xff]  }
 0x1f9   :  { %v1995_v58 = vpop.f32.mrf.mxu0 }
 0x1fa   :  { %v2038_v59 = vpop.f32.mrf.mxu1  ;;  %v1996_v61 = vadd.f32 %v1995_v58, %v1953_v52  ;;  %v2037_v0 = vadd.f32 %v2036_v50, %v1994_v54  ;;  %v2045_v11 = vmax.f32 %v2035_v3, 0.0  ;;  %v2119_v50 = vld [vmem:[%s7164_s4] sm:$0x3] }
 0x1fb   :  { %v1997_v62 = vpop.f32.mrf.mxu0  ;;  %v2128_v52 = vrot.slane %v2119_v50, %v6954_v19  ;;  %v2124_v54 = vrot.slane %v2119_v50, %v6962_v24  ;;  %v6676_v50 = vld [vmem:[#allocation6 + $0x108] ss:$16 sps:$4 sm:$0xff]  }
 0x1fc   :  { %v2039_v1 = vadd.f32 %v2038_v59, %v1996_v61  ;;  %v1998_v2 = vadd.f32 %v1997_v62, %v1955_v60  ;;  %v2040_v4 = vpop.f32.mrf.mxu1  ;;  %v2046_v7 = vmax.f32 %v2037_v0, 0.0 }
 0x1fe   :  { %v2041_v5 = vadd.f32 %v2040_v4, %v1998_v2  ;;  %v2049_v6 = vmax.f32 %v2039_v1, 0.0 }
 0x200   :  { %v2050_v10 = vmax.f32 %v2041_v5, 0.0  ;;  %v2053_v14 = vpack.c.bf16 %v2049_v6, %v2045_v11 }
 0x202   :  { %v2054_v13 = vpack.c.bf16 %v2050_v10, %v2046_v7 }
 0x204   :  { %2526 = vmatprep.mubr.bf16.mxu1 %v2054_v13  ;;  %v6586_v13 = vld [vmem:[#allocation6 + $0xe8] ss:$16 sps:$4 sm:$0xff]  }
 0x205   :  { %2527 = vmatmul.mubr.bf16.vlgmr.msra.gmra.mxu1 %v2053_v14 }
 0x206   :  { %3203 = vmatpush1.bf16.msra.mxu1 %v6583_v26  ;;  %v6612_v26 = vld [vmem:[#allocation6 + $0x6c] ss:$16 sps:$4 sm:$0xff]  }
 0x207   :  { %3204 = vmatprep.subr.bf16.mxu1 %v6591_v29  ;;  %v6616_v29 = vld [vmem:[#allocation6 + $0x48] ss:$16 sps:$4 sm:$0xff]  }
 0x20a   :  { %3205 = vmatpush1.bf16.msra.mxu1 %v6589_v30  ;;  %v6624_v30 = vld [vmem:[#allocation6 + $0x2c] ss:$16 sps:$4 sm:$0xff]  }
 0x20b   :  { %3206 = vmatprep.subr.bf16.mxu1 %v6597_v31  ;;  %v6622_v31 = vld [vmem:[#allocation6 + $0x28] ss:$16 sps:$4 sm:$0xff]  }
 0x20e   :  { %3207 = vmatpush1.bf16.msra.mxu1 %v6595_v34  ;;  %v6630_v34 = vld [vmem:[#allocation6 + $0xc] ss:$16 sps:$4 sm:$0xff]  }
 0x20f   :  { %3208 = vmatprep.subr.bf16.mxu1 %v6603_v35  ;;  %v6628_v35 = vld [vmem:[#allocation6 + $0x8] ss:$16 sps:$4 sm:$0xff]  }
 0x212   :  { %3209 = vmatpush1.bf16.msra.mxu1 %v6601_v36  ;;  %v6636_v36 = vld [vmem:[#allocation6 + $0x1ec] ss:$16 sps:$4 sm:$0xff]  }
 0x213   :  { %3210 = vmatprep.subr.bf16.mxu1 %v6609_v37  ;;  %v6634_v37 = vld [vmem:[#allocation6 + $0x1e8] ss:$16 sps:$4 sm:$0xff]  }
 0x216   :  { %3211 = vmatpush1.bf16.msra.mxu1 %v6607_v38  ;;  %v6642_v38 = vld [vmem:[#allocation6 + $0x1cc] ss:$16 sps:$4 sm:$0xff]  }
 0x217   :  { %3212 = vmatprep.subr.bf16.mxu1 %v6615_v8  ;;  %v6640_v8 = vld [vmem:[#allocation6 + $0x1c8] ss:$16 sps:$4 sm:$0xff]  }
 0x21a   :  { %3213 = vmatpush1.bf16.msra.mxu1 %v6613_v20  ;;  %v6648_v20 = vld [vmem:[#allocation6 + $0x1ac] ss:$16 sps:$4 sm:$0xff]  }
 0x21b   :  { %3214 = vmatprep.subr.bf16.mxu1 %v6621_v21  ;;  %v6646_v21 = vld [vmem:[#allocation6 + $0x1a8] ss:$16 sps:$4 sm:$0xff]  }
 0x21e   :  { %3215 = vmatpush1.bf16.msra.mxu1 %v6619_v53  ;;  %v6654_v53 = vld [vmem:[#allocation6 + $0x18c] ss:$16 sps:$4 sm:$0xff]  }
 0x21f   :  { %3216 = vmatprep.subr.bf16.mxu1 %v6627_v9  ;;  %v6652_v9 = vld [vmem:[#allocation6 + $0x188] ss:$16 sps:$4 sm:$0xff]  }
 0x222   :  { %3217 = vmatpush1.bf16.msra.mxu1 %v6625_v55  ;;  %v6660_v55 = vld [vmem:[#allocation6 + $0x16c] ss:$16 sps:$4 sm:$0xff]  }
 0x223   :  { %3218 = vmatprep.subr.bf16.mxu1 %v6633_v39  ;;  %v6658_v39 = vld [vmem:[#allocation6 + $0x168] ss:$16 sps:$4 sm:$0xff]  }
 0x226   :  { %3219 = vmatpush2.bf16.msra.mxu1 %v6631_v40  ;;  %v6663_v40 = vld [vmem:[#allocation6 + $0x144] ss:$16 sps:$4 sm:$0xff]  }
 0x227   :  { %3220 = vmatprep.subr.bf16.mxu1 %v6639_v42  ;;  %v6666_v42 = vld [vmem:[#allocation6 + $0x14c] ss:$16 sps:$4 sm:$0xff]  }
 0x22a   :  { %3221 = vmatpush2.bf16.msra.mxu1 %v6637_v23  ;;  %v6661_v23 = vld [vmem:[#allocation6 + $0x140] ss:$16 sps:$4 sm:$0xff]  }
 0x22b   :  { %3222 = vmatprep.subr.bf16.mxu1 %v6645_v44  ;;  %v6664_v44 = vld [vmem:[#allocation6 + $0x148] ss:$16 sps:$4 sm:$0xff]  }
 0x22e   :  { %3223 = vmatpush2.bf16.msra.mxu1 %v6643_v41  ;;  %v6669_v41 = vld [vmem:[#allocation6 + $0x124] ss:$16 sps:$4 sm:$0xff]  }
 0x22f   :  { %3224 = vmatprep.subr.bf16.mxu1 %v6651_v43  ;;  %v6672_v43 = vld [vmem:[#allocation6 + $0x12c] ss:$16 sps:$4 sm:$0xff]  }
 0x232   :  { %3225 = vmatpush2.bf16.msra.mxu1 %v6649_v45  ;;  %v6667_v45 = vld [vmem:[#allocation6 + $0x120] ss:$16 sps:$4 sm:$0xff]  }
 0x233   :  { %3226 = vmatprep.subr.bf16.mxu1 %v6657_v46  ;;  %v6670_v46 = vld [vmem:[#allocation6 + $0x128] ss:$16 sps:$4 sm:$0xff]  }
 0x236   :  { %3227 = vmatpush2.bf16.msra.mxu1 %v6655_v47  ;;  %v6675_v47 = vld [vmem:[#allocation6 + $0x104] ss:$16 sps:$4 sm:$0xff]  }
 0x237   :  { %3228 = vmatprep.subr.bf16.mxu1 %v6663_v40  ;;  %v3324_v40 = vld [vmem:[#allocation7 + $0xc0] sm:$0xff] }
 0x23a   :  { %3229 = vmatpush2.bf16.msra.mxu1 %v6661_v23  ;;  %v3452_v23 = vld [vmem:[#allocation7 + $0x4c0] sm:$0xff] }
 0x23b   :  { %3230 = vmatprep.subr.bf16.mxu1 %v6669_v41 }
 0x23e   :  { %3231 = vmatpush2.bf16.msra.mxu1 %v6667_v45 }
 0x23f   :  { %3232 = vmatprep.subr.bf16.mxu1 %v6675_v47  ;;  %v3316_v47 = vld [vmem:[#allocation7 + $0x80] sm:$0xff] }
 0x245   :  { %v2485_v48 = vpop.f32.mrf.mxu0 }
 0x246   :  { %v2486_v61 = vadd.f32 %v2485_v48, %v2124_v54  ;;  %v6678_v48 = vld [vmem:[#allocation6 + $0x10c] ss:$16 sps:$4 sm:$0xff]  }
 0x247   :  { %v2487_v49 = vpop.f32.mrf.mxu0 }
 0x248   :  { %v2488_v59 = vadd.f32 %v2487_v49, %v2128_v52  ;;  %v6673_v49 = vld [vmem:[#allocation6 + $0x100] ss:$16 sps:$4 sm:$0xff]  }
 0x249   :  { %v2489_v51 = vpop.f32.mrf.mxu0  ;;  %3233 = vmatpush2.bf16.msra.mxu1 %v6673_v49  ;;  %v3444_v49 = vld [vmem:[#allocation7 + $0x480] sm:$0xff] }
 0x24a   :  { %v2490_v60 = vadd.f32 %v2489_v51, %v2124_v54  ;;  %v3356_v51 = vld [vmem:[#allocation7 + $0x1c0] sm:$0xff] }
 0x24b   :  { %v2491_v57 = vpop.f32.mrf.mxu0  ;;  %v3484_v54 = vld [vmem:[#allocation7 + $0x5c0] sm:$0xff] }
 0x24c   :  { %v2492_v63 = vadd.f32 %v2491_v57, %v2128_v52  ;;  %v3360_v52 = vld [vmem:[#allocation7 + $0x1e0] sm:$0xff] }
 0x24d   :  { %v5830_v57 = vcombine.high %v3356_v51, %v3360_v52 }
 0x24f   :  { %4878 = vmatprep.subr.bf16.mxu1 %v5830_v57  ;;  %v3308_v57 = vld [vmem:[#allocation7 + $0x40] sm:$0xff] }
 0x2c5   :  { %v2528_v56 = vpop.f32.mrf.mxu1 }
 0x2c6   :  { %v2529_v2 = vadd.f32 %v2528_v56, %v2486_v61  ;;  %v5829_v56 = vcombine.low %v3356_v51, %v3360_v52  ;;  %v2575_v61 = vld [vmem:[%s7166_s6] sm:$0x3] }
 0x2c7   :  { %v2530_v58 = vpop.f32.mrf.mxu1 }
 0x2c8   :  { %v2531_v0 = vadd.f32 %v2530_v58, %v2488_v59  ;;  %v2537_v10 = vmax.f32 %v2529_v2, 0.0  ;;  %v3488_v58 = vld [vmem:[#allocation7 + $0x5e0] sm:$0xff] }
 0x2c9   :  { %v2532_v62 = vpop.f32.mrf.mxu1  ;;  %v5957_v59 = vcombine.low %v3484_v54, %v3488_v58 }
 0x2ca   :  { %v2533_v1 = vadd.f32 %v2532_v62, %v2490_v60  ;;  %v2538_v6 = vmax.f32 %v2531_v0, 0.0  ;;  %v5958_v60 = vcombine.high %v3484_v54, %v3488_v58  ;;  %v2580_v0 = vrot.slane %v2575_v61, %v6962_v24  ;;  %v3312_v58 = vld [vmem:[#allocation7 + $0x60] sm:$0xff] }
 0x2cb   :  { %v2534_v3 = vpop.f32.mrf.mxu1 }
 0x2cc   :  { %v2535_v4 = vadd.f32 %v2534_v3, %v2492_v63  ;;  %v2539_v5 = vmax.f32 %v2533_v1, 0.0  ;;  %v2584_v63 = vrot.slane %v2575_v61, %v6954_v19 }
 0x2ce   :  { %v2540_v7 = vmax.f32 %v2535_v4, 0.0  ;;  %v2541_v14 = vpack.c.bf16 %v2539_v5, %v2537_v10 }
 0x2d0   :  { %v2542_v11 = vpack.c.bf16 %v2540_v7, %v2538_v6 }
 0x2d2   :  { %2779 = vmatprep.mubr.bf16.mxu0 %v2542_v11  ;;  %v3348_v11 = vld [vmem:[#allocation7 + $0x180] sm:$0xff] }
 0x2d3   :  { %2780 = vmatmul.mubr.bf16.vlgmr.msra.gmra.mxu0 %v2541_v14 }
 0x2d4   :  { %3246 = vmatpush1.bf16.msra.mxu0 %v6586_v13 }
 0x2d5   :  { %3247 = vmatprep.subr.bf16.mxu0 %v6594_v15  ;;  %v3352_v15 = vld [vmem:[#allocation7 + $0x1a0] sm:$0xff] }
 0x2d8   :  { %3248 = vmatpush1.bf16.msra.mxu0 %v6592_v16  ;;  %v3476_v16 = vld [vmem:[#allocation7 + $0x580] sm:$0xff] }
 0x2d9   :  { %3249 = vmatprep.subr.bf16.mxu0 %v6600_v17  ;;  %v3480_v17 = vld [vmem:[#allocation7 + $0x5a0] sm:$0xff] }
 0x2dc   :  { %3250 = vmatpush1.bf16.msra.mxu0 %v6598_v18 }
 0x2dd   :  { %3251 = vmatprep.subr.bf16.mxu0 %v6606_v22 }
 0x2e0   :  { %3252 = vmatpush1.bf16.msra.mxu0 %v6604_v25 }
 0x2e1   :  { %3253 = vmatprep.subr.bf16.mxu0 %v6612_v26  ;;  %v5822_v26 = vcombine.high %v3348_v11, %v3352_v15 }
 0x2e4   :  { %3254 = vmatpush1.bf16.msra.mxu0 %v6610_v27  ;;  %v5950_v27 = vcombine.high %v3476_v16, %v3480_v17 }
 0x2e5   :  { %3255 = vmatprep.subr.bf16.mxu0 %v6618_v28  ;;  %v3340_v28 = vld [vmem:[#allocation7 + $0x140] sm:$0xff] }
 0x2e8   :  { %3256 = vmatpush1.bf16.msra.mxu0 %v6616_v29  ;;  %v3344_v29 = vld [vmem:[#allocation7 + $0x160] sm:$0xff] }
 0x2e9   :  { %3257 = vmatprep.subr.bf16.mxu0 %v6624_v30  ;;  %v3468_v30 = vld [vmem:[#allocation7 + $0x540] sm:$0xff] }
 0x2ec   :  { %3258 = vmatpush1.bf16.msra.mxu0 %v6622_v31  ;;  %v3472_v31 = vld [vmem:[#allocation7 + $0x560] sm:$0xff] }
 0x2ed   :  { %3259 = vmatprep.subr.bf16.mxu0 %v6630_v34  ;;  %v5821_v34 = vcombine.low %v3348_v11, %v3352_v15  ;;  %v3420_v11 = vld [vmem:[#allocation7 + $0x3c0] sm:$0xff] }
 0x2ee   :  { %v3552_v15 = vld [vmem:[#allocation7 + $0x7e0] sm:$0xff] }
 0x2f0   :  { %3260 = vmatpush1.bf16.msra.mxu0 %v6628_v35  ;;  %v5949_v35 = vcombine.low %v3476_v16, %v3480_v17 }
 0x2f1   :  { %3261 = vmatprep.subr.bf16.mxu0 %v6636_v36  ;;  %v5814_v36 = vcombine.high %v3340_v28, %v3344_v29 }
 0x2f4   :  { %3262 = vmatpush2.bf16.msra.mxu0 %v6634_v37  ;;  %v5942_v37 = vcombine.high %v3468_v30, %v3472_v31 }
 0x2f5   :  { %3263 = vmatprep.subr.bf16.mxu0 %v6642_v38  ;;  %v3332_v38 = vld [vmem:[#allocation7 + $0x100] sm:$0xff] }
 0x2f8   :  { %3264 = vmatpush2.bf16.msra.mxu0 %v6640_v8  ;;  %v3336_v8 = vld [vmem:[#allocation7 + $0x120] sm:$0xff] }
 0x2f9   :  { %3265 = vmatprep.subr.bf16.mxu0 %v6648_v20  ;;  %v3460_v20 = vld [vmem:[#allocation7 + $0x500] sm:$0xff]  ;;  %v5805_v41 = vcombine.low %v3332_v38, %v3336_v8 }
 0x2fc   :  { %3266 = vmatpush2.bf16.msra.mxu0 %v6646_v21  ;;  %v3464_v21 = vld [vmem:[#allocation7 + $0x520] sm:$0xff] }
 0x2fd   :  { %3267 = vmatprep.subr.bf16.mxu0 %v6654_v53  ;;  %v5813_v53 = vcombine.low %v3340_v28, %v3344_v29  ;;  %v3544_v28 = vld [vmem:[#allocation7 + $0x7a0] sm:$0xff] }
 0x300   :  { %3268 = vmatpush2.bf16.msra.mxu0 %v6652_v9  ;;  %v5941_v9 = vcombine.low %v3468_v30, %v3472_v31 }
 0x301   :  { %3269 = vmatprep.subr.bf16.mxu0 %v6660_v55  ;;  %v5806_v55 = vcombine.high %v3332_v38, %v3336_v8  ;;  %v3536_v38 = vld [vmem:[#allocation7 + $0x760] sm:$0xff] }
 0x304   :  { %3270 = vmatpush2.bf16.msra.mxu0 %v6658_v39  ;;  %v5934_v39 = vcombine.high %v3460_v20, %v3464_v21 }
 0x305   :  { %3271 = vmatprep.subr.bf16.mxu0 %v6666_v42  ;;  %v3328_v42 = vld [vmem:[#allocation7 + $0xe0] sm:$0xff] }
 0x306   :  { %v5798_v45 = vcombine.high %v3324_v40, %v3328_v42  ;;  %v5797_v51 = vcombine.low %v3324_v40, %v3328_v42  ;;  %v3528_v40 = vld [vmem:[#allocation7 + $0x720] sm:$0xff] }
 0x308   :  { %3272 = vmatpush2.bf16.msra.mxu0 %v6664_v44  ;;  %v3456_v44 = vld [vmem:[#allocation7 + $0x4e0] sm:$0xff] }
 0x309   :  { %3273 = vmatprep.subr.bf16.mxu0 %v6672_v43  ;;  %v5933_v43 = vcombine.low %v3460_v20, %v3464_v21  ;;  %v5925_v52 = vcombine.low %v3452_v23, %v3456_v44 }
 0x30c   :  { %3274 = vmatpush2.bf16.msra.mxu0 %v6670_v46  ;;  %v5926_v46 = vcombine.high %v3452_v23, %v3456_v44 }
 0x30d   :  { %3275 = vmatprep.subr.bf16.mxu0 %v6678_v48  ;;  %v3320_v48 = vld [vmem:[#allocation7 + $0xa0] sm:$0xff] }
 0x30e   :  { %v5790_v54 = vcombine.high %v3316_v47, %v3320_v48  ;;  %v5789_v61 = vcombine.low %v3316_v47, %v3320_v48  ;;  %v3520_v47 = vld [vmem:[#allocation7 + $0x6e0] sm:$0xff] }
 0x310   :  { %3276 = vmatpush2.bf16.msra.mxu0 %v6676_v50  ;;  %v3448_v50 = vld [vmem:[#allocation7 + $0x4a0] sm:$0xff] }
 0x311   :  { %4921 = vmatprep.subr.bf16.mxu0 %v5958_v60  ;;  %v3440_v60 = vld [vmem:[#allocation7 + $0x460] sm:$0xff] }
 0x393   :  { %v2781_v62 = vpop.f32.mrf.mxu0 }
 0x394   :  { %v2782_v5 = vadd.f32 %v2781_v62, %v2580_v0  ;;  %v5917_v62 = vcombine.low %v3444_v49, %v3448_v50 }
 0x395   :  { %v2783_v1 = vpop.f32.mrf.mxu0 }
 0x396   :  { %v2784_v3 = vadd.f32 %v2783_v1, %v2584_v63  ;;  %v2790_v18 = vmax.f32 %v2782_v5, 0.0  ;;  %v3300_v1 = vld [vmem:[#allocation7] sm:$0xff]  ;;  %v5781_v5 = vcombine.low %v3308_v57, %v3312_v58 }
 0x397   :  { %v2785_v2 = vpop.f32.mrf.mxu0 }
 0x398   :  { %v2786_v4 = vadd.f32 %v2785_v2, %v2580_v0  ;;  %v2791_v13 = vmax.f32 %v2784_v3, 0.0  ;;  %v3304_v2 = vld [vmem:[#allocation7 + $0x20] sm:$0xff] }
 0x399   :  { %v2787_v6 = vpop.f32.mrf.mxu0  ;;  %v3428_v3 = vld [vmem:[#allocation7 + $0x400] sm:$0xff]  ;;  %v5773_v16 = vcombine.low %v3300_v1, %v3304_v2 }
 0x39a   :  { %v2788_v7 = vadd.f32 %v2787_v6, %v2584_v63  ;;  %v2792_v10 = vmax.f32 %v2786_v4, 0.0  ;;  %v5782_v63 = vcombine.high %v3308_v57, %v3312_v58  ;;  %v3432_v4 = vld [vmem:[#allocation7 + $0x420] sm:$0xff] }
 0x39b   :  { %v5901_v17 = vcombine.low %v3428_v3, %v3432_v4  ;;  %v3384_v57 = vld [vmem:[#allocation7 + $0x2a0] sm:$0xff] }
 0x39c   :  { %v2793_v14 = vmax.f32 %v2788_v7, 0.0  ;;  %v2794_v25 = vpack.c.bf16 %v2792_v10, %v2790_v18  ;;  %v5774_v7 = vcombine.high %v3300_v1, %v3304_v2  ;;  %v5902_v10 = vcombine.high %v3428_v3, %v3432_v4  ;;  %v3508_v58 = vld [vmem:[#allocation7 + $0x680] sm:$0xff] }
 0x39d   :  { %v3376_v1 = vld [vmem:[#allocation7 + $0x260] sm:$0xff] }
 0x39e   :  { %v2795_v22 = vpack.c.bf16 %v2793_v14, %v2791_v13  ;;  %v3424_v13 = vld [vmem:[#allocation7 + $0x3e0] sm:$0xff] }
 0x39f   :  { %v3548_v14 = vld [vmem:[#allocation7 + $0x7c0] sm:$0xff]  ;;  %v5894_v18 = vcombine.high %v3420_v11, %v3424_v13  ;;  %v5893_v29 = vcombine.low %v3420_v11, %v3424_v13 }
 0x3a0   :  { %3234 = vmatprep.mubr.bf16.mxu1 %v2795_v22  ;;  %3277 = vmatprep.mubr.bf16.mxu0 %v2795_v22  ;;  %v6022_v22 = vcombine.high %v3548_v14, %v3552_v15  ;;  %v6021_v30 = vcombine.low %v3548_v14, %v3552_v15  ;;  %v3500_v2 = vld [vmem:[#allocation7 + $0x640] sm:$0xff] }
 0x3a1   :  { %3235 = vmatmul.mubr.bf16.vlgmr.msra.gmra.mxu1 %v2794_v25  ;;  %3278 = vmatmul.mubr.bf16.vlgmr.msra.gmra.mxu0 %v2794_v25  ;;  %v3412_v25 = vld [vmem:[#allocation7 + $0x380] sm:$0xff] }
 0x3a2   :  { %4879 = vmatpush1.bf16.msra.mxu1 %v5829_v56  ;;  %4922 = vmatpush1.bf16.msra.mxu0 %v5957_v59  ;;  %v5918_v56 = vcombine.high %v3444_v49, %v3448_v50  ;;  %v3436_v59 = vld [vmem:[#allocation7 + $0x440] sm:$0xff] }
 0x3a3   :  { %4880 = vmatprep.subr.bf16.mxu1 %v5822_v26  ;;  %4923 = vmatprep.subr.bf16.mxu0 %v5950_v27  ;;  %v5910_v0 = vcombine.high %v3436_v59, %v3440_v60  ;;  %v5909_v6 = vcombine.low %v3436_v59, %v3440_v60  ;;  %v3416_v26 = vld [vmem:[#allocation7 + $0x3a0] sm:$0xff] }
 0x3a4   :  { %v3540_v27 = vld [vmem:[#allocation7 + $0x780] sm:$0xff]  ;;  %v5886_v31 = vcombine.high %v3412_v25, %v3416_v26  ;;  %v5885_v8 = vcombine.low %v3412_v25, %v3416_v26  ;;  %v3361_v25 = vld [vmem:[#allocation7 + $0x1e8] sm:$0xff] }
 0x3a5   :  { %v6013_v20 = vcombine.low %v3540_v27, %v3544_v28  ;;  %v3512_v60 = vld [vmem:[#allocation7 + $0x6a0] sm:$0xff]  ;;  %v3485_v26 = vld [vmem:[#allocation7 + $0x5c8] sm:$0xff] }
 0x3a6   :  { %4881 = vmatpush1.bf16.msra.mxu1 %v5821_v34  ;;  %4924 = vmatpush1.bf16.msra.mxu0 %v5949_v35  ;;  %v6014_v34 = vcombine.high %v3540_v27, %v3544_v28  ;;  %v3404_v35 = vld [vmem:[#allocation7 + $0x340] sm:$0xff]  ;;  %v3489_v28 = vld [vmem:[#allocation7 + $0x5e8] sm:$0xff] }
 0x3a7   :  { %4882 = vmatprep.subr.bf16.mxu1 %v5814_v36  ;;  %4925 = vmatprep.subr.bf16.mxu0 %v5942_v37  ;;  %v3408_v36 = vld [vmem:[#allocation7 + $0x360] sm:$0xff] }
 0x3a8   :  { %v3532_v37 = vld [vmem:[#allocation7 + $0x740] sm:$0xff]  ;;  %v5878_v21 = vcombine.high %v3404_v35, %v3408_v36  ;;  %v5877_v42 = vcombine.low %v3404_v35, %v3408_v36 }
 0x3a9   :  { %v6005_v23 = vcombine.low %v3532_v37, %v3536_v38  ;;  %v3504_v4 = vld [vmem:[#allocation7 + $0x660] sm:$0xff] }
 0x3aa   :  { %4883 = vmatpush1.bf16.msra.mxu1 %v5813_v53  ;;  %4926 = vmatpush1.bf16.msra.mxu0 %v5941_v9  ;;  %v6006_v53 = vcombine.high %v3532_v37, %v3536_v38  ;;  %v3396_v9 = vld [vmem:[#allocation7 + $0x300] sm:$0xff] }
 0x3ab   :  { %4884 = vmatprep.subr.bf16.mxu1 %v5806_v55  ;;  %4927 = vmatprep.subr.bf16.mxu0 %v5934_v39  ;;  %v3400_v55 = vld [vmem:[#allocation7 + $0x320] sm:$0xff] }
 0x3ac   :  { %v3524_v39 = vld [vmem:[#allocation7 + $0x700] sm:$0xff]  ;;  %v5870_v44 = vcombine.high %v3396_v9, %v3400_v55  ;;  %v5869_v48 = vcombine.low %v3396_v9, %v3400_v55 }
 0x3ad   :  { %v5997_v49 = vcombine.low %v3524_v39, %v3528_v40  ;;  %v3368_v11 = vld [vmem:[#allocation7 + $0x220] sm:$0xff] }
 0x3ae   :  { %4885 = vmatpush1.bf16.msra.mxu1 %v5805_v41  ;;  %4928 = vmatpush1.bf16.msra.mxu0 %v5933_v43  ;;  %v5998_v41 = vcombine.high %v3524_v39, %v3528_v40  ;;  %v3388_v43 = vld [vmem:[#allocation7 + $0x2c0] sm:$0xff] }
 0x3af   :  { %4886 = vmatprep.subr.bf16.mxu1 %v5798_v45  ;;  %4929 = vmatprep.subr.bf16.mxu0 %v5926_v46  ;;  %v3392_v45 = vld [vmem:[#allocation7 + $0x2e0] sm:$0xff] }
 0x3b0   :  { %v3516_v46 = vld [vmem:[#allocation7 + $0x6c0] sm:$0xff]  ;;  %v5862_v50 = vcombine.high %v3388_v43, %v3392_v45 }
 0x3b1   :  { %v3492_v13 = vld [vmem:[#allocation7 + $0x600] sm:$0xff] }
 0x3b2   :  { %4887 = vmatpush1.bf16.msra.mxu1 %v5797_v51  ;;  %4930 = vmatpush1.bf16.msra.mxu0 %v5925_v52  ;;  %v5990_v51 = vcombine.high %v3516_v46, %v3520_v47  ;;  %v5861_v52 = vcombine.low %v3388_v43, %v3392_v45  ;;  %v3496_v15 = vld [vmem:[#allocation7 + $0x620] sm:$0xff] }
 0x3b3   :  { %4888 = vmatprep.subr.bf16.mxu1 %v5790_v54  ;;  %4931 = vmatprep.subr.bf16.mxu0 %v5918_v56  ;;  %v5989_v54 = vcombine.low %v3516_v46, %v3520_v47  ;;  %v3380_v56 = vld [vmem:[#allocation7 + $0x280] sm:$0xff] }
 0x3b4   :  { %v5854_v59 = vcombine.high %v3380_v56, %v3384_v57 }
 0x3b6   :  { %4889 = vmatpush1.bf16.msra.mxu1 %v5789_v61  ;;  %4932 = vmatpush1.bf16.msra.mxu0 %v5917_v62  ;;  %v5853_v61 = vcombine.low %v3380_v56, %v3384_v57  ;;  %v5981_v62 = vcombine.low %v3508_v58, %v3512_v60  ;;  %v3349_v56 = vld [vmem:[#allocation7 + $0x188] sm:$0xff] }
 0x3b7   :  { %4890 = vmatprep.subr.bf16.mxu1 %v5782_v63  ;;  %4933 = vmatprep.subr.bf16.mxu0 %v5910_v0  ;;  %v5982_v63 = vcombine.high %v3508_v58, %v3512_v60  ;;  %v3372_v0 = vld [vmem:[#allocation7 + $0x240] sm:$0xff]  ;;  %v3477_v60 = vld [vmem:[#allocation7 + $0x588] sm:$0xff] }
 0x3b8   :  { %v5846_v3 = vcombine.high %v3372_v0, %v3376_v1 }
 0x3ba   :  { %4891 = vmatpush1.bf16.msra.mxu1 %v5781_v5  ;;  %4934 = vmatpush1.bf16.msra.mxu0 %v5909_v6  ;;  %v5845_v5 = vcombine.low %v3372_v0, %v3376_v1  ;;  %v5973_v6 = vcombine.low %v3500_v2, %v3504_v4 }
 0x3bb   :  { %4892 = vmatprep.subr.bf16.mxu1 %v5774_v7  ;;  %4935 = vmatprep.subr.bf16.mxu0 %v5902_v10  ;;  %v5974_v7 = vcombine.high %v3500_v2, %v3504_v4  ;;  %v3364_v10 = vld [vmem:[#allocation7 + $0x200] sm:$0xff]  ;;  %v3341_v2 = vld [vmem:[#allocation7 + $0x148] sm:$0xff] }
 0x3bc   :  { %v5838_v14 = vcombine.high %v3364_v10, %v3368_v11 }
 0x3be   :  { %4893 = vmatpush1.bf16.msra.mxu1 %v5773_v16  ;;  %4936 = vmatpush1.bf16.msra.mxu0 %v5901_v17  ;;  %v5837_v16 = vcombine.low %v3364_v10, %v3368_v11  ;;  %v5965_v17 = vcombine.low %v3492_v13, %v3496_v15 }
 0x3bf   :  { %4894 = vmatprep.subr.bf16.mxu1 %v5894_v18  ;;  %4937 = vmatprep.subr.bf16.mxu0 %v6022_v22  ;;  %v5966_v18 = vcombine.high %v3492_v13, %v3496_v15  ;;  %v3357_v22 = vld [vmem:[#allocation7 + $0x1c8] sm:$0xff] }
 0x3c0   :  { %v5832_v27 = vcombine.high %v3357_v22, %v3361_v25  ;;  %v3333_v15 = vld [vmem:[#allocation7 + $0x108] sm:$0xff] }
 0x3c2   :  { %4895 = vmatpush2.bf16.msra.mxu1 %v5893_v29  ;;  %4938 = vmatpush2.bf16.msra.mxu0 %v6021_v30  ;;  %v5831_v29 = vcombine.low %v3357_v22, %v3361_v25  ;;  %v5959_v30 = vcombine.low %v3485_v26, %v3489_v28 }
 0x3c3   :  { %4896 = vmatprep.subr.bf16.mxu1 %v5886_v31  ;;  %4939 = vmatprep.subr.bf16.mxu0 %v6014_v34  ;;  %v5960_v31 = vcombine.high %v3485_v26, %v3489_v28  ;;  %v2860_v34 = vld [vmem:[%s7168_s8] sm:$0xf]  ;;  %v3325_v28 = vld [vmem:[#allocation7 + $0xc8] sm:$0xff] }
 0x3c4   :  { %v2869_v37 = vrot.slane %v2860_v34, %v6954_v19  ;;  %v2877_v38 = vrot.slane %v2860_v34, %v7020_v32 }
 0x3c6   :  { %4897 = vmatpush2.bf16.msra.mxu1 %v5885_v8  ;;  %4940 = vmatpush2.bf16.msra.mxu0 %v6013_v20  ;;  %v2865_v8 = vrot.slane %v2860_v34, %v6962_v24  ;;  %v2873_v20 = vrot.slane %v2860_v34, %v7023_v33 }
 0x3c7   :  { %4898 = vmatprep.subr.bf16.mxu1 %v5878_v21  ;;  %4941 = vmatprep.subr.bf16.mxu0 %v6006_v53 }
 0x3ca   :  { %4899 = vmatpush2.bf16.msra.mxu1 %v5877_v42  ;;  %4942 = vmatpush2.bf16.msra.mxu0 %v6005_v23 }
 0x3cb   :  { %4900 = vmatprep.subr.bf16.mxu1 %v5870_v44  ;;  %4943 = vmatprep.subr.bf16.mxu0 %v5998_v41 }
 0x3ce   :  { %4901 = vmatpush2.bf16.msra.mxu1 %v5869_v48  ;;  %4944 = vmatpush2.bf16.msra.mxu0 %v5997_v49 }
 0x3cf   :  { %4902 = vmatprep.subr.bf16.mxu1 %v5862_v50  ;;  %4945 = vmatprep.subr.bf16.mxu0 %v5990_v51 }
 0x3d2   :  { %4903 = vmatpush2.bf16.msra.mxu1 %v5861_v52  ;;  %4946 = vmatpush2.bf16.msra.mxu0 %v5989_v54 }
 0x3d3   :  { %4904 = vmatprep.subr.bf16.mxu1 %v5854_v59  ;;  %4947 = vmatprep.subr.bf16.mxu0 %v5982_v63  ;;  %v3353_v59 = vld [vmem:[#allocation7 + $0x1a8] sm:$0xff] }
 0x3d4   :  { %v5823_v10 = vcombine.low %v3349_v56, %v3353_v59 }
 0x3d6   :  { %4905 = vmatpush2.bf16.msra.mxu1 %v5853_v61  ;;  %4948 = vmatpush2.bf16.msra.mxu0 %v5981_v62  ;;  %v3481_v61 = vld [vmem:[#allocation7 + $0x5a8] sm:$0xff] }
 0x3d7   :  { %4906 = vmatprep.subr.bf16.mxu1 %v5846_v3  ;;  %4949 = vmatprep.subr.bf16.mxu0 %v5974_v7  ;;  %v5824_v3 = vcombine.high %v3349_v56, %v3353_v59  ;;  %v5952_v4 = vcombine.high %v3477_v60, %v3481_v61  ;;  %v3473_v7 = vld [vmem:[#allocation7 + $0x568] sm:$0xff]  ;;  %v5951_v11 = vcombine.low %v3477_v60, %v3481_v61 }
 0x3d8   :  { %v3549_v59 = vld [vmem:[#allocation7 + $0x7c8] sm:$0xff] }
 0x3d9   :  { %v3553_v60 = vld [vmem:[#allocation7 + $0x7e8] sm:$0xff] }
 0x3da   :  { %4907 = vmatpush2.bf16.msra.mxu1 %v5845_v5  ;;  %4950 = vmatpush2.bf16.msra.mxu0 %v5973_v6  ;;  %v3345_v5 = vld [vmem:[#allocation7 + $0x168] sm:$0xff] }
 0x3db   :  { %4908 = vmatprep.subr.bf16.mxu1 %v5838_v14  ;;  %4951 = vmatprep.subr.bf16.mxu0 %v5966_v18  ;;  %v3469_v6 = vld [vmem:[#allocation7 + $0x548] sm:$0xff]  ;;  %v5816_v13 = vcombine.high %v3341_v2, %v3345_v5  ;;  %v5815_v22 = vcombine.low %v3341_v2, %v3345_v5 }
 0x3dc   :  { %v5944_v14 = vcombine.high %v3469_v6, %v3473_v7  ;;  %v3465_v18 = vld [vmem:[#allocation7 + $0x528] sm:$0xff]  ;;  %v5943_v25 = vcombine.low %v3469_v6, %v3473_v7 }
 0x3dd   :  { %v3413_v5 = vld [vmem:[#allocation7 + $0x388] sm:$0xff] }
 0x3de   :  { %4909 = vmatpush2.bf16.msra.mxu1 %v5837_v16  ;;  %4952 = vmatpush2.bf16.msra.mxu0 %v5965_v17  ;;  %v3337_v16 = vld [vmem:[#allocation7 + $0x128] sm:$0xff] }
 0x3df   :  { %4964 = vmatprep.subr.bf16.mxu1 %v5832_v27  ;;  %5007 = vmatprep.subr.bf16.mxu0 %v5960_v31  ;;  %v3461_v17 = vld [vmem:[#allocation7 + $0x508] sm:$0xff]  ;;  %v5808_v26 = vcombine.high %v3333_v15, %v3337_v16  ;;  %v5807_v34 = vcombine.low %v3333_v15, %v3337_v16 }
 0x3e0   :  { %v5936_v27 = vcombine.high %v3461_v17, %v3465_v18  ;;  %v3457_v31 = vld [vmem:[#allocation7 + $0x4e8] sm:$0xff] }
 0x3e1   :  { %v3417_v6 = vld [vmem:[#allocation7 + $0x3a8] sm:$0xff] }
 0x3e2   :  { %v3541_v7 = vld [vmem:[#allocation7 + $0x788] sm:$0xff] }
 0x3e3   :  { %v3405_v16 = vld [vmem:[#allocation7 + $0x348] sm:$0xff] }
 0x461   :  { %v3236_v35 = vpop.f32.mrf.mxu1  ;;  %v3279_v36 = vpop.f32.mrf.mxu0 }
 0x462   :  { %v3237_v44 = vadd.f32 %v3236_v35, %v2865_v8  ;;  %v3280_v41 = vadd.f32 %v3279_v36, %v2873_v20  ;;  %v5935_v35 = vcombine.low %v3461_v17, %v3465_v18  ;;  %v3409_v17 = vld [vmem:[#allocation7 + $0x368] sm:$0xff] }
 0x463   :  { %v3238_v21 = vpop.f32.mrf.mxu1  ;;  %v3281_v53 = vpop.f32.mrf.mxu0  ;;  %v3533_v18 = vld [vmem:[#allocation7 + $0x748] sm:$0xff] }
 0x464   :  { %v3239_v39 = vadd.f32 %v3238_v21, %v2869_v37  ;;  %v3282_v40 = vadd.f32 %v3281_v53, %v2877_v38  ;;  %v3288_v57 = vmax.f32 %v3237_v44, 0.0  ;;  %v3290_v58 = vmax.f32 %v3280_v41, 0.0  ;;  %v3449_v21 = vld [vmem:[#allocation7 + $0x4a8] sm:$0xff] }
 0x465   :  { %v3240_v9 = vpop.f32.mrf.mxu1  ;;  %v3283_v55 = vpop.f32.mrf.mxu0  ;;  %v3441_v44 = vld [vmem:[#allocation7 + $0x468] sm:$0xff] }
 0x466   :  { %v3241_v42 = vadd.f32 %v3240_v9, %v2865_v8  ;;  %v3284_v23 = vadd.f32 %v3283_v55, %v2873_v20  ;;  %v3289_v50 = vmax.f32 %v3239_v39, 0.0  ;;  %v3291_v51 = vmax.f32 %v3282_v40, 0.0  ;;  %v3321_v8 = vld [vmem:[#allocation7 + $0xa8] sm:$0xff] }
 0x467   :  { %v3242_v43 = vpop.f32.mrf.mxu1  ;;  %v3285_v45 = vpop.f32.mrf.mxu0  ;;  %v3445_v20 = vld [vmem:[#allocation7 + $0x488] sm:$0xff] }
 0x468   :  { %v3243_v46 = vadd.f32 %v3242_v43, %v2869_v37  ;;  %v3286_v47 = vadd.f32 %v3285_v45, %v2877_v38  ;;  %v3292_v48 = vmax.f32 %v3241_v42, 0.0  ;;  %v3294_v49 = vmax.f32 %v3284_v23, 0.0  ;;  %v3317_v38 = vld [vmem:[#allocation7 + $0x88] sm:$0xff] }
 0x469   :  { %v5792_v55 = vcombine.high %v3317_v38, %v3321_v8  ;;  %v5920_v39 = vcombine.high %v3445_v20, %v3449_v21  ;;  %v3309_v40 = vld [vmem:[#allocation7 + $0x48] sm:$0xff]  ;;  %v5791_v41 = vcombine.low %v3317_v38, %v3321_v8  ;;  %v5919_v43 = vcombine.low %v3445_v20, %v3449_v21 }
 0x46a   :  { %v3293_v52 = vmax.f32 %v3243_v46, 0.0  ;;  %v3295_v54 = vmax.f32 %v3286_v47, 0.0  ;;  %v7095_v0 = vpack.c.bf16 %v3292_v48, %v3288_v57  ;;  %v7097_v1 = vpack.c.bf16 %v3294_v49, %v3290_v58  ;;  %v3313_v42 = vld [vmem:[#allocation7 + $0x68] sm:$0xff] }
 0x46b   :  { %v3437_v23 = vld [vmem:[#allocation7 + $0x448] sm:$0xff]  ;;  %v5784_v45 = vcombine.high %v3309_v40, %v3313_v42 }
 0x46c   :  { %v7091_v62 = vpack.c.bf16 %v3293_v52, %v3289_v50  ;;  %v7093_v63 = vpack.c.bf16 %v3295_v54, %v3291_v51  ;;  %v5912_v46 = vcombine.high %v3437_v23, %v3441_v44  ;;  %v3301_v47 = vld [vmem:[#allocation7 + $0x8] sm:$0xff]  ;;  %v5783_v51 = vcombine.low %v3309_v40, %v3313_v42 }
 0x46d   :  { %v3305_v48 = vld [vmem:[#allocation7 + $0x28] sm:$0xff]  ;;  %v5911_v52 = vcombine.low %v3437_v23, %v3441_v44 }
 0x46e   :  { %4910 = vmatprep.mubr.bf16.mxu1 %v7091_v62  ;;  %4953 = vmatprep.mubr.bf16.mxu0 %v7093_v63  ;;  %v3429_v49 = vld [vmem:[#allocation7 + $0x408] sm:$0xff]  ;;  %v5776_v54 = vcombine.high %v3301_v47, %v3305_v48  ;;  %v5775_v61 = vcombine.low %v3301_v47, %v3305_v48 }
 0x46f   :  { %4911 = vmatmul.mubr.bf16.vlgmr.msra.gmra.mxu1 %v7095_v0  ;;  %4954 = vmatmul.mubr.bf16.vlgmr.msra.gmra.mxu0 %v7097_v1  ;;  %v3433_v50 = vld [vmem:[#allocation7 + $0x428] sm:$0xff] }
 0x470   :  { %4965 = vmatpush1.bf16.msra.mxu1 %v5831_v29  ;;  %5008 = vmatpush1.bf16.msra.mxu0 %v5959_v30  ;;  %v3329_v29 = vld [vmem:[#allocation7 + $0xe8] sm:$0xff]  ;;  %v5904_v56 = vcombine.high %v3429_v49, %v3433_v50  ;;  %v5903_v2 = vcombine.low %v3429_v49, %v3433_v50 }
 0x471   :  { %4996 = vmatprep.mubr.bf16.mxu1 %v7091_v62  ;;  %5039 = vmatprep.mubr.bf16.mxu0 %v7093_v63  ;;  %v3453_v30 = vld [vmem:[#allocation7 + $0x4c8] sm:$0xff]  ;;  %v5800_v36 = vcombine.high %v3325_v28, %v3329_v29  ;;  %v5799_v53 = vcombine.low %v3325_v28, %v3329_v29 }
 0x472   :  { %4966 = vmatprep.subr.bf16.mxu1 %v5824_v3  ;;  %5009 = vmatprep.subr.bf16.mxu0 %v5952_v4  ;;  %v5928_v37 = vcombine.high %v3453_v30, %v3457_v31  ;;  %v5927_v9 = vcombine.low %v3453_v30, %v3457_v31  ;;  %v3421_v57 = vld [vmem:[#allocation7 + $0x3c8] sm:$0xff]  ;;  %v6024_v4 = vcombine.high %v3549_v59, %v3553_v60 }
 0x473   :  { %v3425_v58 = vld [vmem:[#allocation7 + $0x3e8] sm:$0xff] }
 0x474   :  { %4967 = vmatpush1.bf16.msra.mxu1 %v5823_v10  ;;  %5010 = vmatpush1.bf16.msra.mxu0 %v5951_v11  ;;  %v5896_v3 = vcombine.high %v3421_v57, %v3425_v58  ;;  %v3545_v10 = vld [vmem:[#allocation7 + $0x7a8] sm:$0xff]  ;;  %v5895_v11 = vcombine.low %v3421_v57, %v3425_v58 }
 0x475   :  { %4968 = vmatprep.subr.bf16.mxu1 %v5816_v13  ;;  %5011 = vmatprep.subr.bf16.mxu0 %v5944_v14  ;;  %v6023_v13 = vcombine.low %v3549_v59, %v3553_v60  ;;  %v5888_v14 = vcombine.high %v3413_v5, %v3417_v6  ;;  %v6016_v15 = vcombine.high %v3541_v7, %v3545_v10  ;;  %v3397_v29 = vld [vmem:[#allocation7 + $0x308] sm:$0xff] }
 0x476   :  { %v3401_v30 = vld [vmem:[#allocation7 + $0x328] sm:$0xff] }
 0x477   :  { %v3525_v31 = vld [vmem:[#allocation7 + $0x708] sm:$0xff] }
 0x478   :  { %4969 = vmatpush1.bf16.msra.mxu1 %v5815_v22  ;;  %5012 = vmatpush1.bf16.msra.mxu0 %v5943_v25  ;;  %v3537_v22 = vld [vmem:[#allocation7 + $0x768] sm:$0xff]  ;;  %v5887_v25 = vcombine.low %v3413_v5, %v3417_v6  ;;  %v3358_v6 = vld [vmem:[#allocation7 + $0x1d0] sm:$0xff] }
 0x479   :  { %4970 = vmatprep.subr.bf16.mxu1 %v5808_v26  ;;  %5013 = vmatprep.subr.bf16.mxu0 %v5936_v27  ;;  %v6015_v26 = vcombine.low %v3541_v7, %v3545_v10  ;;  %v5880_v27 = vcombine.high %v3405_v16, %v3409_v17  ;;  %v6008_v28 = vcombine.high %v3533_v18, %v3537_v22  ;;  %v3389_v8 = vld [vmem:[#allocation7 + $0x2c8] sm:$0xff]  ;;  %v3362_v7 = vld [vmem:[#allocation7 + $0x1f0] sm:$0xff] }
 0x47a   :  { %v3393_v20 = vld [vmem:[#allocation7 + $0x2e8] sm:$0xff]  ;;  %v3486_v10 = vld [vmem:[#allocation7 + $0x5d0] sm:$0xff] }
 0x47b   :  { %v3517_v21 = vld [vmem:[#allocation7 + $0x6c8] sm:$0xff] }
 0x47c   :  { %4971 = vmatpush1.bf16.msra.mxu1 %v5807_v34  ;;  %5014 = vmatpush1.bf16.msra.mxu0 %v5935_v35  ;;  %v3529_v34 = vld [vmem:[#allocation7 + $0x728] sm:$0xff]  ;;  %v5879_v35 = vcombine.low %v3405_v16, %v3409_v17  ;;  %v3350_v17 = vld [vmem:[#allocation7 + $0x190] sm:$0xff] }
 0x47d   :  { %4972 = vmatprep.subr.bf16.mxu1 %v5800_v36  ;;  %5015 = vmatprep.subr.bf16.mxu0 %v5928_v37  ;;  %v6007_v36 = vcombine.low %v3533_v18, %v3537_v22  ;;  %v5872_v37 = vcombine.high %v3397_v29, %v3401_v30  ;;  %v6000_v38 = vcombine.high %v3525_v31, %v3529_v34  ;;  %v3381_v42 = vld [vmem:[#allocation7 + $0x288] sm:$0xff]  ;;  %v3354_v18 = vld [vmem:[#allocation7 + $0x1b0] sm:$0xff] }
 0x47e   :  { %v3385_v23 = vld [vmem:[#allocation7 + $0x2a8] sm:$0xff]  ;;  %v3478_v22 = vld [vmem:[#allocation7 + $0x590] sm:$0xff] }
 0x47f   :  { %v3509_v44 = vld [vmem:[#allocation7 + $0x688] sm:$0xff] }
 0x480   :  { %4973 = vmatpush1.bf16.msra.mxu1 %v5799_v53  ;;  %5016 = vmatpush1.bf16.msra.mxu0 %v5927_v9  ;;  %v3521_v53 = vld [vmem:[#allocation7 + $0x6e8] sm:$0xff]  ;;  %v5871_v9 = vcombine.low %v3397_v29, %v3401_v30  ;;  %v3342_v30 = vld [vmem:[#allocation7 + $0x150] sm:$0xff] }
 0x481   :  { %4974 = vmatprep.subr.bf16.mxu1 %v5792_v55  ;;  %5017 = vmatprep.subr.bf16.mxu0 %v5920_v39  ;;  %v5999_v55 = vcombine.low %v3525_v31, %v3529_v34  ;;  %v5864_v39 = vcombine.high %v3389_v8, %v3393_v20  ;;  %v5992_v40 = vcombine.high %v3517_v21, %v3521_v53  ;;  %v3373_v48 = vld [vmem:[#allocation7 + $0x248] sm:$0xff]  ;;  %v3346_v31 = vld [vmem:[#allocation7 + $0x170] sm:$0xff] }
 0x482   :  { %v3377_v49 = vld [vmem:[#allocation7 + $0x268] sm:$0xff]  ;;  %v3470_v34 = vld [vmem:[#allocation7 + $0x550] sm:$0xff] }
 0x483   :  { %v3501_v50 = vld [vmem:[#allocation7 + $0x648] sm:$0xff] }
 0x484   :  { %4975 = vmatpush1.bf16.msra.mxu1 %v5791_v41  ;;  %5018 = vmatpush1.bf16.msra.mxu0 %v5919_v43  ;;  %v3513_v41 = vld [vmem:[#allocation7 + $0x6a8] sm:$0xff]  ;;  %v5863_v43 = vcombine.low %v3389_v8, %v3393_v20  ;;  %v3334_v20 = vld [vmem:[#allocation7 + $0x110] sm:$0xff] }
 0x485   :  { %4976 = vmatprep.subr.bf16.mxu1 %v5784_v45  ;;  %5019 = vmatprep.subr.bf16.mxu0 %v5912_v46  ;;  %v5991_v45 = vcombine.low %v3517_v21, %v3521_v53  ;;  %v5856_v46 = vcombine.high %v3381_v42, %v3385_v23  ;;  %v5984_v47 = vcombine.high %v3509_v44, %v3513_v41  ;;  %v3365_v58 = vld [vmem:[#allocation7 + $0x208] sm:$0xff]  ;;  %v3338_v21 = vld [vmem:[#allocation7 + $0x130] sm:$0xff] }
 0x486   :  { %v3369_v59 = vld [vmem:[#allocation7 + $0x228] sm:$0xff]  ;;  %v3462_v53 = vld [vmem:[#allocation7 + $0x510] sm:$0xff] }
 0x487   :  { %v3493_v60 = vld [vmem:[#allocation7 + $0x608] sm:$0xff] }
 0x488   :  { %4977 = vmatpush1.bf16.msra.mxu1 %v5783_v51  ;;  %5020 = vmatpush1.bf16.msra.mxu0 %v5911_v52  ;;  %v3505_v51 = vld [vmem:[#allocation7 + $0x668] sm:$0xff]  ;;  %v5855_v52 = vcombine.low %v3381_v42, %v3385_v23  ;;  %v3326_v23 = vld [vmem:[#allocation7 + $0xd0] sm:$0xff] }
 0x489   :  { %4978 = vmatprep.subr.bf16.mxu1 %v5776_v54  ;;  %5021 = vmatprep.subr.bf16.mxu0 %v5904_v56  ;;  %v5983_v54 = vcombine.low %v3509_v44, %v3513_v41  ;;  %v5848_v56 = vcombine.high %v3373_v48, %v3377_v49  ;;  %v5976_v57 = vcombine.high %v3501_v50, %v3505_v51  ;;  %v3330_v44 = vld [vmem:[#allocation7 + $0xf0] sm:$0xff] }
 0x48a   :  { %v3454_v41 = vld [vmem:[#allocation7 + $0x4d0] sm:$0xff] }
 0x48c   :  { %4979 = vmatpush1.bf16.msra.mxu1 %v5775_v61  ;;  %5022 = vmatpush1.bf16.msra.mxu0 %v5903_v2  ;;  %v3497_v61 = vld [vmem:[#allocation7 + $0x628] sm:$0xff]  ;;  %v5847_v2 = vcombine.low %v3373_v48, %v3377_v49  ;;  %v3318_v49 = vld [vmem:[#allocation7 + $0x90] sm:$0xff] }
 0x48d   :  { %4980 = vmatprep.subr.bf16.mxu1 %v5896_v3  ;;  %5023 = vmatprep.subr.bf16.mxu0 %v6024_v4  ;;  %v5975_v3 = vcombine.low %v3501_v50, %v3505_v51  ;;  %v5840_v4 = vcombine.high %v3365_v58, %v3369_v59  ;;  %v5968_v5 = vcombine.high %v3493_v60, %v3497_v61  ;;  %v3322_v50 = vld [vmem:[#allocation7 + $0xb0] sm:$0xff] }
 0x48e   :  { %v3446_v51 = vld [vmem:[#allocation7 + $0x490] sm:$0xff] }
 0x490   :  { %4981 = vmatpush2.bf16.msra.mxu1 %v5895_v11  ;;  %5024 = vmatpush2.bf16.msra.mxu0 %v6023_v13  ;;  %v3490_v11 = vld [vmem:[#allocation7 + $0x5f0] sm:$0xff]  ;;  %v5839_v13 = vcombine.low %v3365_v58, %v3369_v59 }
 0x491   :  { %4982 = vmatprep.subr.bf16.mxu1 %v5888_v14  ;;  %5025 = vmatprep.subr.bf16.mxu0 %v6016_v15  ;;  %v5967_v14 = vcombine.low %v3493_v60, %v3497_v61  ;;  %v5834_v15 = vcombine.high %v3358_v6, %v3362_v7  ;;  %v5962_v16 = vcombine.high %v3486_v10, %v3490_v11  ;;  %v3310_v59 = vld [vmem:[#allocation7 + $0x50] sm:$0xff] }
 0x492   :  { %v3314_v60 = vld [vmem:[#allocation7 + $0x70] sm:$0xff] }
 0x493   :  { %v3438_v61 = vld [vmem:[#allocation7 + $0x450] sm:$0xff] }
 0x494   :  { %4983 = vmatpush2.bf16.msra.mxu1 %v5887_v25  ;;  %5026 = vmatpush2.bf16.msra.mxu0 %v6015_v26  ;;  %v3482_v25 = vld [vmem:[#allocation7 + $0x5b0] sm:$0xff]  ;;  %v5833_v26 = vcombine.low %v3358_v6, %v3362_v7 }
 0x495   :  { %4984 = vmatprep.subr.bf16.mxu1 %v5880_v27  ;;  %5027 = vmatprep.subr.bf16.mxu0 %v6008_v28  ;;  %v5961_v27 = vcombine.low %v3486_v10, %v3490_v11  ;;  %v5826_v28 = vcombine.high %v3350_v17, %v3354_v18  ;;  %v5954_v29 = vcombine.high %v3478_v22, %v3482_v25  ;;  %v3302_v7 = vld [vmem:[#allocation7 + $0x10] sm:$0xff] }
 0x496   :  { %v3306_v10 = vld [vmem:[#allocation7 + $0x30] sm:$0xff] }
 0x497   :  { %v3430_v11 = vld [vmem:[#allocation7 + $0x410] sm:$0xff] }
 0x498   :  { %4985 = vmatpush2.bf16.msra.mxu1 %v5879_v35  ;;  %5028 = vmatpush2.bf16.msra.mxu0 %v6007_v36  ;;  %v3474_v35 = vld [vmem:[#allocation7 + $0x570] sm:$0xff]  ;;  %v5825_v36 = vcombine.low %v3350_v17, %v3354_v18 }
 0x499   :  { %4986 = vmatprep.subr.bf16.mxu1 %v5872_v37  ;;  %5029 = vmatprep.subr.bf16.mxu0 %v6000_v38  ;;  %v5953_v37 = vcombine.low %v3478_v22, %v3482_v25  ;;  %v5818_v38 = vcombine.high %v3342_v30, %v3346_v31  ;;  %v5946_v8 = vcombine.high %v3470_v34, %v3474_v35  ;;  %v3422_v18 = vld [vmem:[#allocation7 + $0x3d0] sm:$0xff] }
 0x49a   :  { %v3426_v22 = vld [vmem:[#allocation7 + $0x3f0] sm:$0xff] }
 0x49b   :  { %v3550_v25 = vld [vmem:[#allocation7 + $0x7d0] sm:$0xff] }
 0x49c   :  { %4987 = vmatpush2.bf16.msra.mxu1 %v5871_v9  ;;  %5030 = vmatpush2.bf16.msra.mxu0 %v5999_v55  ;;  %v3466_v9 = vld [vmem:[#allocation7 + $0x530] sm:$0xff]  ;;  %v5817_v55 = vcombine.low %v3342_v30, %v3346_v31 }
 0x49d   :  { %4988 = vmatprep.subr.bf16.mxu1 %v5864_v39  ;;  %5031 = vmatprep.subr.bf16.mxu0 %v5992_v40  ;;  %v5945_v39 = vcombine.low %v3470_v34, %v3474_v35  ;;  %v5810_v40 = vcombine.high %v3334_v20, %v3338_v21  ;;  %v5938_v42 = vcombine.high %v3462_v53, %v3466_v9  ;;  %v3414_v31 = vld [vmem:[#allocation7 + $0x390] sm:$0xff] }
 0x49e   :  { %v3418_v34 = vld [vmem:[#allocation7 + $0x3b0] sm:$0xff] }
 0x49f   :  { %v3542_v35 = vld [vmem:[#allocation7 + $0x790] sm:$0xff] }
 0x4a0   :  { %4989 = vmatpush2.bf16.msra.mxu1 %v5863_v43  ;;  %5032 = vmatpush2.bf16.msra.mxu0 %v5991_v45  ;;  %v3458_v43 = vld [vmem:[#allocation7 + $0x4f0] sm:$0xff]  ;;  %v5809_v45 = vcombine.low %v3334_v20, %v3338_v21 }
 0x4a1   :  { %4990 = vmatprep.subr.bf16.mxu1 %v5856_v46  ;;  %5033 = vmatprep.subr.bf16.mxu0 %v5984_v47  ;;  %v5937_v46 = vcombine.low %v3462_v53, %v3466_v9  ;;  %v5802_v47 = vcombine.high %v3326_v23, %v3330_v44  ;;  %v5930_v48 = vcombine.high %v3454_v41, %v3458_v43  ;;  %v3406_v21 = vld [vmem:[#allocation7 + $0x350] sm:$0xff] }
 0x4a2   :  { %v3410_v53 = vld [vmem:[#allocation7 + $0x370] sm:$0xff] }
 0x4a3   :  { %v3534_v9 = vld [vmem:[#allocation7 + $0x750] sm:$0xff] }
 0x4a4   :  { %4991 = vmatpush2.bf16.msra.mxu1 %v5855_v52  ;;  %5034 = vmatpush2.bf16.msra.mxu0 %v5983_v54  ;;  %v3450_v52 = vld [vmem:[#allocation7 + $0x4b0] sm:$0xff]  ;;  %v5801_v54 = vcombine.low %v3326_v23, %v3330_v44 }
 0x4a5   :  { %4992 = vmatprep.subr.bf16.mxu1 %v5848_v56  ;;  %5035 = vmatprep.subr.bf16.mxu0 %v5976_v57  ;;  %v5929_v56 = vcombine.low %v3454_v41, %v3458_v43  ;;  %v5794_v57 = vcombine.high %v3318_v49, %v3322_v50  ;;  %v5922_v58 = vcombine.high %v3446_v51, %v3450_v52  ;;  %v3398_v44 = vld [vmem:[#allocation7 + $0x310] sm:$0xff] }
 0x4a6   :  { %v3402_v41 = vld [vmem:[#allocation7 + $0x330] sm:$0xff] }
 0x4a7   :  { %v3526_v43 = vld [vmem:[#allocation7 + $0x710] sm:$0xff] }
 0x4a8   :  { %4993 = vmatpush2.bf16.msra.mxu1 %v5847_v2  ;;  %5036 = vmatpush2.bf16.msra.mxu0 %v5975_v3  ;;  %v3442_v2 = vld [vmem:[#allocation7 + $0x470] sm:$0xff]  ;;  %v5793_v3 = vcombine.low %v3318_v49, %v3322_v50 }
 0x4a9   :  { %4994 = vmatprep.subr.bf16.mxu1 %v5840_v4  ;;  %5037 = vmatprep.subr.bf16.mxu0 %v5968_v5  ;;  %v5921_v4 = vcombine.low %v3446_v51, %v3450_v52  ;;  %v5786_v5 = vcombine.high %v3310_v59, %v3314_v60  ;;  %v5914_v6 = vcombine.high %v3438_v61, %v3442_v2  ;;  %v3390_v50 = vld [vmem:[#allocation7 + $0x2d0] sm:$0xff] }
 0x4aa   :  { %v3394_v51 = vld [vmem:[#allocation7 + $0x2f0] sm:$0xff] }
 0x4ab   :  { %v3518_v52 = vld [vmem:[#allocation7 + $0x6d0] sm:$0xff] }
 0x4ac   :  { %4995 = vmatpush2.bf16.msra.mxu1 %v5839_v13  ;;  %5038 = vmatpush2.bf16.msra.mxu0 %v5967_v14  ;;  %v3434_v13 = vld [vmem:[#allocation7 + $0x430] sm:$0xff]  ;;  %v5785_v14 = vcombine.low %v3310_v59, %v3314_v60 }
 0x4ad   :  { %5050 = vmatprep.subr.bf16.mxu1 %v5834_v15  ;;  %5093 = vmatprep.subr.bf16.mxu0 %v5962_v16  ;;  %v5913_v15 = vcombine.low %v3438_v61, %v3442_v2  ;;  %v5778_v16 = vcombine.high %v3302_v7, %v3306_v10  ;;  %v5906_v17 = vcombine.high %v3430_v11, %v3434_v13  ;;  %v3382_v60 = vld [vmem:[#allocation7 + $0x290] sm:$0xff] }
 0x4ae   :  { %v3386_v61 = vld [vmem:[#allocation7 + $0x2b0] sm:$0xff] }
 0x4af   :  { %4997 = vmatmul.mubr.bf16.vlgmr.msra.gmra.mxu1 %v7095_v0  ;;  %5040 = vmatmul.mubr.bf16.vlgmr.msra.gmra.mxu0 %v7097_v1  ;;  %v3510_v2 = vld [vmem:[#allocation7 + $0x690] sm:$0xff] }
 0x4b0   :  { %5051 = vmatpush1.bf16.msra.mxu1 %v5833_v26  ;;  %5082 = vmatprep.mubr.bf16.mxu1 %v7091_v62  ;;  %v3554_v26 = vld [vmem:[#allocation7 + $0x7f0] sm:$0xff] }
 0x4b1   :  { %5094 = vmatpush1.bf16.msra.mxu0 %v5961_v27  ;;  %5125 = vmatprep.mubr.bf16.mxu0 %v7093_v63  ;;  %v5777_v27 = vcombine.low %v3302_v7, %v3306_v10  ;;  %v6026_v30 = vcombine.high %v3550_v25, %v3554_v26  ;;  %v3374_v10 = vld [vmem:[#allocation7 + $0x250] sm:$0xff] }
 0x4b2   :  { %5052 = vmatprep.subr.bf16.mxu1 %v5826_v28  ;;  %5095 = vmatprep.subr.bf16.mxu0 %v5954_v29  ;;  %v5905_v28 = vcombine.low %v3430_v11, %v3434_v13  ;;  %v5898_v29 = vcombine.high %v3422_v18, %v3426_v22  ;;  %v3378_v11 = vld [vmem:[#allocation7 + $0x270] sm:$0xff] }
 0x4b3   :  { %v3502_v13 = vld [vmem:[#allocation7 + $0x650] sm:$0xff] }
 0x4b4   :  { %5053 = vmatpush1.bf16.msra.mxu1 %v5825_v36  ;;  %v3546_v36 = vld [vmem:[#allocation7 + $0x7b0] sm:$0xff] }
 0x4b5   :  { %5096 = vmatpush1.bf16.msra.mxu0 %v5953_v37  ;;  %5054 = vmatprep.subr.bf16.mxu1 %v5818_v38  ;;  %v5897_v37 = vcombine.low %v3422_v18, %v3426_v22  ;;  %v6025_v38 = vcombine.low %v3550_v25, %v3554_v26  ;;  %v6018_v20 = vcombine.high %v3542_v35, %v3546_v36  ;;  %v3366_v22 = vld [vmem:[#allocation7 + $0x210] sm:$0xff] }
 0x4b6   :  { %5097 = vmatprep.subr.bf16.mxu0 %v5946_v8  ;;  %v5890_v8 = vcombine.high %v3414_v31, %v3418_v34  ;;  %v3370_v25 = vld [vmem:[#allocation7 + $0x230] sm:$0xff] }
 0x4b7   :  { %v3494_v26 = vld [vmem:[#allocation7 + $0x610] sm:$0xff] }
 0x4b8   :  { %5055 = vmatpush1.bf16.msra.mxu1 %v5817_v55  ;;  %v3538_v55 = vld [vmem:[#allocation7 + $0x770] sm:$0xff] }
 0x4b9   :  { %5098 = vmatpush1.bf16.msra.mxu0 %v5945_v39  ;;  %5056 = vmatprep.subr.bf16.mxu1 %v5810_v40  ;;  %v5889_v39 = vcombine.low %v3414_v31, %v3418_v34  ;;  %v6017_v40 = vcombine.low %v3542_v35, %v3546_v36  ;;  %v6010_v23 = vcombine.high %v3534_v9, %v3538_v55  ;;  %v3359_v34 = vld [vmem:[#allocation7 + $0x1d8] sm:$0xff] }
 0x4ba   :  { %5099 = vmatprep.subr.bf16.mxu0 %v5938_v42  ;;  %v5882_v42 = vcombine.high %v3406_v21, %v3410_v53  ;;  %v3363_v35 = vld [vmem:[#allocation7 + $0x1f8] sm:$0xff] }
 0x4bb   :  { %v3487_v36 = vld [vmem:[#allocation7 + $0x5d8] sm:$0xff] }
 0x4bc   :  { %5057 = vmatpush1.bf16.msra.mxu1 %v5809_v45  ;;  %v3530_v45 = vld [vmem:[#allocation7 + $0x730] sm:$0xff] }
 0x4bd   :  { %5100 = vmatpush1.bf16.msra.mxu0 %v5937_v46  ;;  %5058 = vmatprep.subr.bf16.mxu1 %v5802_v47  ;;  %v5881_v46 = vcombine.low %v3406_v21, %v3410_v53  ;;  %v6009_v47 = vcombine.low %v3534_v9, %v3538_v55  ;;  %v6002_v49 = vcombine.high %v3526_v43, %v3530_v45  ;;  %v3351_v53 = vld [vmem:[#allocation7 + $0x198] sm:$0xff] }
 0x4be   :  { %5101 = vmatprep.subr.bf16.mxu0 %v5930_v48  ;;  %v5874_v48 = vcombine.high %v3398_v44, %v3402_v41  ;;  %v3355_v9 = vld [vmem:[#allocation7 + $0x1b8] sm:$0xff]  ;;  %v5835_v55 = vcombine.low %v3359_v34, %v3363_v35 }
 0x4c0   :  { %5059 = vmatpush1.bf16.msra.mxu1 %v5801_v54  ;;  %v3522_v54 = vld [vmem:[#allocation7 + $0x6f0] sm:$0xff] }
 0x4c1   :  { %5102 = vmatpush1.bf16.msra.mxu0 %v5929_v56  ;;  %5060 = vmatprep.subr.bf16.mxu1 %v5794_v57  ;;  %v5873_v56 = vcombine.low %v3398_v44, %v3402_v41  ;;  %v6001_v57 = vcombine.low %v3526_v43, %v3530_v45  ;;  %v5994_v59 = vcombine.high %v3518_v52, %v3522_v54  ;;  %v3343_v44 = vld [vmem:[#allocation7 + $0x158] sm:$0xff] }
 0x4c2   :  { %5103 = vmatprep.subr.bf16.mxu0 %v5922_v58  ;;  %v5866_v58 = vcombine.high %v3390_v50, %v3394_v51  ;;  %v3347_v41 = vld [vmem:[#allocation7 + $0x178] sm:$0xff] }
 0x4c3   :  { %v3471_v45 = vld [vmem:[#allocation7 + $0x558] sm:$0xff] }
 0x4c4   :  { %5061 = vmatpush1.bf16.msra.mxu1 %v5793_v3  ;;  %v3514_v3 = vld [vmem:[#allocation7 + $0x6b0] sm:$0xff] }
 0x4c5   :  { %5104 = vmatpush1.bf16.msra.mxu0 %v5921_v4  ;;  %5062 = vmatprep.subr.bf16.mxu1 %v5786_v5  ;;  %v5865_v4 = vcombine.low %v3390_v50, %v3394_v51  ;;  %v5993_v5 = vcombine.low %v3518_v52, %v3522_v54  ;;  %v5986_v7 = vcombine.high %v3510_v2, %v3514_v3  ;;  %v3335_v51 = vld [vmem:[#allocation7 + $0x118] sm:$0xff] }
 0x4c6   :  { %5105 = vmatprep.subr.bf16.mxu0 %v5914_v6  ;;  %v5858_v6 = vcombine.high %v3382_v60, %v3386_v61  ;;  %v3339_v52 = vld [vmem:[#allocation7 + $0x138] sm:$0xff] }
 0x4c7   :  { %v3463_v54 = vld [vmem:[#allocation7 + $0x518] sm:$0xff] }
 0x4c8   :  { %5063 = vmatpush1.bf16.msra.mxu1 %v5785_v14  ;;  %v3506_v14 = vld [vmem:[#allocation7 + $0x670] sm:$0xff] }
 0x4c9   :  { %5106 = vmatpush1.bf16.msra.mxu0 %v5913_v15  ;;  %5064 = vmatprep.subr.bf16.mxu1 %v5778_v16  ;;  %v5857_v15 = vcombine.low %v3382_v60, %v3386_v61  ;;  %v5985_v16 = vcombine.low %v3510_v2, %v3514_v3  ;;  %v5978_v18 = vcombine.high %v3502_v13, %v3506_v14  ;;  %v3327_v60 = vld [vmem:[#allocation7 + $0xd8] sm:$0xff] }
 0x4ca   :  { %5107 = vmatprep.subr.bf16.mxu0 %v5906_v17  ;;  %v5850_v17 = vcombine.high %v3374_v10, %v3378_v11  ;;  %v3331_v61 = vld [vmem:[#allocation7 + $0xf8] sm:$0xff] }
 0x4cb   :  { %v3455_v2 = vld [vmem:[#allocation7 + $0x4d8] sm:$0xff] }
 0x4cc   :  { %5065 = vmatpush1.bf16.msra.mxu1 %v5777_v27  ;;  %v3498_v27 = vld [vmem:[#allocation7 + $0x630] sm:$0xff]  ;;  %v3459_v3 = vld [vmem:[#allocation7 + $0x4f8] sm:$0xff] }
 0x4cd   :  { %5108 = vmatpush1.bf16.msra.mxu0 %v5905_v28  ;;  %5066 = vmatprep.subr.bf16.mxu1 %v5898_v29  ;;  %v5849_v28 = vcombine.low %v3374_v10, %v3378_v11  ;;  %v5977_v29 = vcombine.low %v3502_v13, %v3506_v14  ;;  %v5970_v31 = vcombine.high %v3494_v26, %v3498_v27  ;;  %v3323_v10 = vld [vmem:[#allocation7 + $0xb8] sm:$0xff] }
 0x4ce   :  { %5109 = vmatprep.subr.bf16.mxu0 %v6026_v30  ;;  %v5842_v30 = vcombine.high %v3366_v22, %v3370_v25  ;;  %v3447_v11 = vld [vmem:[#allocation7 + $0x498] sm:$0xff]  ;;  %v5803_v14 = vcombine.low %v3327_v60, %v3331_v61 }
 0x4cf   :  { %v3451_v13 = vld [vmem:[#allocation7 + $0x4b8] sm:$0xff] }
 0x4d0   :  { %5067 = vmatpush2.bf16.msra.mxu1 %v5897_v37  ;;  %v3491_v37 = vld [vmem:[#allocation7 + $0x5f8] sm:$0xff] }
 0x4d1   :  { %5110 = vmatpush2.bf16.msra.mxu0 %v6025_v38  ;;  %5068 = vmatprep.subr.bf16.mxu1 %v5890_v8  ;;  %v5841_v38 = vcombine.low %v3366_v22, %v3370_v25  ;;  %v5969_v8 = vcombine.low %v3494_v26, %v3498_v27  ;;  %v5964_v21 = vcombine.high %v3487_v36, %v3491_v37  ;;  %v3315_v22 = vld [vmem:[#allocation7 + $0x78] sm:$0xff] }
 0x4d2   :  { %5111 = vmatprep.subr.bf16.mxu0 %v6018_v20  ;;  %v5836_v20 = vcombine.high %v3359_v34, %v3363_v35  ;;  %v3439_v25 = vld [vmem:[#allocation7 + $0x458] sm:$0xff] }
 0x4d3   :  { %v3443_v26 = vld [vmem:[#allocation7 + $0x478] sm:$0xff] }
 0x4d4   :  { %5069 = vmatpush2.bf16.msra.mxu1 %v5889_v39  ;;  %v3479_v39 = vld [vmem:[#allocation7 + $0x598] sm:$0xff] }
 0x4d5   :  { %5112 = vmatpush2.bf16.msra.mxu0 %v6017_v40  ;;  %5070 = vmatprep.subr.bf16.mxu1 %v5882_v42  ;;  %v3483_v40 = vld [vmem:[#allocation7 + $0x5b8] sm:$0xff]  ;;  %v5963_v42 = vcombine.low %v3487_v36, %v3491_v37 }
 0x4d6   :  { %5113 = vmatprep.subr.bf16.mxu0 %v6010_v23  ;;  %v5828_v23 = vcombine.high %v3351_v53, %v3355_v9  ;;  %v5956_v43 = vcombine.high %v3479_v39, %v3483_v40  ;;  %v3307_v34 = vld [vmem:[#allocation7 + $0x38] sm:$0xff] }
 0x4d7   :  { %v3431_v35 = vld [vmem:[#allocation7 + $0x418] sm:$0xff] }
 0x4d8   :  { %5071 = vmatpush2.bf16.msra.mxu1 %v5881_v46  ;;  %v3475_v46 = vld [vmem:[#allocation7 + $0x578] sm:$0xff] }
 0x4d9   :  { %5114 = vmatpush2.bf16.msra.mxu0 %v6009_v47  ;;  %5072 = vmatprep.subr.bf16.mxu1 %v5874_v48  ;;  %v5827_v47 = vcombine.low %v3351_v53, %v3355_v9  ;;  %v5955_v48 = vcombine.low %v3479_v39, %v3483_v40  ;;  %v5948_v50 = vcombine.high %v3471_v45, %v3475_v46  ;;  %v3435_v36 = vld [vmem:[#allocation7 + $0x438] sm:$0xff] }
 0x4da   :  { %5115 = vmatprep.subr.bf16.mxu0 %v6002_v49  ;;  %v5820_v49 = vcombine.high %v3343_v44, %v3347_v41  ;;  %v3427_v53 = vld [vmem:[#allocation7 + $0x3f8] sm:$0xff]  ;;  %v5907_v40 = vcombine.low %v3431_v35, %v3435_v36 }
 0x4db   :  { %v3551_v9 = vld [vmem:[#allocation7 + $0x7d8] sm:$0xff] }
 0x4dc   :  { %5073 = vmatpush2.bf16.msra.mxu1 %v5873_v56  ;;  %v3467_v56 = vld [vmem:[#allocation7 + $0x538] sm:$0xff] }
 0x4dd   :  { %5116 = vmatpush2.bf16.msra.mxu0 %v6001_v57  ;;  %5074 = vmatprep.subr.bf16.mxu1 %v5866_v58  ;;  %v5819_v57 = vcombine.low %v3343_v44, %v3347_v41  ;;  %v5947_v58 = vcombine.low %v3471_v45, %v3475_v46  ;;  %v3415_v44 = vld [vmem:[#allocation7 + $0x398] sm:$0xff] }
 0x4de   :  { %5117 = vmatprep.subr.bf16.mxu0 %v5994_v59  ;;  %v5812_v59 = vcombine.high %v3335_v51, %v3339_v52  ;;  %v3419_v41 = vld [vmem:[#allocation7 + $0x3b8] sm:$0xff] }
 0x4df   :  { %v3547_v45 = vld [vmem:[#allocation7 + $0x7b8] sm:$0xff] }
 0x4e0   :  { %5075 = vmatpush2.bf16.msra.mxu1 %v5865_v4  ;;  %v5939_v4 = vcombine.low %v3463_v54, %v3467_v56 }
 0x4e1   :  { %5118 = vmatpush2.bf16.msra.mxu0 %v5993_v5  ;;  %5076 = vmatprep.subr.bf16.mxu1 %v5858_v6  ;;  %v5804_v5 = vcombine.high %v3327_v60, %v3331_v61  ;;  %v5932_v6 = vcombine.high %v3455_v2, %v3459_v3  ;;  %v3403_v60 = vld [vmem:[#allocation7 + $0x338] sm:$0xff] }
 0x4e2   :  { %5119 = vmatprep.subr.bf16.mxu0 %v5986_v7  ;;  %v3319_v7 = vld [vmem:[#allocation7 + $0x98] sm:$0xff] }
 0x4e3   :  { %v5795_v27 = vcombine.low %v3319_v7, %v3323_v10  ;;  %v3527_v61 = vld [vmem:[#allocation7 + $0x718] sm:$0xff] }
 0x4e4   :  { %5077 = vmatpush2.bf16.msra.mxu1 %v5857_v15  ;;  %v5931_v15 = vcombine.low %v3455_v2, %v3459_v3  ;;  %v3531_v2 = vld [vmem:[#allocation7 + $0x738] sm:$0xff] }
 0x4e5   :  { %5120 = vmatpush2.bf16.msra.mxu0 %v5985_v16  ;;  %5078 = vmatprep.subr.bf16.mxu1 %v5850_v17  ;;  %v5796_v16 = vcombine.high %v3319_v7, %v3323_v10  ;;  %v5924_v17 = vcombine.high %v3447_v11, %v3451_v13  ;;  %v3395_v7 = vld [vmem:[#allocation7 + $0x2f8] sm:$0xff] }
 0x4e6   :  { %5121 = vmatprep.subr.bf16.mxu0 %v5978_v18  ;;  %v3311_v18 = vld [vmem:[#allocation7 + $0x58] sm:$0xff] }
 0x4e7   :  { %v5787_v37 = vcombine.low %v3311_v18, %v3315_v22  ;;  %v3519_v10 = vld [vmem:[#allocation7 + $0x6d8] sm:$0xff] }
 0x4e8   :  { %5079 = vmatpush2.bf16.msra.mxu1 %v5849_v28  ;;  %v5923_v28 = vcombine.low %v3447_v11, %v3451_v13  ;;  %v3523_v11 = vld [vmem:[#allocation7 + $0x6f8] sm:$0xff] }
 0x4e9   :  { %5122 = vmatpush2.bf16.msra.mxu0 %v5977_v29  ;;  %5080 = vmatprep.subr.bf16.mxu1 %v5842_v30  ;;  %v5788_v29 = vcombine.high %v3311_v18, %v3315_v22  ;;  %v5916_v30 = vcombine.high %v3439_v25, %v3443_v26  ;;  %v3387_v18 = vld [vmem:[#allocation7 + $0x2b8] sm:$0xff] }
 0x4ea   :  { %5123 = vmatprep.subr.bf16.mxu0 %v5970_v31  ;;  %v3303_v31 = vld [vmem:[#allocation7 + $0x18] sm:$0xff] }
 0x4eb   :  { %v5779_v39 = vcombine.low %v3303_v31, %v3307_v34  ;;  %v3511_v22 = vld [vmem:[#allocation7 + $0x698] sm:$0xff] }
 0x4ec   :  { %5081 = vmatpush2.bf16.msra.mxu1 %v5841_v38  ;;  %v5915_v38 = vcombine.low %v3439_v25, %v3443_v26  ;;  %v3515_v25 = vld [vmem:[#allocation7 + $0x6b8] sm:$0xff] }
 0x4ed   :  { %5124 = vmatpush2.bf16.msra.mxu0 %v5969_v8  ;;  %5136 = vmatprep.subr.bf16.mxu1 %v5836_v20  ;;  %v5780_v8 = vcombine.high %v3303_v31, %v3307_v34  ;;  %v5908_v20 = vcombine.high %v3431_v35, %v3435_v36  ;;  %v3379_v31 = vld [vmem:[#allocation7 + $0x278] sm:$0xff] }
 0x4ee   :  { %5179 = vmatprep.subr.bf16.mxu0 %v5964_v21  ;;  %v3423_v21 = vld [vmem:[#allocation7 + $0x3d8] sm:$0xff] }
 0x4ef   :  { %5083 = vmatmul.mubr.bf16.vlgmr.msra.gmra.mxu1 %v7095_v0  ;;  %v5899_v46 = vcombine.low %v3423_v21, %v3427_v53  ;;  %v3503_v34 = vld [vmem:[#allocation7 + $0x658] sm:$0xff] }
 0x4f0   :  { %5126 = vmatmul.mubr.bf16.vlgmr.msra.gmra.mxu0 %v7097_v1  ;;  %5137 = vmatpush1.bf16.msra.mxu1 %v5835_v55  ;;  %v3555_v55 = vld [vmem:[#allocation7 + $0x7f8] sm:$0xff] }
 0x4f1   :  { %5168 = vmatprep.mubr.bf16.mxu1 %v7091_v62  ;;  %5180 = vmatpush1.bf16.msra.mxu0 %v5963_v42  ;;  %v5940_v62 = vcombine.high %v3463_v54, %v3467_v56  ;;  %v5900_v42 = vcombine.high %v3423_v21, %v3427_v53  ;;  %v3539_v54 = vld [vmem:[#allocation7 + $0x778] sm:$0xff]  ;;  %v5891_v56 = vcombine.low %v3415_v44, %v3419_v41 }
 0x4f2   :  { %5211 = vmatprep.mubr.bf16.mxu0 %v7093_v63  ;;  %5138 = vmatprep.subr.bf16.mxu1 %v5828_v23  ;;  %v5811_v63 = vcombine.low %v3335_v51, %v3339_v52  ;;  %v6028_v23 = vcombine.high %v3551_v9, %v3555_v55  ;;  %v3411_v51 = vld [vmem:[#allocation7 + $0x378] sm:$0xff] }
 0x4f3   :  { %5181 = vmatprep.subr.bf16.mxu0 %v5956_v43  ;;  %v3543_v43 = vld [vmem:[#allocation7 + $0x798] sm:$0xff] }
 0x4f4   :  { %5139 = vmatpush1.bf16.msra.mxu1 %v5827_v47  ;;  %v6027_v47 = vcombine.low %v3551_v9, %v3555_v55  ;;  %v3535_v52 = vld [vmem:[#allocation7 + $0x758] sm:$0xff] }
 0x4f5   :  { %5182 = vmatpush1.bf16.msra.mxu0 %v5955_v48  ;;  %5140 = vmatprep.subr.bf16.mxu1 %v5820_v49  ;;  %v5892_v48 = vcombine.high %v3415_v44, %v3419_v41  ;;  %v6020_v49 = vcombine.high %v3543_v43, %v3547_v45  ;;  %v3507_v35 = vld [vmem:[#allocation7 + $0x678] sm:$0xff]  ;;  %v7116_v41 = vld [vmem:[%s7170_s10] sm:$0xff] }
 0x4f6   :  { %5183 = vmatprep.subr.bf16.mxu0 %v5948_v50  ;;  %v3407_v50 = vld [vmem:[#allocation7 + $0x358] sm:$0xff] }
 0x4f7   :  { %v5883_v3 = vcombine.low %v3407_v50, %v3411_v51  ;;  %v3371_v21 = vld [vmem:[#allocation7 + $0x238] sm:$0xff] }
 0x4f8   :  { %5141 = vmatpush1.bf16.msra.mxu1 %v5819_v57  ;;  %v6019_v57 = vcombine.low %v3543_v43, %v3547_v45  ;;  %v3495_v53 = vld [vmem:[#allocation7 + $0x618] sm:$0xff]  ;;  %v3561_v43 = vrot.slane %v7116_v41, %v6962_v24  ;;  %v3565_v45 = vrot.slane %v7116_v41, %v6954_v19 }
 0x4f9   :  { %5184 = vmatpush1.bf16.msra.mxu0 %v5947_v58  ;;  %5142 = vmatprep.subr.bf16.mxu1 %v5812_v59  ;;  %v5884_v58 = vcombine.high %v3407_v50, %v3411_v51  ;;  %v6012_v59 = vcombine.high %v3535_v52, %v3539_v54  ;;  %v3499_v9 = vld [vmem:[#allocation7 + $0x638] sm:$0xff] }
 0x4fa   :  { %5185 = vmatprep.subr.bf16.mxu0 %v5940_v62  ;;  %v3399_v62 = vld [vmem:[#allocation7 + $0x318] sm:$0xff]  ;;  %v5971_v44 = vcombine.low %v3495_v53, %v3499_v9 }
 0x4fb   :  { %v5875_v13 = vcombine.low %v3399_v62, %v3403_v60 }
 0x4fc   :  { %5143 = vmatpush1.bf16.msra.mxu1 %v5811_v63  ;;  %v6011_v63 = vcombine.low %v3535_v52, %v3539_v54 }
 0x4fd   :  { %5186 = vmatpush1.bf16.msra.mxu0 %v5939_v4  ;;  %5144 = vmatprep.subr.bf16.mxu1 %v5804_v5  ;;  %v5876_v4 = vcombine.high %v3399_v62, %v3403_v60  ;;  %v6004_v5 = vcombine.high %v3527_v61, %v3531_v2 }
 0x4fe   :  { %5187 = vmatprep.subr.bf16.mxu0 %v5932_v6  ;;  %v3391_v6 = vld [vmem:[#allocation7 + $0x2d8] sm:$0xff] }
 0x4ff   :  { %v5867_v26 = vcombine.low %v3391_v6, %v3395_v7 }
 0x500   :  { %5145 = vmatpush1.bf16.msra.mxu1 %v5803_v14  ;;  %v6003_v14 = vcombine.low %v3527_v61, %v3531_v2 }
 0x501   :  { %5188 = vmatpush1.bf16.msra.mxu0 %v5931_v15  ;;  %5146 = vmatprep.subr.bf16.mxu1 %v5796_v16  ;;  %v5868_v15 = vcombine.high %v3391_v6, %v3395_v7  ;;  %v5996_v16 = vcombine.high %v3519_v10, %v3523_v11 }
 0x502   :  { %5189 = vmatprep.subr.bf16.mxu0 %v5924_v17  ;;  %v3383_v17 = vld [vmem:[#allocation7 + $0x298] sm:$0xff] }
 0x503   :  { %v5859_v36 = vcombine.low %v3383_v17, %v3387_v18 }
 0x504   :  { %5147 = vmatpush1.bf16.msra.mxu1 %v5795_v27  ;;  %v5995_v27 = vcombine.low %v3519_v10, %v3523_v11 }
 0x505   :  { %5190 = vmatpush1.bf16.msra.mxu0 %v5923_v28  ;;  %5148 = vmatprep.subr.bf16.mxu1 %v5788_v29  ;;  %v5860_v28 = vcombine.high %v3383_v17, %v3387_v18  ;;  %v5988_v29 = vcombine.high %v3511_v22, %v3515_v25 }
 0x506   :  { %5191 = vmatprep.subr.bf16.mxu0 %v5916_v30  ;;  %v3375_v30 = vld [vmem:[#allocation7 + $0x258] sm:$0xff] }
 0x507   :  { %v5851_v55 = vcombine.low %v3375_v30, %v3379_v31 }
 0x508   :  { %5149 = vmatpush1.bf16.msra.mxu1 %v5787_v37  ;;  %v5987_v37 = vcombine.low %v3511_v22, %v3515_v25  ;;  %v3569_v22 = vrot.slane %v7116_v41, %v7023_v33  ;;  %v3573_v25 = vrot.slane %v7116_v41, %v7020_v32 }
 0x509   :  { %5192 = vmatpush1.bf16.msra.mxu0 %v5915_v38  ;;  %5150 = vmatprep.subr.bf16.mxu1 %v5780_v8  ;;  %v5852_v38 = vcombine.high %v3375_v30, %v3379_v31  ;;  %v5980_v8 = vcombine.high %v3503_v34, %v3507_v35 }
 0x50a   :  { %5193 = vmatprep.subr.bf16.mxu0 %v5908_v20  ;;  %v3367_v20 = vld [vmem:[#allocation7 + $0x218] sm:$0xff] }
 0x50c   :  { %5151 = vmatpush1.bf16.msra.mxu1 %v5779_v39  ;;  %v5979_v39 = vcombine.low %v3503_v34, %v3507_v35 }
 0x50d   :  { %5194 = vmatpush1.bf16.msra.mxu0 %v5907_v40  ;;  %5152 = vmatprep.subr.bf16.mxu1 %v5900_v42  ;;  %v5844_v40 = vcombine.high %v3367_v20, %v3371_v21  ;;  %v5972_v42 = vcombine.high %v3495_v53, %v3499_v9 }
 0x50e   :  { %5195 = vmatprep.subr.bf16.mxu0 %v6028_v23  ;;  %v5843_v23 = vcombine.low %v3367_v20, %v3371_v21 }
 0x510   :  { %5153 = vmatpush2.bf16.msra.mxu1 %v5899_v46 }
 0x511   :  { %5196 = vmatpush2.bf16.msra.mxu0 %v6027_v47  ;;  %5154 = vmatprep.subr.bf16.mxu1 %v5892_v48 }
 0x512   :  { %5197 = vmatprep.subr.bf16.mxu0 %v6020_v49 }
 0x514   :  { %5155 = vmatpush2.bf16.msra.mxu1 %v5891_v56 }
 0x515   :  { %5198 = vmatpush2.bf16.msra.mxu0 %v6019_v57  ;;  %5156 = vmatprep.subr.bf16.mxu1 %v5884_v58 }
 0x516   :  { %5199 = vmatprep.subr.bf16.mxu0 %v6012_v59 }
 0x518   :  { %5157 = vmatpush2.bf16.msra.mxu1 %v5883_v3 }
 0x519   :  { %5200 = vmatpush2.bf16.msra.mxu0 %v6011_v63  ;;  %5158 = vmatprep.subr.bf16.mxu1 %v5876_v4 }
 0x51a   :  { %5201 = vmatprep.subr.bf16.mxu0 %v6004_v5 }
 0x51c   :  { %5159 = vmatpush2.bf16.msra.mxu1 %v5875_v13 }
 0x51d   :  { %5202 = vmatpush2.bf16.msra.mxu0 %v6003_v14  ;;  %5160 = vmatprep.subr.bf16.mxu1 %v5868_v15 }
 0x51e   :  { %5203 = vmatprep.subr.bf16.mxu0 %v5996_v16 }
 0x520   :  { %5161 = vmatpush2.bf16.msra.mxu1 %v5867_v26 }
 0x521   :  { %5204 = vmatpush2.bf16.msra.mxu0 %v5995_v27  ;;  %5162 = vmatprep.subr.bf16.mxu1 %v5860_v28 }
 0x522   :  { %5205 = vmatprep.subr.bf16.mxu0 %v5988_v29 }
 0x524   :  { %5163 = vmatpush2.bf16.msra.mxu1 %v5859_v36 }
 0x525   :  { %5206 = vmatpush2.bf16.msra.mxu0 %v5987_v37  ;;  %5164 = vmatprep.subr.bf16.mxu1 %v5852_v38 }
 0x526   :  { %5207 = vmatprep.subr.bf16.mxu0 %v5980_v8 }
 0x528   :  { %5165 = vmatpush2.bf16.msra.mxu1 %v5851_v55 }
 0x529   :  { %5208 = vmatpush2.bf16.msra.mxu0 %v5979_v39  ;;  %5166 = vmatprep.subr.bf16.mxu1 %v5844_v40 }
 0x52a   :  { %5209 = vmatprep.subr.bf16.mxu0 %v5972_v42 }
 0x52c   :  { %5167 = vmatpush2.bf16.msra.mxu1 %v5843_v23 }
 0x52d   :  { %5210 = vmatpush2.bf16.msra.mxu0 %v5971_v44 }
 0x52f   :  { %5169 = vmatmul.mubr.bf16.vlgmr.msra.gmra.mxu1 %v7095_v0  ;;  %v4912_v46 = vpop.f32.mrf.mxu1  ;;  %v4955_v47 = vpop.f32.mrf.mxu0 }
 0x530   :  { %5212 = vmatmul.mubr.bf16.vlgmr.msra.gmra.mxu0 %v7097_v1  ;;  %v4913_v48 = vadd.f32 %v4912_v46, %v3561_v43 }
 0x531   :  { %v4914_v49 = vpop.f32.mrf.mxu1  ;;  %v4957_v50 = vpop.f32.mrf.mxu0 }
 0x532   :  { %v4956_v51 = vadd.f32 %v4955_v47, %v4913_v48  ;;  %v4915_v52 = vadd.f32 %v4914_v49, %v3565_v45 }
 0x533   :  { %v4916_v54 = vpop.f32.mrf.mxu1  ;;  %v4959_v56 = vpop.f32.mrf.mxu0 }
 0x534   :  { %v5222_v57 = vmul.f32 0.5, %v4956_v51  ;;  %v4958_v58 = vadd.f32 %v4957_v50, %v4915_v52  ;;  %v4917_v24 = vadd.f32 %v4916_v54, %v3561_v43 }
 0x535   :  { %v4918_v59 = vpop.f32.mrf.mxu1  ;;  %v4961_v0 = vpop.f32.mrf.mxu0 }
 0x536   :  { %6679 = vtanh.f32 %v5222_v57  ;;  %v5223_v62 = vmul.f32 0.5, %v4958_v58  ;;  %v4960_v19 = vadd.f32 %v4959_v56, %v4917_v24  ;;  %v4919_v60 = vadd.f32 %v4918_v59, %v3565_v45 }
 0x537   :  { %v3576_v56 = vsub.s32 4, %v6951_v12  ;;  %v3580_v57 = vsub.s32 5, %v6951_v12 }
 0x538   :  { %6681 = vtanh.f32 %v5223_v62  ;;  %v5230_v61 = vmul.f32 0.5, %v4960_v19  ;;  %v4962_v2 = vadd.f32 %v4961_v0, %v4919_v60 }
 0x539   :  { %v3577_v58 = vrot.slane %v7116_v41, %v3576_v56  ;;  %v3581_v24 = vrot.slane %v7116_v41, %v3580_v57 }
 0x53a   :  { %6683 = vtanh.f32 %v5230_v61  ;;  %v5231_v1 = vmul.f32 0.5, %v4962_v2 }
 0x53c   :  { %6685 = vtanh.f32 %v5231_v1 }
 0x543   :  { %v6680_v3 = vpop.eup %6679 }
 0x544   :  { %v5254_v63 = vadd.f32 1.0, %v6680_v3 }
 0x545   :  { %v6682_v4 = vpop.eup %6681 }
 0x546   :  { %v5255_v5 = vadd.f32 1.0, %v6682_v4  ;;  %v5270_v7 = vmul.f32 0.5, %v5254_v63 }
 0x547   :  { %v6684_v6 = vpop.eup %6683 }
 0x548   :  { %v5271_v10 = vmul.f32 0.5, %v5255_v5  ;;  %v5262_v11 = vadd.f32 1.0, %v6684_v6 }
 0x549   :  { %v6686_v13 = vpop.eup %6685 }
 0x54a   :  { %v6037_v14 = vpack.c.bf16 %v5271_v10, %v5270_v7  ;;  %v5263_v15 = vadd.f32 1.0, %v6686_v13  ;;  %v5278_v16 = vmul.f32 0.5, %v5262_v11 }
 0x54c   :  { %5334 = vst [vmem:[%s7171_s11] sm:$0xff] %v6037_v14  ;;  %v5279_v17 = vmul.f32 0.5, %v5263_v15 }
 0x54e   :  { %v6041_v18 = vpack.c.bf16 %v5279_v17, %v5278_v16 }
 0x550   :  { %5338 = vst [vmem:[%s7171_s11 + $0x20] sm:$0xff] %v6041_v18 }
 0x56f   :  { %v4998_v26 = vpop.f32.mrf.mxu1  ;;  %v5041_v27 = vpop.f32.mrf.mxu0 }
 0x570   :  { %v4999_v28 = vadd.f32 %v4998_v26, %v3569_v22 }
 0x571   :  { %v5000_v29 = vpop.f32.mrf.mxu1  ;;  %v5043_v30 = vpop.f32.mrf.mxu0 }
 0x572   :  { %v5042_v31 = vadd.f32 %v5041_v27, %v4999_v28  ;;  %v5001_v34 = vadd.f32 %v5000_v29, %v3573_v25 }
 0x573   :  { %v5002_v35 = vpop.f32.mrf.mxu1  ;;  %v5045_v36 = vpop.f32.mrf.mxu0 }
 0x574   :  { %v5224_v37 = vmul.f32 0.5, %v5042_v31  ;;  %v5044_v38 = vadd.f32 %v5043_v30, %v5001_v34  ;;  %v5003_v8 = vadd.f32 %v5002_v35, %v3569_v22 }
 0x575   :  { %v5004_v20 = vpop.f32.mrf.mxu1  ;;  %v5047_v9 = vpop.f32.mrf.mxu0 }
 0x576   :  { %6687 = vtanh.f32 %v5224_v37  ;;  %v5225_v21 = vmul.f32 0.5, %v5044_v38  ;;  %v5046_v53 = vadd.f32 %v5045_v36, %v5003_v8  ;;  %v5005_v33 = vadd.f32 %v5004_v20, %v3573_v25 }
 0x577   :  { %v3584_v38 = vsub.s32 6, %v6951_v12  ;;  %v3588_v8 = vsub.s32 7, %v6951_v12 }
 0x578   :  { %6689 = vtanh.f32 %v5225_v21  ;;  %v5232_v32 = vmul.f32 0.5, %v5046_v53  ;;  %v5048_v55 = vadd.f32 %v5047_v9, %v5005_v33 }
 0x579   :  { %v3585_v20 = vrot.slane %v7116_v41, %v3584_v38  ;;  %v3589_v21 = vrot.slane %v7116_v41, %v3588_v8 }
 0x57a   :  { %6691 = vtanh.f32 %v5232_v32  ;;  %v5233_v39 = vmul.f32 0.5, %v5048_v55 }
 0x57c   :  { %6693 = vtanh.f32 %v5233_v39 }
 0x583   :  { %v6688_v40 = vpop.eup %6687 }
 0x584   :  { %v5256_v42 = vadd.f32 1.0, %v6688_v40 }
 0x585   :  { %v6690_v23 = vpop.eup %6689 }
 0x586   :  { %v5257_v44 = vadd.f32 1.0, %v6690_v23  ;;  %v5272_v45 = vmul.f32 0.5, %v5256_v42 }
 0x587   :  { %v6692_v43 = vpop.eup %6691 }
 0x588   :  { %v5273_v46 = vmul.f32 0.5, %v5257_v44  ;;  %v5264_v47 = vadd.f32 1.0, %v6692_v43 }
 0x589   :  { %v6694_v48 = vpop.eup %6693 }
 0x58a   :  { %v6038_v49 = vpack.c.bf16 %v5273_v46, %v5272_v45  ;;  %v5265_v50 = vadd.f32 1.0, %v6694_v48  ;;  %v5280_v51 = vmul.f32 0.5, %v5264_v47 }
 0x58c   :  { %5335 = vst [vmem:[%s7171_s11 + $0x8] sm:$0xff] %v6038_v49  ;;  %v5281_v52 = vmul.f32 0.5, %v5265_v50 }
 0x58e   :  { %v6042_v54 = vpack.c.bf16 %v5281_v52, %v5280_v51 }
 0x590   :  { %5339 = vst [vmem:[%s7171_s11 + $0x28] sm:$0xff] %v6042_v54 }
 0x5af   :  { %v5084_v59 = vpop.f32.mrf.mxu1 }
 0x5b0   :  { %v5085_v62 = vadd.f32 %v5084_v59, %v3577_v58  ;;  %v5127_v19 = vpop.f32.mrf.mxu0 }
 0x5b1   :  { %v5086_v60 = vpop.f32.mrf.mxu1 }
 0x5b2   :  { %v5128_v0 = vadd.f32 %v5127_v19, %v5085_v62  ;;  %v5087_v61 = vadd.f32 %v5086_v60, %v3581_v24  ;;  %v5129_v2 = vpop.f32.mrf.mxu0 }
 0x5b3   :  { %v5088_v1 = vpop.f32.mrf.mxu1 }
 0x5b4   :  { %v5226_v3 = vmul.f32 0.5, %v5128_v0  ;;  %v5130_v63 = vadd.f32 %v5129_v2, %v5087_v61  ;;  %v5089_v4 = vadd.f32 %v5088_v1, %v3577_v58  ;;  %v5131_v5 = vpop.f32.mrf.mxu0 }
 0x5b5   :  { %v5090_v6 = vpop.f32.mrf.mxu1 }
 0x5b6   :  { %6695 = vtanh.f32 %v5226_v3  ;;  %v5227_v7 = vmul.f32 0.5, %v5130_v63  ;;  %v5132_v10 = vadd.f32 %v5131_v5, %v5089_v4  ;;  %v5091_v11 = vadd.f32 %v5090_v6, %v3581_v24  ;;  %v5133_v13 = vpop.f32.mrf.mxu0 }
 0x5b8   :  { %6697 = vtanh.f32 %v5227_v7  ;;  %v5234_v14 = vmul.f32 0.5, %v5132_v10  ;;  %v5134_v15 = vadd.f32 %v5133_v13, %v5091_v11 }
 0x5ba   :  { %6699 = vtanh.f32 %v5234_v14  ;;  %v5235_v16 = vmul.f32 0.5, %v5134_v15 }
 0x5bc   :  { %6701 = vtanh.f32 %v5235_v16 }
 0x5c3   :  { %v6696_v17 = vpop.eup %6695 }
 0x5c4   :  { %v5258_v18 = vadd.f32 1.0, %v6696_v17 }
 0x5c5   :  { %v6698_v22 = vpop.eup %6697 }
 0x5c6   :  { %v5259_v25 = vadd.f32 1.0, %v6698_v22  ;;  %v5274_v27 = vmul.f32 0.5, %v5258_v18 }
 0x5c7   :  { %v6700_v26 = vpop.eup %6699 }
 0x5c8   :  { %v5275_v28 = vmul.f32 0.5, %v5259_v25  ;;  %v5266_v29 = vadd.f32 1.0, %v6700_v26 }
 0x5c9   :  { %v6702_v30 = vpop.eup %6701 }
 0x5ca   :  { %v6039_v31 = vpack.c.bf16 %v5275_v28, %v5274_v27  ;;  %v5267_v34 = vadd.f32 1.0, %v6702_v30  ;;  %v5282_v35 = vmul.f32 0.5, %v5266_v29 }
 0x5cc   :  { %5336 = vst [vmem:[%s7171_s11 + $0x10] sm:$0xff] %v6039_v31  ;;  %v5283_v36 = vmul.f32 0.5, %v5267_v34 }
 0x5ce   :  { %v6043_v37 = vpack.c.bf16 %v5283_v36, %v5282_v35 }
 0x5d0   :  { %5340 = vst [vmem:[%s7171_s11 + $0x30] sm:$0xff] %v6043_v37 }
 0x5ef   :  { %v5170_v53 = vpop.f32.mrf.mxu1 }
 0x5f0   :  { %v5171_v33 = vadd.f32 %v5170_v53, %v3585_v20  ;;  %v5213_v9 = vpop.f32.mrf.mxu0 }
 0x5f1   :  { %v5172_v32 = vpop.f32.mrf.mxu1 }
 0x5f2   :  { %v5214_v55 = vadd.f32 %v5213_v9, %v5171_v33  ;;  %v5173_v39 = vadd.f32 %v5172_v32, %v3589_v21  ;;  %v5215_v40 = vpop.f32.mrf.mxu0 }
 0x5f3   :  { %v5174_v42 = vpop.f32.mrf.mxu1 }
 0x5f4   :  { %v5228_v23 = vmul.f32 0.5, %v5214_v55  ;;  %v5216_v44 = vadd.f32 %v5215_v40, %v5173_v39  ;;  %v5175_v43 = vadd.f32 %v5174_v42, %v3585_v20  ;;  %v5217_v45 = vpop.f32.mrf.mxu0 }
 0x5f5   :  { %v5176_v46 = vpop.f32.mrf.mxu1 }
 0x5f6   :  { %6703 = vtanh.f32 %v5228_v23  ;;  %v5229_v47 = vmul.f32 0.5, %v5216_v44  ;;  %v5218_v12 = vadd.f32 %v5217_v45, %v5175_v43  ;;  %v5177_v48 = vadd.f32 %v5176_v46, %v3589_v21  ;;  %v5219_v49 = vpop.f32.mrf.mxu0 }
 0x5f8   :  { %6705 = vtanh.f32 %v5229_v47  ;;  %v5236_v41 = vmul.f32 0.5, %v5218_v12  ;;  %v5220_v50 = vadd.f32 %v5219_v49, %v5177_v48 }
 0x5fa   :  { %6707 = vtanh.f32 %v5236_v41  ;;  %v5237_v51 = vmul.f32 0.5, %v5220_v50 }
 0x5fc   :  { %6709 = vtanh.f32 %v5237_v51 }
 0x603   :  { %v6704_v52 = vpop.eup %6703 }
 0x604   :  { %v5260_v54 = vadd.f32 1.0, %v6704_v52 }
 0x605   :  { %v6706_v56 = vpop.eup %6705 }
 0x606   :  { %v5261_v57 = vadd.f32 1.0, %v6706_v56  ;;  %v5276_v24 = vmul.f32 0.5, %v5260_v54 }
 0x607   :  { %v6708_v58 = vpop.eup %6707 }
 0x608   :  { %v5277_v59 = vmul.f32 0.5, %v5261_v57  ;;  %v5268_v62 = vadd.f32 1.0, %v6708_v58 }
 0x609   :  { %v6710_v19 = vpop.eup %6709 }
 0x60a   :  { %v6040_v60 = vpack.c.bf16 %v5277_v59, %v5276_v24  ;;  %v5269_v0 = vadd.f32 1.0, %v6710_v19  ;;  %v5284_v61 = vmul.f32 0.5, %v5268_v62 }
 0x60c   :  { %5337 = vst [vmem:[%s7171_s11 + $0x18] sm:$0xff] %v6040_v60  ;;  %v5285_v2 = vmul.f32 0.5, %v5269_v0 }
 0x60e   :  { %v6044_v1 = vpack.c.bf16 %v5285_v2, %v5284_v61 }
 0x610   :  { %5341 = vst [vmem:[%s7171_s11 + $0x38] sm:$0xff] %v6044_v1 }
 0x611   :  { %5346 = vsyncpa [#allocation3], 1 }
 0x612   :  { %5347 = vsyncpa [#allocation5], 1 }
 0x613   :  { %5348 = vsyncpa [#allocation8], 1 }

</bundles_post_ra>
